<compile_context>
chip_gen: v5e
topology: v5e:2x2
jax: 0.10.0
libtpu: 0.0.40
codegen_flags: <defaults>
</compile_context>

<pallas_src>
import functools
import math

import jax
import jax.numpy as jnp
from jax import lax
from jax.experimental import pallas as pl

EPS = 1e-5   # BatchNorm2d eps

RETURN_FEATURES = [True, True]


# ----------------------------- in-kernel helpers -----------------------------

def _bn(y, eps=EPS):
    # training-mode BatchNorm2d (gamma=1, beta=0): stats over axis 0 (= N*H*W),
    # biased variance, fp32 math.
    mean = jnp.mean(y, axis=0, keepdims=True)
    var = jnp.mean((y - mean) * (y - mean), axis=0, keepdims=True)
    return (y - mean) * lax.rsqrt(var + eps)


def _conv_bn(x, w, relu):
    y = _bn(jnp.dot(x, w, preferred_element_type=jnp.float32))
    return jnp.maximum(y, 0.0) if relu else y


# ------------------------------- Pallas kernels -------------------------------
# All kernels are single-block (no grid): whole operands live in VMEM.

def stem_kernel(x_ref, w_ref, o_ref):
    # Stem 7x7/s2 conv (as im2col matmul) + BN + ReLU.
    o_ref[...] = _conv_bn(x_ref[...], w_ref[...], relu=True)


def maxpool_conv_kernel(p_ref, w_ref, pooled_ref, c1_ref):
    # p_ref: (9, M, C) max-pool taps.  Fuses stem max_pool2d(3,2,1) with
    # block0.conv1 (1x1) + bn1 + ReLU.  Also emits the pooled tensor (needed
    # later as block0's identity / downsample input).
    v = p_ref[0]
    for j in range(1, p_ref.shape[0]):
        v = jnp.maximum(v, p_ref[j])
    pooled_ref[...] = v
    c1_ref[...] = _conv_bn(v, w_ref[...], relu=True)


def b0_mid_tail_kernel(cols2_ref, w2_ref, w3_ref, id_ref, wd_ref, wn_ref,
                       blk_ref, c1n_ref):
    # block0: conv2(3x3 im2col)+bn2+ReLU, conv3+bn3, downsample(1x1)+bn,
    # residual add, ReLU (outer-loop ReLU is idempotent here),
    # plus block1.conv1 + bn1 + ReLU fused in.
    out2 = _conv_bn(cols2_ref[...], w2_ref[...], relu=True)
    y3 = _conv_bn(out2, w3_ref[...], relu=False)
    yd = _conv_bn(id_ref[...], wd_ref[...], relu=False)
    o = jnp.maximum(y3 + yd, 0.0)
    blk_ref[...] = o
    c1n_ref[...] = _conv_bn(o, wn_ref[...], relu=True)


def b1_block_kernel(c0_ref, w20_ref, c1_ref, w21_ref, u_ref,
                    wr0_ref, wr1_ref, w3_ref, id_ref, o_ref):
    # Whole StriderBlockv2 body (minus im2col glue):
    #  - conv2_0 (s1) / conv2_1 (s2) + bn2_i + ReLU
    #  - resize_i (1x1) + bnr_i + ReLU; branch 1 is processed at its native 4x4
    #    resolution (1x1 conv, batch-stat BN and ReLU commute exactly with 2x
    #    nearest replication) and then upsampled via the constant 0/1 matrix U.
    #  - stack(...).sum(0)/2, conv3 + bn3
    #  - identity + long-range residual: identity (block1 input) and the LR
    #    residual (all_outputs[0]) are the SAME tensor here -> + 2*id; /=1; ReLU.
    br0 = _conv_bn(c0_ref[...], w20_ref[...], relu=True)          # (M , 4)
    br1 = _conv_bn(c1_ref[...], w21_ref[...], relu=True)          # (M/4, 4)
    y0 = _conv_bn(br0, wr0_ref[...], relu=True)                   # (M , 8)
    y1l = _conv_bn(br1, wr1_ref[...], relu=True)                  # (M/4, 8)
    y1 = jnp.dot(u_ref[...], y1l, preferred_element_type=jnp.float32)  # upsample
    avg = (y0 + y1) * 0.5
    y = _conv_bn(avg, w3_ref[...], relu=False)                    # (M, 16)
    o_ref[...] = jnp.maximum(y + 2.0 * id_ref[...], 0.0)


# ------------------------------- XLA-side glue -------------------------------

def _w2d(w_oihw):
    cout, cin, kh, kw = w_oihw.shape
    return jnp.transpose(w_oihw, (2, 3, 1, 0)).reshape(kh * kw * cin, cout)


def _im2col(x, kh, kw, stride, padding, dilation=1):
    """NHWC im2col -> (N*Ho*Wo, kh*kw*C) columns (tap-major, channel-minor)."""
    n, h, w, c = x.shape
    xp = jnp.pad(x, ((0, 0), (padding, padding), (padding, padding), (0, 0)))
    ho = (h + 2 * padding - dilation * (kh - 1) - 1) // stride + 1
    wo = (w + 2 * padding - dilation * (kw - 1) - 1) // stride + 1
    taps = []
    for dy in range(kh):
        for dx in range(kw):
            taps.append(xp[:, dy * dilation: dy * dilation + (ho - 1) * stride + 1: stride,
                              dx * dilation: dx * dilation + (wo - 1) * stride + 1: stride, :])
    patches = jnp.stack(taps, axis=3)                     # (N, Ho, Wo, KK, C)
    return patches.reshape(n * ho * wo, kh * kw * c), ho, wo


def _pool_taps_3x3_s2_p1(x):
    """Max-pool taps stacked on the leading axis: (9, N*Ho*Wo, C)."""
    n, h, w, c = x.shape
    xp = jnp.pad(x, ((0, 0), (1, 1), (1, 1), (0, 0)), constant_values=-jnp.inf)
    ho = (h + 2 - 3) // 2 + 1
    wo = (w + 2 - 3) // 2 + 1
    taps = [xp[:, dy: dy + (ho - 1) * 2 + 1: 2, dx: dx + (wo - 1) * 2 + 1: 2, :]
            for dy in range(3) for dx in range(3)]
    return jnp.stack(taps, axis=0).reshape(9, n * ho * wo, c), ho, wo


def _nearest_upsample_matrix(n, hs, ws, factor):
    """0/1 matrix U so that (U @ x_flat) == nearest-upsample-by-factor of x.

    Rows index flattened (n, hs*factor, ws*factor); cols index flattened (n, hs, ws).
    Matches F.interpolate(mode='nearest'): src = floor(dst * in/out) = dst // factor.
    """
    ho, wo = hs * factor, ws * factor
    oi = jnp.arange(n * ho * wo)
    ni = oi // (ho * wo)
    rem = oi % (ho * wo)
    hy = rem // wo
    wx = rem % wo
    src = ni * (hs * ws) + (hy // factor) * ws + (wx // factor)
    return (src[:, None] == jnp.arange(n * hs * ws)[None, :]).astype(jnp.float32)


# -------------------------------- parameters --------------------------------

def kaiming_conv(key, cout, cin, kh, kw):
    # kaiming_normal_(mode='fan_out', nonlinearity='relu'): std = sqrt(2/(cout*kh*kw))
    std = math.sqrt(2.0 / (cout * kh * kw))
    return std * jax.random.normal(key, (cout, cin, kh, kw), dtype=jnp.float32)


def init_params(key):
    ks = jax.random.split(key, 11)
    p = {}
    p['stem_conv1'] = kaiming_conv(ks[0], 8, 3, 7, 7)
    # block0: Bottleneck(in=8, bottleneck=8, out=16, stride=1, dilation=1)
    p['b0_conv1'] = kaiming_conv(ks[1], 8, 8, 1, 1)
    p['b0_conv2'] = kaiming_conv(ks[2], 8, 8, 3, 3)
    p['b0_conv3'] = kaiming_conv(ks[3], 16, 8, 1, 1)
    p['b0_down'] = kaiming_conv(ks[4], 16, 8, 1, 1)
    # block1: StriderBlockv2(in=16, bottleneck=8, out=16, 2 branches, sub=ceil(8/2)=4)
    p['b1_conv1'] = kaiming_conv(ks[5], 8, 16, 1, 1)
    p['b1_conv2_0'] = kaiming_conv(ks[6], 4, 8, 3, 3)
    p['b1_conv2_1'] = kaiming_conv(ks[7], 4, 8, 3, 3)
    p['b1_resize_0'] = kaiming_conv(ks[8], 8, 4, 1, 1)
    p['b1_resize_1'] = kaiming_conv(ks[9], 8, 4, 1, 1)
    p['b1_conv3'] = kaiming_conv(ks[10], 16, 8, 1, 1)
    return p


# -------------------------------- forward pass --------------------------------

def strider_forward(params, x_nchw):
    x = jnp.transpose(x_nchw, (0, 2, 3, 1)).astype(jnp.float32)   # NCHW -> NHWC
    n = x.shape[0]
    f32 = jnp.float32

    # ---- BaseStem: 7x7/s2/p3 conv + BN + ReLU  (call 1) ----
    cols, ho, wo = _im2col(x, 7, 7, 2, 3)
    stem = pl.pallas_call(
        stem_kernel,
        out_shape=jax.ShapeDtypeStruct((cols.shape[0], 8), f32),
    )(cols, _w2d(params['stem_conv1']))
    stem = stem.reshape(n, ho, wo, 8)                              # (N,16,16,8)

    # ---- stem max-pool 3x3/s2/p1 fused with block0 conv1+bn1+ReLU  (call 2) ----
    taps, hp, wp = _pool_taps_3x3_s2_p1(stem)                      # (9, N*8*8, 8)
    m0 = taps.shape[1]
    pooled, c1 = pl.pallas_call(
        maxpool_conv_kernel,
        out_shape=(jax.ShapeDtypeStruct((m0, 8), f32),
                   jax.ShapeDtypeStruct((m0, 8), f32)),
    )(taps, _w2d(params['b0_conv1']))

    # ---- block0 conv2+bn2+ReLU, conv3+bn3, downsample+bn, add, ReLU
    #      + block1 conv1+bn1+ReLU  (call 3) ----
    cols2, _, _ = _im2col(c1.reshape(n, hp, wp, 8), 3, 3, 1, 1)
    block0_out, b1c1 = pl.pallas_call(
        b0_mid_tail_kernel,
        out_shape=(jax.ShapeDtypeStruct((m0, 16), f32),
                   jax.ShapeDtypeStruct((m0, 8), f32)),
    )(cols2, _w2d(params['b0_conv2']), _w2d(params['b0_conv3']),
      pooled, _w2d(params['b0_down']), _w2d(params['b1_conv1']))
    feat0 = block0_out.reshape(n, hp, wp, 16)                      # returned feature 0

    # ---- block1: both branches + resizes + fuse + conv3 + residuals  (call 4) ----
    b1c1_sp = b1c1.reshape(n, hp, wp, 8)
    cols_b0, hb0, wb0 = _im2col(b1c1_sp, 3, 3, 1, 1)               # (N*8*8, 72)
    cols_b1, hb1, wb1 = _im2col(b1c1_sp, 3, 3, 2, 1)               # (N*4*4, 72)
    up = _nearest_upsample_matrix(n, hb1, wb1, 2)                  # (N*64, N*16)

    feat1 = pl.pallas_call(
        b1_block_kernel,
        out_shape=jax.ShapeDtypeStruct((m0, 16), f32),
    )(cols_b0, _w2d(params['b1_conv2_0']),
      cols_b1, _w2d(params['b1_conv2_1']),
      up,
      _w2d(params['b1_resize_0']), _w2d(params['b1_resize_1']),
      _w2d(params['b1_conv3']), block0_out)
    feat1 = feat1.reshape(n, hp, wp, 16)

    outs = [o for o, r in zip([feat0, feat1], RETURN_FEATURES) if r]
    return [jnp.transpose(o, (0, 3, 1, 2)) for o in outs]          # back to NCHW


# ------------------------------------ main ------------------------------------

if __name__ == "__main__":
    key = jax.random.PRNGKey(0)
    kp, kx = jax.random.split(key)
    params = init_params(kp)
    x = jax.random.normal(kx, (2, 3, 32, 32), dtype=jnp.float32)   # NCHW like PyTorch

    fwd = jax.jit(strider_forward)
    outs = fwd(params, x)
    for o in outs:
        jax.block_until_ready(o)

    assert outs[0].shape == (2, 16, 8, 8)
    assert outs[1].shape == (2, 16, 8, 8)
    assert all(bool(jnp.isfinite(o).all()) for o in outs)
    print("KERNEL_OK")
</pallas_src>

<mosaic_0001>
module attributes {stable_mosaic.version = 11 : i64} {
  func.func @stem_kernel(%arg0: memref<512x147xf32, #tpu.memory_space<vmem>>, %arg1: memref<147x8xf32, #tpu.memory_space<vmem>>, %arg2: memref<512x8xf32, #tpu.memory_space<vmem>>) attributes {dimension_semantics = [], scalar_prefetch = 0 : i64, scratch_operands = 0 : i64, tpu.core_type = #tpu.core_type<tc>} {
    %c0 = arith.constant 0 : index
    %c0_0 = arith.constant 0 : index
    %0 = vector.load %arg0[%c0, %c0_0] : memref<512x147xf32, #tpu.memory_space<vmem>>, vector<512x147xf32>
    %c0_1 = arith.constant 0 : index
    %c0_2 = arith.constant 0 : index
    %1 = vector.load %arg1[%c0_1, %c0_2] : memref<147x8xf32, #tpu.memory_space<vmem>>, vector<147x8xf32>
    %cst = arith.constant dense<0.000000e+00> : vector<512x8xf32>
    %2 = tpu.matmul %0, %1, %cst {dimension_numbers = #tpu.dot_dimension_numbers<[1], [0], [0], [1], [0, 0, 1, 1], [], []>} : vector<512x147xf32>, vector<147x8xf32>, vector<512x8xf32> -> vector<512x8xf32>
    %cst_3 = arith.constant dense<0.000000e+00> : vector<8xf32>
    %3 = vector.multi_reduction <add>, %2, %cst_3 [0] : vector<512x8xf32> to vector<8xf32>
    %4 = vector.shape_cast %3 : vector<8xf32> to vector<1x8xf32>
    %cst_4 = arith.constant 5.120000e+02 : f32
    %5 = vector.broadcast %cst_4 : f32 to vector<1x8xf32>
    %6 = arith.divf %4, %5 : vector<1x8xf32>
    %7 = vector.broadcast %6 : vector<1x8xf32> to vector<512x8xf32>
    %8 = arith.subf %2, %7 : vector<512x8xf32>
    %9 = vector.broadcast %6 : vector<1x8xf32> to vector<512x8xf32>
    %10 = arith.subf %2, %9 : vector<512x8xf32>
    %11 = arith.mulf %8, %10 : vector<512x8xf32>
    %cst_5 = arith.constant dense<0.000000e+00> : vector<8xf32>
    %12 = vector.multi_reduction <add>, %11, %cst_5 [0] : vector<512x8xf32> to vector<8xf32>
    %13 = vector.shape_cast %12 : vector<8xf32> to vector<1x8xf32>
    %cst_6 = arith.constant 5.120000e+02 : f32
    %14 = vector.broadcast %cst_6 : f32 to vector<1x8xf32>
    %15 = arith.divf %13, %14 : vector<1x8xf32>
    %16 = vector.broadcast %6 : vector<1x8xf32> to vector<512x8xf32>
    %17 = arith.subf %2, %16 : vector<512x8xf32>
    %cst_7 = arith.constant 9.99999974E-6 : f32
    %18 = vector.broadcast %cst_7 : f32 to vector<1x8xf32>
    %19 = arith.addf %15, %18 : vector<1x8xf32>
    %20 = math.rsqrt %19 : vector<1x8xf32>
    %21 = vector.broadcast %20 : vector<1x8xf32> to vector<512x8xf32>
    %22 = arith.mulf %17, %21 : vector<512x8xf32>
    %cst_8 = arith.constant 0.000000e+00 : f32
    %23 = vector.broadcast %cst_8 : f32 to vector<512x8xf32>
    %24 = arith.maximumf %22, %23 : vector<512x8xf32>
    %c0_9 = arith.constant 0 : index
    %c0_10 = arith.constant 0 : index
    %25 = vector.load %arg2[%c0_9, %c0_10] : memref<512x8xf32, #tpu.memory_space<vmem>>, vector<512x8xf32>
    tpu.vector_store %arg2[%c0_9, %c0_10], %24 {strides = array<i32>} : memref<512x8xf32, #tpu.memory_space<vmem>>, vector<512x8xf32>,
    return
  }
}

module attributes {stable_mosaic.version = 11 : i64} {
  func.func @maxpool_conv_kernel(%arg0: memref<9x128x8xf32, #tpu.memory_space<vmem>>, %arg1: memref<8x8xf32, #tpu.memory_space<vmem>>, %arg2: memref<128x8xf32, #tpu.memory_space<vmem>>, %arg3: memref<128x8xf32, #tpu.memory_space<vmem>>) attributes {dimension_semantics = [], scalar_prefetch = 0 : i64, scratch_operands = 0 : i64, tpu.core_type = #tpu.core_type<tc>} {
    %c0 = arith.constant 0 : index
    %c0_0 = arith.constant 0 : index
    %c0_1 = arith.constant 0 : index
    %0 = vector.load %arg0[%c0, %c0_0, %c0_1] : memref<9x128x8xf32, #tpu.memory_space<vmem>>, vector<1x128x8xf32>
    %1 = vector.shape_cast %0 : vector<1x128x8xf32> to vector<128x8xf32>
    %c1 = arith.constant 1 : index
    %c0_2 = arith.constant 0 : index
    %c0_3 = arith.constant 0 : index
    %2 = vector.load %arg0[%c1, %c0_2, %c0_3] : memref<9x128x8xf32, #tpu.memory_space<vmem>>, vector<1x128x8xf32>
    %3 = vector.shape_cast %2 : vector<1x128x8xf32> to vector<128x8xf32>
    %4 = arith.maximumf %1, %3 : vector<128x8xf32>
    %c2 = arith.constant 2 : index
    %c0_4 = arith.constant 0 : index
    %c0_5 = arith.constant 0 : index
    %5 = vector.load %arg0[%c2, %c0_4, %c0_5] : memref<9x128x8xf32, #tpu.memory_space<vmem>>, vector<1x128x8xf32>
    %6 = vector.shape_cast %5 : vector<1x128x8xf32> to vector<128x8xf32>
    %7 = arith.maximumf %4, %6 : vector<128x8xf32>
    %c3 = arith.constant 3 : index
    %c0_6 = arith.constant 0 : index
    %c0_7 = arith.constant 0 : index
    %8 = vector.load %arg0[%c3, %c0_6, %c0_7] : memref<9x128x8xf32, #tpu.memory_space<vmem>>, vector<1x128x8xf32>
    %9 = vector.shape_cast %8 : vector<1x128x8xf32> to vector<128x8xf32>
    %10 = arith.maximumf %7, %9 : vector<128x8xf32>
    %c4 = arith.constant 4 : index
    %c0_8 = arith.constant 0 : index
    %c0_9 = arith.constant 0 : index
    %11 = vector.load %arg0[%c4, %c0_8, %c0_9] : memref<9x128x8xf32, #tpu.memory_space<vmem>>, vector<1x128x8xf32>
    %12 = vector.shape_cast %11 : vector<1x128x8xf32> to vector<128x8xf32>
    %13 = arith.maximumf %10, %12 : vector<128x8xf32>
    %c5 = arith.constant 5 : index
    %c0_10 = arith.constant 0 : index
    %c0_11 = arith.constant 0 : index
    %14 = vector.load %arg0[%c5, %c0_10, %c0_11] : memref<9x128x8xf32, #tpu.memory_space<vmem>>, vector<1x128x8xf32>
    %15 = vector.shape_cast %14 : vector<1x128x8xf32> to vector<128x8xf32>
    %16 = arith.maximumf %13, %15 : vector<128x8xf32>
    %c6 = arith.constant 6 : index
    %c0_12 = arith.constant 0 : index
    %c0_13 = arith.constant 0 : index
    %17 = vector.load %arg0[%c6, %c0_12, %c0_13] : memref<9x128x8xf32, #tpu.memory_space<vmem>>, vector<1x128x8xf32>
    %18 = vector.shape_cast %17 : vector<1x128x8xf32> to vector<128x8xf32>
    %19 = arith.maximumf %16, %18 : vector<128x8xf32>
    %c7 = arith.constant 7 : index
    %c0_14 = arith.constant 0 : index
    %c0_15 = arith.constant 0 : index
    %20 = vector.load %arg0[%c7, %c0_14, %c0_15] : memref<9x128x8xf32, #tpu.memory_space<vmem>>, vector<1x128x8xf32>
    %21 = vector.shape_cast %20 : vector<1x128x8xf32> to vector<128x8xf32>
    %22 = arith.maximumf %19, %21 : vector<128x8xf32>
    %c8 = arith.constant 8 : index
    %c0_16 = arith.constant 0 : index
    %c0_17 = arith.constant 0 : index
    %23 = vector.load %arg0[%c8, %c0_16, %c0_17] : memref<9x128x8xf32, #tpu.memory_space<vmem>>, vector<1x128x8xf32>
    %24 = vector.shape_cast %23 : vector<1x128x8xf32> to vector<128x8xf32>
    %25 = arith.maximumf %22, %24 : vector<128x8xf32>
    %c0_18 = arith.constant 0 : index
    %c0_19 = arith.constant 0 : index
    %26 = vector.load %arg2[%c0_18, %c0_19] : memref<128x8xf32, #tpu.memory_space<vmem>>, vector<128x8xf32>
    tpu.vector_store %arg2[%c0_18, %c0_19], %25 {strides = array<i32>} : memref<128x8xf32, #tpu.memory_space<vmem>>, vector<128x8xf32>,
    %c0_20 = arith.constant 0 : index
    %c0_21 = arith.constant 0 : index
    %27 = vector.load %arg1[%c0_20, %c0_21] : memref<8x8xf32, #tpu.memory_space<vmem>>, vector<8x8xf32>
    %cst = arith.constant dense<0.000000e+00> : vector<128x8xf32>
    %28 = tpu.matmul %25, %27, %cst {dimension_numbers = #tpu.dot_dimension_numbers<[1], [0], [0], [1], [0, 0, 1, 1], [], []>} : vector<128x8xf32>, vector<8x8xf32>, vector<128x8xf32> -> vector<128x8xf32>
    %cst_22 = arith.constant dense<0.000000e+00> : vector<8xf32>
    %29 = vector.multi_reduction <add>, %28, %cst_22 [0] : vector<128x8xf32> to vector<8xf32>
    %30 = vector.shape_cast %29 : vector<8xf32> to vector<1x8xf32>
    %cst_23 = arith.constant 1.280000e+02 : f32
    %31 = vector.broadcast %cst_23 : f32 to vector<1x8xf32>
    %32 = arith.divf %30, %31 : vector<1x8xf32>
    %33 = vector.broadcast %32 : vector<1x8xf32> to vector<128x8xf32>
    %34 = arith.subf %28, %33 : vector<128x8xf32>
    %35 = vector.broadcast %32 : vector<1x8xf32> to vector<128x8xf32>
    %36 = arith.subf %28, %35 : vector<128x8xf32>
    %37 = arith.mulf %34, %36 : vector<128x8xf32>
    %cst_24 = arith.constant dense<0.000000e+00> : vector<8xf32>
    %38 = vector.multi_reduction <add>, %37, %cst_24 [0] : vector<128x8xf32> to vector<8xf32>
    %39 = vector.shape_cast %38 : vector<8xf32> to vector<1x8xf32>
    %cst_25 = arith.constant 1.280000e+02 : f32
    %40 = vector.broadcast %cst_25 : f32 to vector<1x8xf32>
    %41 = arith.divf %39, %40 : vector<1x8xf32>
    %42 = vector.broadcast %32 : vector<1x8xf32> to vector<128x8xf32>
    %43 = arith.subf %28, %42 : vector<128x8xf32>
    %cst_26 = arith.constant 9.99999974E-6 : f32
    %44 = vector.broadcast %cst_26 : f32 to vector<1x8xf32>
    %45 = arith.addf %41, %44 : vector<1x8xf32>
    %46 = math.rsqrt %45 : vector<1x8xf32>
    %47 = vector.broadcast %46 : vector<1x8xf32> to vector<128x8xf32>
    %48 = arith.mulf %43, %47 : vector<128x8xf32>
    %cst_27 = arith.constant 0.000000e+00 : f32
    %49 = vector.broadcast %cst_27 : f32 to vector<128x8xf32>
    %50 = arith.maximumf %48, %49 : vector<128x8xf32>
    %c0_28 = arith.constant 0 : index
    %c0_29 = arith.constant 0 : index
    %51 = vector.load %arg3[%c0_28, %c0_29] : memref<128x8xf32, #tpu.memory_space<vmem>>, vector<128x8xf32>
    tpu.vector_store %arg3[%c0_28, %c0_29], %50 {strides = array<i32>} : memref<128x8xf32, #tpu.memory_space<vmem>>, vector<128x8xf32>,
    return
  }
}

module attributes {stable_mosaic.version = 11 : i64} {
  func.func @b0_mid_tail_kernel(%arg0: memref<128x72xf32, #tpu.memory_space<vmem>>, %arg1: memref<72x8xf32, #tpu.memory_space<vmem>>, %arg2: memref<8x16xf32, #tpu.memory_space<vmem>>, %arg3: memref<128x8xf32, #tpu.memory_space<vmem>>, %arg4: memref<8x16xf32, #tpu.memory_space<vmem>>, %arg5: memref<16x8xf32, #tpu.memory_space<vmem>>, %arg6: memref<128x16xf32, #tpu.memory_space<vmem>>, %arg7: memref<128x8xf32, #tpu.memory_space<vmem>>) attributes {dimension_semantics = [], scalar_prefetch = 0 : i64, scratch_operands = 0 : i64, tpu.core_type = #tpu.core_type<tc>} {
    %c0 = arith.constant 0 : index
    %c0_0 = arith.constant 0 : index
    %0 = vector.load %arg0[%c0, %c0_0] : memref<128x72xf32, #tpu.memory_space<vmem>>, vector<128x72xf32>
    %c0_1 = arith.constant 0 : index
    %c0_2 = arith.constant 0 : index
    %1 = vector.load %arg1[%c0_1, %c0_2] : memref<72x8xf32, #tpu.memory_space<vmem>>, vector<72x8xf32>
    %cst = arith.constant dense<0.000000e+00> : vector<128x8xf32>
    %2 = tpu.matmul %0, %1, %cst {dimension_numbers = #tpu.dot_dimension_numbers<[1], [0], [0], [1], [0, 0, 1, 1], [], []>} : vector<128x72xf32>, vector<72x8xf32>, vector<128x8xf32> -> vector<128x8xf32>
    %cst_3 = arith.constant dense<0.000000e+00> : vector<8xf32>
    %3 = vector.multi_reduction <add>, %2, %cst_3 [0] : vector<128x8xf32> to vector<8xf32>
    %4 = vector.shape_cast %3 : vector<8xf32> to vector<1x8xf32>
    %cst_4 = arith.constant 1.280000e+02 : f32
    %5 = vector.broadcast %cst_4 : f32 to vector<1x8xf32>
    %6 = arith.divf %4, %5 : vector<1x8xf32>
    %7 = vector.broadcast %6 : vector<1x8xf32> to vector<128x8xf32>
    %8 = arith.subf %2, %7 : vector<128x8xf32>
    %9 = vector.broadcast %6 : vector<1x8xf32> to vector<128x8xf32>
    %10 = arith.subf %2, %9 : vector<128x8xf32>
    %11 = arith.mulf %8, %10 : vector<128x8xf32>
    %cst_5 = arith.constant dense<0.000000e+00> : vector<8xf32>
    %12 = vector.multi_reduction <add>, %11, %cst_5 [0] : vector<128x8xf32> to vector<8xf32>
    %13 = vector.shape_cast %12 : vector<8xf32> to vector<1x8xf32>
    %cst_6 = arith.constant 1.280000e+02 : f32
    %14 = vector.broadcast %cst_6 : f32 to vector<1x8xf32>
    %15 = arith.divf %13, %14 : vector<1x8xf32>
    %16 = vector.broadcast %6 : vector<1x8xf32> to vector<128x8xf32>
    %17 = arith.subf %2, %16 : vector<128x8xf32>
    %cst_7 = arith.constant 9.99999974E-6 : f32
    %18 = vector.broadcast %cst_7 : f32 to vector<1x8xf32>
    %19 = arith.addf %15, %18 : vector<1x8xf32>
    %20 = math.rsqrt %19 : vector<1x8xf32>
    %21 = vector.broadcast %20 : vector<1x8xf32> to vector<128x8xf32>
    %22 = arith.mulf %17, %21 : vector<128x8xf32>
    %cst_8 = arith.constant 0.000000e+00 : f32
    %23 = vector.broadcast %cst_8 : f32 to vector<128x8xf32>
    %24 = arith.maximumf %22, %23 : vector<128x8xf32>
    %c0_9 = arith.constant 0 : index
    %c0_10 = arith.constant 0 : index
    %25 = vector.load %arg2[%c0_9, %c0_10] : memref<8x16xf32, #tpu.memory_space<vmem>>, vector<8x16xf32>
    %cst_11 = arith.constant dense<0.000000e+00> : vector<128x16xf32>
    %26 = tpu.matmul %24, %25, %cst_11 {dimension_numbers = #tpu.dot_dimension_numbers<[1], [0], [0], [1], [0, 0, 1, 1], [], []>} : vector<128x8xf32>, vector<8x16xf32>, vector<128x16xf32> -> vector<128x16xf32>
    %cst_12 = arith.constant dense<0.000000e+00> : vector<16xf32>
    %27 = vector.multi_reduction <add>, %26, %cst_12 [0] : vector<128x16xf32> to vector<16xf32>
    %28 = vector.shape_cast %27 : vector<16xf32> to vector<1x16xf32>
    %cst_13 = arith.constant 1.280000e+02 : f32
    %29 = vector.broadcast %cst_13 : f32 to vector<1x16xf32>
    %30 = arith.divf %28, %29 : vector<1x16xf32>
    %31 = vector.broadcast %30 : vector<1x16xf32> to vector<128x16xf32>
    %32 = arith.subf %26, %31 : vector<128x16xf32>
    %33 = vector.broadcast %30 : vector<1x16xf32> to vector<128x16xf32>
    %34 = arith.subf %26, %33 : vector<128x16xf32>
    %35 = arith.mulf %32, %34 : vector<128x16xf32>
    %cst_14 = arith.constant dense<0.000000e+00> : vector<16xf32>
    %36 = vector.multi_reduction <add>, %35, %cst_14 [0] : vector<128x16xf32> to vector<16xf32>
    %37 = vector.shape_cast %36 : vector<16xf32> to vector<1x16xf32>
    %cst_15 = arith.constant 1.280000e+02 : f32
    %38 = vector.broadcast %cst_15 : f32 to vector<1x16xf32>
    %39 = arith.divf %37, %38 : vector<1x16xf32>
    %40 = vector.broadcast %30 : vector<1x16xf32> to vector<128x16xf32>
    %41 = arith.subf %26, %40 : vector<128x16xf32>
    %cst_16 = arith.constant 9.99999974E-6 : f32
    %42 = vector.broadcast %cst_16 : f32 to vector<1x16xf32>
    %43 = arith.addf %39, %42 : vector<1x16xf32>
    %44 = math.rsqrt %43 : vector<1x16xf32>
    %45 = vector.broadcast %44 : vector<1x16xf32> to vector<128x16xf32>
    %46 = arith.mulf %41, %45 : vector<128x16xf32>
    %c0_17 = arith.constant 0 : index
    %c0_18 = arith.constant 0 : index
    %47 = vector.load %arg3[%c0_17, %c0_18] : memref<128x8xf32, #tpu.memory_space<vmem>>, vector<128x8xf32>
    %c0_19 = arith.constant 0 : index
    %c0_20 = arith.constant 0 : index
    %48 = vector.load %arg4[%c0_19, %c0_20] : memref<8x16xf32, #tpu.memory_space<vmem>>, vector<8x16xf32>
    %cst_21 = arith.constant dense<0.000000e+00> : vector<128x16xf32>
    %49 = tpu.matmul %47, %48, %cst_21 {dimension_numbers = #tpu.dot_dimension_numbers<[1], [0], [0], [1], [0, 0, 1, 1], [], []>} : vector<128x8xf32>, vector<8x16xf32>, vector<128x16xf32> -> vector<128x16xf32>
    %cst_22 = arith.constant dense<0.000000e+00> : vector<16xf32>
    %50 = vector.multi_reduction <add>, %49, %cst_22 [0] : vector<128x16xf32> to vector<16xf32>
    %51 = vector.shape_cast %50 : vector<16xf32> to vector<1x16xf32>
    %cst_23 = arith.constant 1.280000e+02 : f32
    %52 = vector.broadcast %cst_23 : f32 to vector<1x16xf32>
    %53 = arith.divf %51, %52 : vector<1x16xf32>
    %54 = vector.broadcast %53 : vector<1x16xf32> to vector<128x16xf32>
    %55 = arith.subf %49, %54 : vector<128x16xf32>
    %56 = vector.broadcast %53 : vector<1x16xf32> to vector<128x16xf32>
    %57 = arith.subf %49, %56 : vector<128x16xf32>
    %58 = arith.mulf %55, %57 : vector<128x16xf32>
    %cst_24 = arith.constant dense<0.000000e+00> : vector<16xf32>
    %59 = vector.multi_reduction <add>, %58, %cst_24 [0] : vector<128x16xf32> to vector<16xf32>
    %60 = vector.shape_cast %59 : vector<16xf32> to vector<1x16xf32>
    %cst_25 = arith.constant 1.280000e+02 : f32
    %61 = vector.broadcast %cst_25 : f32 to vector<1x16xf32>
    %62 = arith.divf %60, %61 : vector<1x16xf32>
    %63 = vector.broadcast %53 : vector<1x16xf32> to vector<128x16xf32>
    %64 = arith.subf %49, %63 : vector<128x16xf32>
    %cst_26 = arith.constant 9.99999974E-6 : f32
    %65 = vector.broadcast %cst_26 : f32 to vector<1x16xf32>
    %66 = arith.addf %62, %65 : vector<1x16xf32>
    %67 = math.rsqrt %66 : vector<1x16xf32>
    %68 = vector.broadcast %67 : vector<1x16xf32> to vector<128x16xf32>
    %69 = arith.mulf %64, %68 : vector<128x16xf32>
    %70 = arith.addf %46, %69 : vector<128x16xf32>
    %cst_27 = arith.constant 0.000000e+00 : f32
    %71 = vector.broadcast %cst_27 : f32 to vector<128x16xf32>
    %72 = arith.maximumf %70, %71 : vector<128x16xf32>
    %c0_28 = arith.constant 0 : index
    %c0_29 = arith.constant 0 : index
    %73 = vector.load %arg6[%c0_28, %c0_29] : memref<128x16xf32, #tpu.memory_space<vmem>>, vector<128x16xf32>
    tpu.vector_store %arg6[%c0_28, %c0_29], %72 {strides = array<i32>} : memref<128x16xf32, #tpu.memory_space<vmem>>, vector<128x16xf32>,
    %c0_30 = arith.constant 0 : index
    %c0_31 = arith.constant 0 : index
    %74 = vector.load %arg5[%c0_30, %c0_31] : memref<16x8xf32, #tpu.memory_space<vmem>>, vector<16x8xf32>
    %cst_32 = arith.constant dense<0.000000e+00> : vector<128x8xf32>
    %75 = tpu.matmul %72, %74, %cst_32 {dimension_numbers = #tpu.dot_dimension_numbers<[1], [0], [0], [1], [0, 0, 1, 1], [], []>} : vector<128x16xf32>, vector<16x8xf32>, vector<128x8xf32> -> vector<128x8xf32>
    %cst_33 = arith.constant dense<0.000000e+00> : vector<8xf32>
    %76 = vector.multi_reduction <add>, %75, %cst_33 [0] : vector<128x8xf32> to vector<8xf32>
    %77 = vector.shape_cast %76 : vector<8xf32> to vector<1x8xf32>
    %cst_34 = arith.constant 1.280000e+02 : f32
    %78 = vector.broadcast %cst_34 : f32 to vector<1x8xf32>
    %79 = arith.divf %77, %78 : vector<1x8xf32>
    %80 = vector.broadcast %79 : vector<1x8xf32> to vector<128x8xf32>
    %81 = arith.subf %75, %80 : vector<128x8xf32>
    %82 = vector.broadcast %79 : vector<1x8xf32> to vector<128x8xf32>
    %83 = arith.subf %75, %82 : vector<128x8xf32>
    %84 = arith.mulf %81, %83 : vector<128x8xf32>
    %cst_35 = arith.constant dense<0.000000e+00> : vector<8xf32>
    %85 = vector.multi_reduction <add>, %84, %cst_35 [0] : vector<128x8xf32> to vector<8xf32>
    %86 = vector.shape_cast %85 : vector<8xf32> to vector<1x8xf32>
    %cst_36 = arith.constant 1.280000e+02 : f32
    %87 = vector.broadcast %cst_36 : f32 to vector<1x8xf32>
    %88 = arith.divf %86, %87 : vector<1x8xf32>
    %89 = vector.broadcast %79 : vector<1x8xf32> to vector<128x8xf32>
    %90 = arith.subf %75, %89 : vector<128x8xf32>
    %cst_37 = arith.constant 9.99999974E-6 : f32
    %91 = vector.broadcast %cst_37 : f32 to vector<1x8xf32>
    %92 = arith.addf %88, %91 : vector<1x8xf32>
    %93 = math.rsqrt %92 : vector<1x8xf32>
    %94 = vector.broadcast %93 : vector<1x8xf32> to vector<128x8xf32>
    %95 = arith.mulf %90, %94 : vector<128x8xf32>
    %cst_38 = arith.constant 0.000000e+00 : f32
    %96 = vector.broadcast %cst_38 : f32 to vector<128x8xf32>
    %97 = arith.maximumf %95, %96 : vector<128x8xf32>
    %c0_39 = arith.constant 0 : index
    %c0_40 = arith.constant 0 : index
    %98 = vector.load %arg7[%c0_39, %c0_40] : memref<128x8xf32, #tpu.memory_space<vmem>>, vector<128x8xf32>
    tpu.vector_store %arg7[%c0_39, %c0_40], %97 {strides = array<i32>} : memref<128x8xf32, #tpu.memory_space<vmem>>, vector<128x8xf32>,
    return
  }
}

module attributes {stable_mosaic.version = 11 : i64} {
  func.func @b1_block_kernel(%arg0: memref<128x72xf32, #tpu.memory_space<vmem>>, %arg1: memref<72x4xf32, #tpu.memory_space<vmem>>, %arg2: memref<32x72xf32, #tpu.memory_space<vmem>>, %arg3: memref<72x4xf32, #tpu.memory_space<vmem>>, %arg4: memref<128x32xf32, #tpu.memory_space<vmem>>, %arg5: memref<4x8xf32, #tpu.memory_space<vmem>>, %arg6: memref<4x8xf32, #tpu.memory_space<vmem>>, %arg7: memref<8x16xf32, #tpu.memory_space<vmem>>, %arg8: memref<128x16xf32, #tpu.memory_space<vmem>>, %arg9: memref<128x16xf32, #tpu.memory_space<vmem>>) attributes {dimension_semantics = [], scalar_prefetch = 0 : i64, scratch_operands = 0 : i64, tpu.core_type = #tpu.core_type<tc>} {
    %c0 = arith.constant 0 : index
    %c0_0 = arith.constant 0 : index
    %0 = vector.load %arg0[%c0, %c0_0] : memref<128x72xf32, #tpu.memory_space<vmem>>, vector<128x72xf32>
    %c0_1 = arith.constant 0 : index
    %c0_2 = arith.constant 0 : index
    %1 = vector.load %arg1[%c0_1, %c0_2] : memref<72x4xf32, #tpu.memory_space<vmem>>, vector<72x4xf32>
    %cst = arith.constant dense<0.000000e+00> : vector<128x4xf32>
    %2 = tpu.matmul %0, %1, %cst {dimension_numbers = #tpu.dot_dimension_numbers<[1], [0], [0], [1], [0, 0, 1, 1], [], []>} : vector<128x72xf32>, vector<72x4xf32>, vector<128x4xf32> -> vector<128x4xf32>
    %cst_3 = arith.constant dense<0.000000e+00> : vector<4xf32>
    %3 = vector.multi_reduction <add>, %2, %cst_3 [0] : vector<128x4xf32> to vector<4xf32>
    %4 = vector.shape_cast %3 : vector<4xf32> to vector<1x4xf32>
    %cst_4 = arith.constant 1.280000e+02 : f32
    %5 = vector.broadcast %cst_4 : f32 to vector<1x4xf32>
    %6 = arith.divf %4, %5 : vector<1x4xf32>
    %7 = vector.broadcast %6 : vector<1x4xf32> to vector<128x4xf32>
    %8 = arith.subf %2, %7 : vector<128x4xf32>
    %9 = vector.broadcast %6 : vector<1x4xf32> to vector<128x4xf32>
    %10 = arith.subf %2, %9 : vector<128x4xf32>
    %11 = arith.mulf %8, %10 : vector<128x4xf32>
    %cst_5 = arith.constant dense<0.000000e+00> : vector<4xf32>
    %12 = vector.multi_reduction <add>, %11, %cst_5 [0] : vector<128x4xf32> to vector<4xf32>
    %13 = vector.shape_cast %12 : vector<4xf32> to vector<1x4xf32>
    %cst_6 = arith.constant 1.280000e+02 : f32
    %14 = vector.broadcast %cst_6 : f32 to vector<1x4xf32>
    %15 = arith.divf %13, %14 : vector<1x4xf32>
    %16 = vector.broadcast %6 : vector<1x4xf32> to vector<128x4xf32>
    %17 = arith.subf %2, %16 : vector<128x4xf32>
    %cst_7 = arith.constant 9.99999974E-6 : f32
    %18 = vector.broadcast %cst_7 : f32 to vector<1x4xf32>
    %19 = arith.addf %15, %18 : vector<1x4xf32>
    %20 = math.rsqrt %19 : vector<1x4xf32>
    %21 = vector.broadcast %20 : vector<1x4xf32> to vector<128x4xf32>
    %22 = arith.mulf %17, %21 : vector<128x4xf32>
    %cst_8 = arith.constant 0.000000e+00 : f32
    %23 = vector.broadcast %cst_8 : f32 to vector<128x4xf32>
    %24 = arith.maximumf %22, %23 : vector<128x4xf32>
    %c0_9 = arith.constant 0 : index
    %c0_10 = arith.constant 0 : index
    %25 = vector.load %arg2[%c0_9, %c0_10] : memref<32x72xf32, #tpu.memory_space<vmem>>, vector<32x72xf32>
    %c0_11 = arith.constant 0 : index
    %c0_12 = arith.constant 0 : index
    %26 = vector.load %arg3[%c0_11, %c0_12] : memref<72x4xf32, #tpu.memory_space<vmem>>, vector<72x4xf32>
    %cst_13 = arith.constant dense<0.000000e+00> : vector<32x4xf32>
    %27 = tpu.matmul %25, %26, %cst_13 {dimension_numbers = #tpu.dot_dimension_numbers<[1], [0], [0], [1], [0, 0, 1, 1], [], []>} : vector<32x72xf32>, vector<72x4xf32>, vector<32x4xf32> -> vector<32x4xf32>
    %cst_14 = arith.constant dense<0.000000e+00> : vector<4xf32>
    %28 = vector.multi_reduction <add>, %27, %cst_14 [0] : vector<32x4xf32> to vector<4xf32>
    %29 = vector.shape_cast %28 : vector<4xf32> to vector<1x4xf32>
    %cst_15 = arith.constant 3.200000e+01 : f32
    %30 = vector.broadcast %cst_15 : f32 to vector<1x4xf32>
    %31 = arith.divf %29, %30 : vector<1x4xf32>
    %32 = vector.broadcast %31 : vector<1x4xf32> to vector<32x4xf32>
    %33 = arith.subf %27, %32 : vector<32x4xf32>
    %34 = vector.broadcast %31 : vector<1x4xf32> to vector<32x4xf32>
    %35 = arith.subf %27, %34 : vector<32x4xf32>
    %36 = arith.mulf %33, %35 : vector<32x4xf32>
    %cst_16 = arith.constant dense<0.000000e+00> : vector<4xf32>
    %37 = vector.multi_reduction <add>, %36, %cst_16 [0] : vector<32x4xf32> to vector<4xf32>
    %38 = vector.shape_cast %37 : vector<4xf32> to vector<1x4xf32>
    %cst_17 = arith.constant 3.200000e+01 : f32
    %39 = vector.broadcast %cst_17 : f32 to vector<1x4xf32>
    %40 = arith.divf %38, %39 : vector<1x4xf32>
    %41 = vector.broadcast %31 : vector<1x4xf32> to vector<32x4xf32>
    %42 = arith.subf %27, %41 : vector<32x4xf32>
    %cst_18 = arith.constant 9.99999974E-6 : f32
    %43 = vector.broadcast %cst_18 : f32 to vector<1x4xf32>
    %44 = arith.addf %40, %43 : vector<1x4xf32>
    %45 = math.rsqrt %44 : vector<1x4xf32>
    %46 = vector.broadcast %45 : vector<1x4xf32> to vector<32x4xf32>
    %47 = arith.mulf %42, %46 : vector<32x4xf32>
    %cst_19 = arith.constant 0.000000e+00 : f32
    %48 = vector.broadcast %cst_19 : f32 to vector<32x4xf32>
    %49 = arith.maximumf %47, %48 : vector<32x4xf32>
    %c0_20 = arith.constant 0 : index
    %c0_21 = arith.constant 0 : index
    %50 = vector.load %arg5[%c0_20, %c0_21] : memref<4x8xf32, #tpu.memory_space<vmem>>, vector<4x8xf32>
    %cst_22 = arith.constant dense<0.000000e+00> : vector<128x8xf32>
    %51 = tpu.matmul %24, %50, %cst_22 {dimension_numbers = #tpu.dot_dimension_numbers<[1], [0], [0], [1], [0, 0, 1, 1], [], []>} : vector<128x4xf32>, vector<4x8xf32>, vector<128x8xf32> -> vector<128x8xf32>
    %cst_23 = arith.constant dense<0.000000e+00> : vector<8xf32>
    %52 = vector.multi_reduction <add>, %51, %cst_23 [0] : vector<128x8xf32> to vector<8xf32>
    %53 = vector.shape_cast %52 : vector<8xf32> to vector<1x8xf32>
    %cst_24 = arith.constant 1.280000e+02 : f32
    %54 = vector.broadcast %cst_24 : f32 to vector<1x8xf32>
    %55 = arith.divf %53, %54 : vector<1x8xf32>
    %56 = vector.broadcast %55 : vector<1x8xf32> to vector<128x8xf32>
    %57 = arith.subf %51, %56 : vector<128x8xf32>
    %58 = vector.broadcast %55 : vector<1x8xf32> to vector<128x8xf32>
    %59 = arith.subf %51, %58 : vector<128x8xf32>
    %60 = arith.mulf %57, %59 : vector<128x8xf32>
    %cst_25 = arith.constant dense<0.000000e+00> : vector<8xf32>
    %61 = vector.multi_reduction <add>, %60, %cst_25 [0] : vector<128x8xf32> to vector<8xf32>
    %62 = vector.shape_cast %61 : vector<8xf32> to vector<1x8xf32>
    %cst_26 = arith.constant 1.280000e+02 : f32
    %63 = vector.broadcast %cst_26 : f32 to vector<1x8xf32>
    %64 = arith.divf %62, %63 : vector<1x8xf32>
    %65 = vector.broadcast %55 : vector<1x8xf32> to vector<128x8xf32>
    %66 = arith.subf %51, %65 : vector<128x8xf32>
    %cst_27 = arith.constant 9.99999974E-6 : f32
    %67 = vector.broadcast %cst_27 : f32 to vector<1x8xf32>
    %68 = arith.addf %64, %67 : vector<1x8xf32>
    %69 = math.rsqrt %68 : vector<1x8xf32>
    %70 = vector.broadcast %69 : vector<1x8xf32> to vector<128x8xf32>
    %71 = arith.mulf %66, %70 : vector<128x8xf32>
    %cst_28 = arith.constant 0.000000e+00 : f32
    %72 = vector.broadcast %cst_28 : f32 to vector<128x8xf32>
    %73 = arith.maximumf %71, %72 : vector<128x8xf32>
    %c0_29 = arith.constant 0 : index
    %c0_30 = arith.constant 0 : index
    %74 = vector.load %arg6[%c0_29, %c0_30] : memref<4x8xf32, #tpu.memory_space<vmem>>, vector<4x8xf32>
    %cst_31 = arith.constant dense<0.000000e+00> : vector<32x8xf32>
    %75 = tpu.matmul %49, %74, %cst_31 {dimension_numbers = #tpu.dot_dimension_numbers<[1], [0], [0], [1], [0, 0, 1, 1], [], []>} : vector<32x4xf32>, vector<4x8xf32>, vector<32x8xf32> -> vector<32x8xf32>
    %cst_32 = arith.constant dense<0.000000e+00> : vector<8xf32>
    %76 = vector.multi_reduction <add>, %75, %cst_32 [0] : vector<32x8xf32> to vector<8xf32>
    %77 = vector.shape_cast %76 : vector<8xf32> to vector<1x8xf32>
    %cst_33 = arith.constant 3.200000e+01 : f32
    %78 = vector.broadcast %cst_33 : f32 to vector<1x8xf32>
    %79 = arith.divf %77, %78 : vector<1x8xf32>
    %80 = vector.broadcast %79 : vector<1x8xf32> to vector<32x8xf32>
    %81 = arith.subf %75, %80 : vector<32x8xf32>
    %82 = vector.broadcast %79 : vector<1x8xf32> to vector<32x8xf32>
    %83 = arith.subf %75, %82 : vector<32x8xf32>
    %84 = arith.mulf %81, %83 : vector<32x8xf32>
    %cst_34 = arith.constant dense<0.000000e+00> : vector<8xf32>
    %85 = vector.multi_reduction <add>, %84, %cst_34 [0] : vector<32x8xf32> to vector<8xf32>
    %86 = vector.shape_cast %85 : vector<8xf32> to vector<1x8xf32>
    %cst_35 = arith.constant 3.200000e+01 : f32
    %87 = vector.broadcast %cst_35 : f32 to vector<1x8xf32>
    %88 = arith.divf %86, %87 : vector<1x8xf32>
    %89 = vector.broadcast %79 : vector<1x8xf32> to vector<32x8xf32>
    %90 = arith.subf %75, %89 : vector<32x8xf32>
    %cst_36 = arith.constant 9.99999974E-6 : f32
    %91 = vector.broadcast %cst_36 : f32 to vector<1x8xf32>
    %92 = arith.addf %88, %91 : vector<1x8xf32>
    %93 = math.rsqrt %92 : vector<1x8xf32>
    %94 = vector.broadcast %93 : vector<1x8xf32> to vector<32x8xf32>
    %95 = arith.mulf %90, %94 : vector<32x8xf32>
    %cst_37 = arith.constant 0.000000e+00 : f32
    %96 = vector.broadcast %cst_37 : f32 to vector<32x8xf32>
    %97 = arith.maximumf %95, %96 : vector<32x8xf32>
    %c0_38 = arith.constant 0 : index
    %c0_39 = arith.constant 0 : index
    %98 = vector.load %arg4[%c0_38, %c0_39] : memref<128x32xf32, #tpu.memory_space<vmem>>, vector<128x32xf32>
    %cst_40 = arith.constant dense<0.000000e+00> : vector<128x8xf32>
    %99 = tpu.matmul %98, %97, %cst_40 {dimension_numbers = #tpu.dot_dimension_numbers<[1], [0], [0], [1], [0, 0, 1, 1], [], []>} : vector<128x32xf32>, vector<32x8xf32>, vector<128x8xf32> -> vector<128x8xf32>
    %100 = arith.addf %73, %99 : vector<128x8xf32>
    %cst_41 = arith.constant 5.000000e-01 : f32
    %101 = vector.broadcast %cst_41 : f32 to vector<128x8xf32>
    %102 = arith.mulf %100, %101 : vector<128x8xf32>
    %c0_42 = arith.constant 0 : index
    %c0_43 = arith.constant 0 : index
    %103 = vector.load %arg7[%c0_42, %c0_43] : memref<8x16xf32, #tpu.memory_space<vmem>>, vector<8x16xf32>
    %cst_44 = arith.constant dense<0.000000e+00> : vector<128x16xf32>
    %104 = tpu.matmul %102, %103, %cst_44 {dimension_numbers = #tpu.dot_dimension_numbers<[1], [0], [0], [1], [0, 0, 1, 1], [], []>} : vector<128x8xf32>, vector<8x16xf32>, vector<128x16xf32> -> vector<128x16xf32>
    %cst_45 = arith.constant dense<0.000000e+00> : vector<16xf32>
    %105 = vector.multi_reduction <add>, %104, %cst_45 [0] : vector<128x16xf32> to vector<16xf32>
    %106 = vector.shape_cast %105 : vector<16xf32> to vector<1x16xf32>
    %cst_46 = arith.constant 1.280000e+02 : f32
    %107 = vector.broadcast %cst_46 : f32 to vector<1x16xf32>
    %108 = arith.divf %106, %107 : vector<1x16xf32>
    %109 = vector.broadcast %108 : vector<1x16xf32> to vector<128x16xf32>
    %110 = arith.subf %104, %109 : vector<128x16xf32>
    %111 = vector.broadcast %108 : vector<1x16xf32> to vector<128x16xf32>
    %112 = arith.subf %104, %111 : vector<128x16xf32>
    %113 = arith.mulf %110, %112 : vector<128x16xf32>
    %cst_47 = arith.constant dense<0.000000e+00> : vector<16xf32>
    %114 = vector.multi_reduction <add>, %113, %cst_47 [0] : vector<128x16xf32> to vector<16xf32>
    %115 = vector.shape_cast %114 : vector<16xf32> to vector<1x16xf32>
    %cst_48 = arith.constant 1.280000e+02 : f32
    %116 = vector.broadcast %cst_48 : f32 to vector<1x16xf32>
    %117 = arith.divf %115, %116 : vector<1x16xf32>
    %118 = vector.broadcast %108 : vector<1x16xf32> to vector<128x16xf32>
    %119 = arith.subf %104, %118 : vector<128x16xf32>
    %cst_49 = arith.constant 9.99999974E-6 : f32
    %120 = vector.broadcast %cst_49 : f32 to vector<1x16xf32>
    %121 = arith.addf %117, %120 : vector<1x16xf32>
    %122 = math.rsqrt %121 : vector<1x16xf32>
    %123 = vector.broadcast %122 : vector<1x16xf32> to vector<128x16xf32>
    %124 = arith.mulf %119, %123 : vector<128x16xf32>
    %c0_50 = arith.constant 0 : index
    %c0_51 = arith.constant 0 : index
    %125 = vector.load %arg8[%c0_50, %c0_51] : memref<128x16xf32, #tpu.memory_space<vmem>>, vector<128x16xf32>
    %cst_52 = arith.constant 2.000000e+00 : f32
    %126 = vector.broadcast %cst_52 : f32 to vector<128x16xf32>
    %127 = arith.mulf %126, %125 : vector<128x16xf32>
    %128 = arith.addf %124, %127 : vector<128x16xf32>
    %cst_53 = arith.constant 0.000000e+00 : f32
    %129 = vector.broadcast %cst_53 : f32 to vector<128x16xf32>
    %130 = arith.maximumf %128, %129 : vector<128x16xf32>
    %c0_54 = arith.constant 0 : index
    %c0_55 = arith.constant 0 : index
    %131 = vector.load %arg9[%c0_54, %c0_55] : memref<128x16xf32, #tpu.memory_space<vmem>>, vector<128x16xf32>
    tpu.vector_store %arg9[%c0_54, %c0_55], %130 {strides = array<i32>} : memref<128x16xf32, #tpu.memory_space<vmem>>, vector<128x16xf32>,
    return
  }
}

</mosaic_0001>

<bundles_post_ra>
// kernel: strider_forward.4
= control target key start
LH: loop header
LB: loop body
LE: loop exit
PB: predicated region body
PF: predicated region fallthrough
CT: control target
= control target key end

     0   :  { %vm351_vm0 = vcmask 1042432   ;;  %vm158_vm1 = vcmask 154624   ;;  %vm773_vm2 = vcmask 64512   ;;  %s3234_s1 = inlined_call_operand.vmem [shape: f32[147,8], index: 1, kind: input, shape index: {}]   ;;  %s3235_s0 = inlined_call_operand.vmem [shape: f32[512,147], index: 0, kind: input, shape index: {}]   ;;  %s3236_s2 = inlined_call_operand.vmem [shape: f32[512,8], index: 2, kind: output, shape index: {}]  }
   0x1   :  { %v154_v0 = vld [vmem:[%s3234_s1 + $0x78] sm:$0xff]  ;;  %v1511_v1 = vld [vmem:[%s3234_s1 + $0x90] sm:$0x7]  ;;  %v1519_v3 = vld [vmem:[%s3234_s1 + $0x88] sm:$0xff] }
   0x2   :  { %v153_v2 = vld [vmem:[%s3234_s1 + $0x70] sm:$0xff]  ;;  %355 = vmatpush.msra.mxu0 %v154_v0  ;;  %1450 = vmatpush.msra.mxu3 %v154_v0  ;;  %v152_v4 = vld [vmem:[%s3234_s1 + $0x68] sm:$0xff]  ;;  %v1529_v5 = vld [vmem:[%s3234_s1 + $0x80] sm:$0xff] }
   0x3   :  { %1384 = vmatpush.msk.msra.mxu1 %vm351_vm0, %v1511_v1  ;;  %1449 = vmatpush.msra.mxu2 %v154_v0  ;;  %v12_v6 = vld [vmem:[%s3235_s0 + $0x8] sm:$0xff]  ;;  %v151_v7 = vld [vmem:[%s3234_s1 + $0x60] sm:$0xff]  ;;  %v150_v8 = vld [vmem:[%s3234_s1 + $0x58] sm:$0xff] }
   0x4   :  { %356 = vmatpush.msra.mxu0 %v153_v2  ;;  %1452 = vmatpush.msra.mxu3 %v153_v2  ;;  %v149_v9 = vld [vmem:[%s3234_s1 + $0x50] sm:$0xff]  ;;  %v148_v10 = vld [vmem:[%s3234_s1 + $0x48] sm:$0xff]  ;;  %v14_v11 = vld [vmem:[%s3235_s0 + $0x18] sm:$0xff] }
   0x5   :  { %578 = vmatpush.msra.mxu1 %v1519_v3  ;;  %1451 = vmatpush.msra.mxu2 %v153_v2  ;;  %v147_v12 = vld [vmem:[%s3234_s1 + $0x40] sm:$0xff]  ;;  %v146_v13 = vld [vmem:[%s3234_s1 + $0x38] sm:$0xff]  ;;  %v145_v14 = vld [vmem:[%s3234_s1 + $0x30] sm:$0xff] }
   0x6   :  { %357 = vmatpush.msra.mxu0 %v152_v4  ;;  %1454 = vmatpush.msra.mxu3 %v152_v4  ;;  %v144_v15 = vld [vmem:[%s3234_s1 + $0x28] sm:$0xff]  ;;  %v143_v17 = vld [vmem:[%s3234_s1 + $0x20] sm:$0xff]  ;;  %v142_v18 = vld [vmem:[%s3234_s1 + $0x18] sm:$0xff] }
   0x7   :  { %579 = vmatpush.msra.mxu1 %v1529_v5  ;;  %1453 = vmatpush.msra.mxu2 %v152_v4  ;;  %v16_v16 = vld [vmem:[%s3235_s0 + $0x28] sm:$0xff]  ;;  %v141_v19 = vld [vmem:[%s3234_s1 + $0x10] sm:$0xff]  ;;  %v18_v21 = vld [vmem:[%s3235_s0 + $0x38] sm:$0xff] }
   0x8   :  { %1385 = vmatmul.msk.f32.vlgmr.msra.gmra.mxu1 %vm158_vm1, %v12_v6  ;;  %358 = vmatpush.msra.mxu0 %v151_v7  ;;  %v140_v20 = vld [vmem:[%s3234_s1 + $0x8] sm:$0xff]  ;;  %v139_v22 = vld [vmem:[%s3234_s1] sm:$0xff]  ;;  %v137_v24 = vld [vmem:[%s3235_s0 + $0x3f0] sm:$0xff] }
   0x9   :  { %1456 = vmatpush.msra.mxu3 %v151_v7  ;;  %1455 = vmatpush.msra.mxu2 %v151_v7  ;;  %v11_v23 = vld [vmem:[%s3235_s0] sm:$0xff]  ;;  %v20_v25 = vld [vmem:[%s3235_s0 + $0x48] sm:$0xff]  ;;  %v13_v26 = vld [vmem:[%s3235_s0 + $0x10] sm:$0xff] }
   0xa   :  { %359 = vmatpush.msra.mxu0 %v150_v8  ;;  %v80_v27 = vld [vmem:[%s3235_s0 + $0x228] sm:$0xff]  ;;  %v73_v28 = vld [vmem:[%s3235_s0 + $0x1f0] sm:$0xff]  ;;  %v22_v29 = vld [vmem:[%s3235_s0 + $0x58] sm:$0xff] }
   0xb   :  { %1458 = vmatpush.msra.mxu3 %v150_v8  ;;  %1457 = vmatpush.msra.mxu2 %v150_v8  ;;  %v15_v30 = vld [vmem:[%s3235_s0 + $0x20] sm:$0xff]  ;;  %v82_v31 = vld [vmem:[%s3235_s0 + $0x238] sm:$0xff]  ;;  %v24_v33 = vld [vmem:[%s3235_s0 + $0x68] sm:$0xff] }
   0xc   :  { %360 = vmatpush.msra.mxu0 %v149_v9  ;;  %v75_v32 = vld [vmem:[%s3235_s0 + $0x200] sm:$0xff]  ;;  %v17_v34 = vld [vmem:[%s3235_s0 + $0x30] sm:$0xff]  ;;  %v84_v35 = vld [vmem:[%s3235_s0 + $0x248] sm:$0xff] }
   0xd   :  { %1460 = vmatpush.msra.mxu3 %v149_v9  ;;  %1459 = vmatpush.msra.mxu2 %v149_v9  ;;  %v77_v36 = vld [vmem:[%s3235_s0 + $0x210] sm:$0xff]  ;;  %v26_v37 = vld [vmem:[%s3235_s0 + $0x78] sm:$0xff]  ;;  %v19_v38 = vld [vmem:[%s3235_s0 + $0x40] sm:$0xff] }
   0xe   :  { %361 = vmatpush.msra.mxu0 %v148_v10  ;;  %v86_v39 = vld [vmem:[%s3235_s0 + $0x258] sm:$0xff]  ;;  %v79_v40 = vld [vmem:[%s3235_s0 + $0x220] sm:$0xff]  ;;  %v28_v41 = vld [vmem:[%s3235_s0 + $0x88] sm:$0xff] }
   0xf   :  { %1462 = vmatpush.msra.mxu3 %v148_v10  ;;  %1461 = vmatpush.msra.mxu2 %v148_v10  ;;  %v21_v42 = vld [vmem:[%s3235_s0 + $0x50] sm:$0xff]  ;;  %v88_v43 = vld [vmem:[%s3235_s0 + $0x268] sm:$0xff]  ;;  %v30_v45 = vld [vmem:[%s3235_s0 + $0x98] sm:$0xff] }
  0x10   :  { %1386 = vmatmul.msk.f32.gmra.mxu1 %vm158_vm1, %v14_v11  ;;  %362 = vmatpush.msra.mxu0 %v147_v12  ;;  %v81_v44 = vld [vmem:[%s3235_s0 + $0x230] sm:$0xff]  ;;  %v23_v46 = vld [vmem:[%s3235_s0 + $0x60] sm:$0xff]  ;;  %v90_v47 = vld [vmem:[%s3235_s0 + $0x278] sm:$0xff] }
  0x11   :  { %1464 = vmatpush.msra.mxu3 %v147_v12  ;;  %1463 = vmatpush.msra.mxu2 %v147_v12  ;;  %v83_v48 = vld [vmem:[%s3235_s0 + $0x240] sm:$0xff]  ;;  %v32_v49 = vld [vmem:[%s3235_s0 + $0xa8] sm:$0xff]  ;;  %v25_v50 = vld [vmem:[%s3235_s0 + $0x70] sm:$0xff] }
  0x12   :  { %363 = vmatpush.msra.mxu0 %v146_v13  ;;  %v92_v51 = vld [vmem:[%s3235_s0 + $0x288] sm:$0xff]  ;;  %v85_v52 = vld [vmem:[%s3235_s0 + $0x250] sm:$0xff]  ;;  %v34_v53 = vld [vmem:[%s3235_s0 + $0xb8] sm:$0xff] }
  0x13   :  { %1466 = vmatpush.msra.mxu3 %v146_v13  ;;  %1465 = vmatpush.msra.mxu2 %v146_v13  ;;  %v27_v54 = vld [vmem:[%s3235_s0 + $0x80] sm:$0xff]  ;;  %v94_v55 = vld [vmem:[%s3235_s0 + $0x298] sm:$0xff]  ;;  %v36_v56 = vld [vmem:[%s3235_s0 + $0xc8] sm:$0xff] }
  0x14   :  { %364 = vmatpush.msra.mxu0 %v145_v14  ;;  %v87_v57 = vld [vmem:[%s3235_s0 + $0x260] sm:$0xff]  ;;  %v29_v58 = vld [vmem:[%s3235_s0 + $0x90] sm:$0xff]  ;;  %v96_v59 = vld [vmem:[%s3235_s0 + $0x2a8] sm:$0xff] }
  0x15   :  { %1468 = vmatpush.msra.mxu3 %v145_v14  ;;  %1467 = vmatpush.msra.mxu2 %v145_v14  ;;  %v38_v60 = vld [vmem:[%s3235_s0 + $0xd8] sm:$0xff]  ;;  %v89_v61 = vld [vmem:[%s3235_s0 + $0x270] sm:$0xff]  ;;  %v31_v62 = vld [vmem:[%s3235_s0 + $0xa0] sm:$0xff] }
  0x16   :  { %365 = vmatpush.msra.mxu0 %v144_v15  ;;  %v98_v63 = vld [vmem:[%s3235_s0 + $0x2b8] sm:$0xff]  ;;  %v40_v0 = vld [vmem:[%s3235_s0 + $0xe8] sm:$0xff]  ;;  %v33_v2 = vld [vmem:[%s3235_s0 + $0xb0] sm:$0xff] }
  0x17   :  { %1470 = vmatpush.msra.mxu3 %v144_v15  ;;  %1469 = vmatpush.msra.mxu2 %v144_v15  ;;  %v42_v4 = vld [vmem:[%s3235_s0 + $0xf8] sm:$0xff]  ;;  %v35_v6 = vld [vmem:[%s3235_s0 + $0xc0] sm:$0xff]  ;;  %v44_v9 = vld [vmem:[%s3235_s0 + $0x108] sm:$0xff] }
  0x18   :  { %1387 = vmatmul.msk.f32.gmra.mxu1 %vm158_vm1, %v16_v16  ;;  %366 = vmatpush.msra.mxu0 %v143_v17  ;;  %v102_v7 = vld [vmem:[%s3235_s0 + $0x2d8] sm:$0xff]  ;;  %v95_v10 = vld [vmem:[%s3235_s0 + $0x2a0] sm:$0xff]  ;;  %v37_v11 = vld [vmem:[%s3235_s0 + $0xd0] sm:$0xff] }
  0x19   :  { %1472 = vmatpush.msra.mxu3 %v143_v17  ;;  %1471 = vmatpush.msra.mxu2 %v143_v17  ;;  %v104_v12 = vld [vmem:[%s3235_s0 + $0x2e8] sm:$0xff]  ;;  %v46_v14 = vld [vmem:[%s3235_s0 + $0x118] sm:$0xff]  ;;  %v97_v15 = vld [vmem:[%s3235_s0 + $0x2b0] sm:$0xff] }
  0x1a   :  { %367 = vmatpush.msra.mxu0 %v142_v18  ;;  %v39_v16 = vld [vmem:[%s3235_s0 + $0xe0] sm:$0xff]  ;;  %v106_v17 = vld [vmem:[%s3235_s0 + $0x2f8] sm:$0xff] }
  0x1b   :  { %1474 = vmatpush.msra.mxu3 %v142_v18  ;;  %1473 = vmatpush.msra.mxu2 %v142_v18 }
  0x1c   :  { %368 = vmatpush.msra.mxu0 %v141_v19 }
  0x1d   :  { %1476 = vmatpush.msra.mxu3 %v141_v19  ;;  %1475 = vmatpush.msra.mxu2 %v141_v19  ;;  %v48_v19 = vld [vmem:[%s3235_s0 + $0x128] sm:$0xff] }
  0x1e   :  { %369 = vmatpush.msra.mxu0 %v140_v20 }
  0x1f   :  { %1478 = vmatpush.msra.mxu3 %v140_v20  ;;  %1477 = vmatpush.msra.mxu2 %v140_v20  ;;  %v99_v20 = vld [vmem:[%s3235_s0 + $0x2c0] sm:$0xff] }
  0x20   :  { %1388 = vmatmul.msk.f32.gmra.mxu1 %vm158_vm1, %v18_v21  ;;  %370 = vmatpush.msra.mxu0 %v139_v22  ;;  %v41_v21 = vld [vmem:[%s3235_s0 + $0xf0] sm:$0xff] }
  0x21   :  { %1480 = vmatpush.msra.mxu3 %v139_v22  ;;  %371 = vmatmul.f32.vlgmr.msra.gmra.mxu0 %v11_v23 }
  0x22   :  { %560 = vmatmul.f32.vlgmr.msra.gmra.mxu3 %v137_v24  ;;  %1479 = vmatpush.msra.mxu2 %v139_v22  ;;  %v108_v22 = vld [vmem:[%s3235_s0 + $0x308] sm:$0xff]  ;;  %v50_v24 = vld [vmem:[%s3235_s0 + $0x138] sm:$0xff] }
  0x23   :  { %1481 = vmatpush.msk.msrb.mxu3 %vm351_vm0, %v1511_v1  ;;  %464 = vmatmul.f32.vlgmr.msra.gmra.mxu2 %v73_v28  ;;  %v91_v1 = vld [vmem:[%s3235_s0 + $0x280] sm:$0xff]  ;;  %v110_v28 = vld [vmem:[%s3235_s0 + $0x318] sm:$0xff] }
  0x25   :  { %1482 = vmatpush.msrb.mxu3 %v1519_v3  ;;  %v100_v3 = vld [vmem:[%s3235_s0 + $0x2c8] sm:$0xff] }
  0x27   :  { %1483 = vmatpush.msrb.mxu3 %v1529_v5  ;;  %v93_v5 = vld [vmem:[%s3235_s0 + $0x290] sm:$0xff] }
  0x28   :  { %1389 = vmatmul.msk.f32.gmra.mxu1 %vm158_vm1, %v20_v25  ;;  %v101_v25 = vld [vmem:[%s3235_s0 + $0x2d0] sm:$0xff] }
  0x29   :  { %374 = vmatmul.f32.gmra.mxu0 %v13_v26 }
  0x2a   :  { %1419 = vmatmul.msk.f32.vlgmr.msrb.gmra.mxu3 %vm158_vm1, %v80_v27  ;;  %v43_v27 = vld [vmem:[%s3235_s0 + $0x100] sm:$0xff] }
  0x2b   :  { %467 = vmatmul.f32.gmra.mxu2 %v75_v32  ;;  %v103_v32 = vld [vmem:[%s3235_s0 + $0x2e0] sm:$0xff] }
  0x30   :  { %1390 = vmatmul.msk.f32.gmra.mxu1 %vm158_vm1, %v22_v29 }
  0x31   :  { %377 = vmatmul.f32.gmra.mxu0 %v15_v30 }
  0x32   :  { %1420 = vmatmul.msk.f32.gmra.mxu3 %vm158_vm1, %v82_v31  ;;  %v52_v31 = vld [vmem:[%s3235_s0 + $0x148] sm:$0xff] }
  0x33   :  { %470 = vmatmul.f32.gmra.mxu2 %v77_v36 }
  0x38   :  { %1391 = vmatmul.msk.f32.gmra.mxu1 %vm158_vm1, %v24_v33 }
  0x39   :  { %380 = vmatmul.f32.gmra.mxu0 %v17_v34  ;;  %v45_v34 = vld [vmem:[%s3235_s0 + $0x110] sm:$0xff] }
  0x3a   :  { %1421 = vmatmul.msk.f32.gmra.mxu3 %vm158_vm1, %v84_v35  ;;  %v112_v35 = vld [vmem:[%s3235_s0 + $0x328] sm:$0xff] }
  0x3b   :  { %473 = vmatmul.f32.gmra.mxu2 %v79_v40 }
  0x40   :  { %1392 = vmatmul.msk.f32.gmra.mxu1 %vm158_vm1, %v26_v37 }
  0x41   :  { %383 = vmatmul.f32.gmra.mxu0 %v19_v38  ;;  %v54_v38 = vld [vmem:[%s3235_s0 + $0x158] sm:$0xff] }
  0x42   :  { %1422 = vmatmul.msk.f32.gmra.mxu3 %vm158_vm1, %v86_v39  ;;  %v105_v39 = vld [vmem:[%s3235_s0 + $0x2f0] sm:$0xff] }
  0x43   :  { %476 = vmatmul.f32.gmra.mxu2 %v81_v44 }
  0x48   :  { %1393 = vmatmul.msk.f32.gmra.mxu1 %vm158_vm1, %v28_v41  ;;  %v47_v41 = vld [vmem:[%s3235_s0 + $0x120] sm:$0xff] }
  0x49   :  { %386 = vmatmul.f32.gmra.mxu0 %v21_v42  ;;  %v114_v42 = vld [vmem:[%s3235_s0 + $0x338] sm:$0xff] }
  0x4a   :  { %1423 = vmatmul.msk.f32.gmra.mxu3 %vm158_vm1, %v88_v43 }
  0x4b   :  { %479 = vmatmul.f32.gmra.mxu2 %v83_v48 }
  0x50   :  { %1394 = vmatmul.msk.f32.gmra.mxu1 %vm158_vm1, %v30_v45 }
  0x51   :  { %389 = vmatmul.f32.gmra.mxu0 %v23_v46  ;;  %v56_v46 = vld [vmem:[%s3235_s0 + $0x168] sm:$0xff] }
  0x52   :  { %1424 = vmatmul.msk.f32.gmra.mxu3 %vm158_vm1, %v90_v47  ;;  %v107_v47 = vld [vmem:[%s3235_s0 + $0x300] sm:$0xff] }
  0x53   :  { %482 = vmatmul.f32.gmra.mxu2 %v85_v52 }
  0x58   :  { %1395 = vmatmul.msk.f32.gmra.mxu1 %vm158_vm1, %v32_v49  ;;  %v49_v49 = vld [vmem:[%s3235_s0 + $0x130] sm:$0xff] }
  0x59   :  { %392 = vmatmul.f32.gmra.mxu0 %v25_v50  ;;  %v116_v50 = vld [vmem:[%s3235_s0 + $0x348] sm:$0xff] }
  0x5a   :  { %1425 = vmatmul.msk.f32.gmra.mxu3 %vm158_vm1, %v92_v51 }
  0x5b   :  { %485 = vmatmul.f32.gmra.mxu2 %v87_v57  ;;  %v51_v57 = vld [vmem:[%s3235_s0 + $0x140] sm:$0xff] }
  0x60   :  { %1396 = vmatmul.msk.f32.gmra.mxu1 %vm158_vm1, %v34_v53 }
  0x61   :  { %395 = vmatmul.f32.gmra.mxu0 %v27_v54  ;;  %v58_v54 = vld [vmem:[%s3235_s0 + $0x178] sm:$0xff] }
  0x62   :  { %1426 = vmatmul.msk.f32.gmra.mxu3 %vm158_vm1, %v94_v55  ;;  %v109_v55 = vld [vmem:[%s3235_s0 + $0x310] sm:$0xff] }
  0x63   :  { %488 = vmatmul.f32.gmra.mxu2 %v89_v61 }
  0x68   :  { %1397 = vmatmul.msk.f32.gmra.mxu1 %vm158_vm1, %v36_v56 }
  0x69   :  { %398 = vmatmul.f32.gmra.mxu0 %v29_v58  ;;  %v118_v58 = vld [vmem:[%s3235_s0 + $0x358] sm:$0xff] }
  0x6a   :  { %1427 = vmatmul.msk.f32.gmra.mxu3 %vm158_vm1, %v96_v59 }
  0x6b   :  { %491 = vmatmul.f32.gmra.mxu2 %v91_v1  ;;  %v53_v1 = vld [vmem:[%s3235_s0 + $0x150] sm:$0xff] }
  0x70   :  { %1398 = vmatmul.msk.f32.gmra.mxu1 %vm158_vm1, %v38_v60 }
  0x71   :  { %401 = vmatmul.f32.gmra.mxu0 %v31_v62  ;;  %v60_v62 = vld [vmem:[%s3235_s0 + $0x188] sm:$0xff] }
  0x72   :  { %1428 = vmatmul.msk.f32.gmra.mxu3 %vm158_vm1, %v98_v63  ;;  %v111_v63 = vld [vmem:[%s3235_s0 + $0x320] sm:$0xff] }
  0x73   :  { %494 = vmatmul.f32.gmra.mxu2 %v93_v5 }
  0x78   :  { %1399 = vmatmul.msk.f32.gmra.mxu1 %vm158_vm1, %v40_v0 }
  0x79   :  { %404 = vmatmul.f32.gmra.mxu0 %v33_v2  ;;  %v120_v2 = vld [vmem:[%s3235_s0 + $0x368] sm:$0xff] }
  0x7a   :  { %1429 = vmatmul.msk.f32.gmra.mxu3 %vm158_vm1, %v100_v3 }
  0x7b   :  { %497 = vmatmul.f32.gmra.mxu2 %v95_v10  ;;  %v55_v10 = vld [vmem:[%s3235_s0 + $0x160] sm:$0xff] }
  0x80   :  { %1400 = vmatmul.msk.f32.gmra.mxu1 %vm158_vm1, %v42_v4 }
  0x81   :  { %407 = vmatmul.f32.gmra.mxu0 %v35_v6  ;;  %v62_v6 = vld [vmem:[%s3235_s0 + $0x198] sm:$0xff] }
  0x82   :  { %1430 = vmatmul.msk.f32.gmra.mxu3 %vm158_vm1, %v102_v7  ;;  %v113_v7 = vld [vmem:[%s3235_s0 + $0x330] sm:$0xff] }
  0x83   :  { %500 = vmatmul.f32.gmra.mxu2 %v97_v15 }
  0x85   :  { %v1763_v8 = vpop.f32.mrf.mxu1 }
  0x88   :  { %1401 = vmatmul.msk.f32.gmra.mxu1 %vm158_vm1, %v44_v9 }
  0x89   :  { %410 = vmatmul.f32.gmra.mxu0 %v37_v11 }
  0x8a   :  { %1431 = vmatmul.msk.f32.gmra.mxu3 %vm158_vm1, %v104_v12  ;;  %v122_v12 = vld [vmem:[%s3235_s0 + $0x378] sm:$0xff] }
  0x8b   :  { %503 = vmatmul.f32.gmra.mxu2 %v99_v20 }
  0x8d   :  { %v1779_v13 = vpop.f32.mrf.mxu1 }
  0x90   :  { %1402 = vmatmul.msk.f32.gmra.mxu1 %vm158_vm1, %v46_v14 }
  0x91   :  { %413 = vmatmul.f32.gmra.mxu0 %v39_v16 }
  0x92   :  { %1432 = vmatmul.msk.f32.gmra.mxu3 %vm158_vm1, %v106_v17  ;;  %v64_v17 = vld [vmem:[%s3235_s0 + $0x1a8] sm:$0xff] }
  0x93   :  { %506 = vmatmul.f32.gmra.mxu2 %v101_v25 }
  0x95   :  { %v1795_v18 = vpop.f32.mrf.mxu1 }
  0x98   :  { %1403 = vmatmul.msk.f32.gmra.mxu1 %vm158_vm1, %v48_v19  ;;  %v115_v19 = vld [vmem:[%s3235_s0 + $0x340] sm:$0xff] }
  0x99   :  { %416 = vmatmul.f32.gmra.mxu0 %v41_v21  ;;  %v57_v21 = vld [vmem:[%s3235_s0 + $0x170] sm:$0xff] }
  0x9a   :  { %1433 = vmatmul.msk.f32.gmra.mxu3 %vm158_vm1, %v108_v22 }
  0x9b   :  { %509 = vmatmul.f32.gmra.mxu2 %v103_v32  ;;  %v66_v32 = vld [vmem:[%s3235_s0 + $0x1b8] sm:$0xff] }
  0x9d   :  { %v1811_v23 = vpop.f32.mrf.mxu1 }
  0x9e   :  { %v1819_v26 = vpop.f32.mrf.mxu0 }
  0xa0   :  { %1404 = vmatmul.msk.f32.gmra.mxu1 %vm158_vm1, %v50_v24  ;;  %v124_v24 = vld [vmem:[%s3235_s0 + $0x388] sm:$0xff] }
  0xa1   :  { %419 = vmatmul.f32.gmra.mxu0 %v43_v27 }
  0xa2   :  { %1434 = vmatmul.msk.f32.gmra.mxu3 %vm158_vm1, %v110_v28 }
  0xa3   :  { %512 = vmatmul.f32.gmra.mxu2 %v105_v39  ;;  %v126_v39 = vld [vmem:[%s3235_s0 + $0x398] sm:$0xff] }
  0xa5   :  { %v1829_v29 = vpop.f32.mrf.mxu3  ;;  %v1831_v30 = vpop.f32.mrf.mxu1 }
  0xa6   :  { %v1839_v33 = vpop.f32.mrf.mxu0  ;;  %v1866_v43 = vpop.f32.mrf.mxu2 }
  0xa8   :  { %1405 = vmatmul.msk.f32.gmra.mxu1 %vm158_vm1, %v52_v31 }
  0xa9   :  { %422 = vmatmul.f32.gmra.mxu0 %v45_v34  ;;  %v117_v34 = vld [vmem:[%s3235_s0 + $0x350] sm:$0xff] }
  0xaa   :  { %1435 = vmatmul.msk.f32.gmra.mxu3 %vm158_vm1, %v112_v35 }
  0xab   :  { %515 = vmatmul.f32.gmra.mxu2 %v107_v47  ;;  %v68_v47 = vld [vmem:[%s3235_s0 + $0x1c8] sm:$0xff] }
  0xad   :  { %v1849_v36 = vpop.f32.mrf.mxu1  ;;  %v683_v37 = vpop.f32.mrf.mxu3 }
  0xae   :  { %v1857_v40 = vpop.f32.mrf.mxu0  ;;  %v1886_v51 = vpop.f32.mrf.mxu2 }
  0xb0   :  { %1406 = vmatmul.msk.f32.gmra.mxu1 %vm158_vm1, %v54_v38 }
  0xb1   :  { %425 = vmatmul.f32.gmra.mxu0 %v47_v41 }
  0xb2   :  { %1436 = vmatmul.msk.f32.gmra.mxu3 %vm158_vm1, %v114_v42 }
  0xb3   :  { %518 = vmatmul.f32.gmra.mxu2 %v109_v55 }
  0xb5   :  { %v1869_v44 = vpop.f32.mrf.mxu1  ;;  %v686_v45 = vpop.f32.mrf.mxu3 }
  0xb6   :  { %v1877_v48 = vpop.f32.mrf.mxu0  ;;  %v1904_v59 = vpop.f32.mrf.mxu2 }
  0xb8   :  { %1407 = vmatmul.msk.f32.gmra.mxu1 %vm158_vm1, %v56_v46 }
  0xb9   :  { %428 = vmatmul.f32.gmra.mxu0 %v49_v49  ;;  %v119_v49 = vld [vmem:[%s3235_s0 + $0x360] sm:$0xff] }
  0xba   :  { %1437 = vmatmul.msk.f32.gmra.mxu3 %vm158_vm1, %v116_v50 }
  0xbb   :  { %521 = vmatmul.f32.gmra.mxu2 %v111_v63 }
  0xbd   :  { %v602_v52 = vpop.f32.mrf.mxu1  ;;  %v689_v53 = vpop.f32.mrf.mxu3 }
  0xbe   :  { %v1895_v56 = vpop.f32.mrf.mxu0  ;;  %v474_v3 = vpop.f32.mrf.mxu2 }
  0xbf   :  { %v1923_v4 = vadd.f32 %v683_v37, %v474_v3  ;;  %v59_v37 = vld [vmem:[%s3235_s0 + $0x180] sm:$0xff]  ;;  %v130_v3 = vld [vmem:[%s3235_s0 + $0x3b8] sm:$0xff] }
  0xc0   :  { %1408 = vmatmul.msk.f32.gmra.mxu1 %vm158_vm1, %v58_v54  ;;  %v128_v54 = vld [vmem:[%s3235_s0 + $0x3a8] sm:$0xff] }
  0xc1   :  { %431 = vmatmul.f32.gmra.mxu0 %v51_v57 }
  0xc2   :  { %1438 = vmatmul.msk.f32.gmra.mxu3 %vm158_vm1, %v118_v58 }
  0xc3   :  { %524 = vmatmul.f32.gmra.mxu2 %v113_v7 }
  0xc5   :  { %v605_v60 = vpop.f32.mrf.mxu1  ;;  %v692_v61 = vpop.f32.mrf.mxu3 }
  0xc6   :  { %v1913_v0 = vpop.f32.mrf.mxu0  ;;  %v477_v14 = vpop.f32.mrf.mxu2 }
  0xc7   :  { %v1941_v15 = vadd.f32 %v686_v45, %v477_v14  ;;  %v65_v14 = vld [vmem:[%s3235_s0 + $0x1b0] sm:$0xff] }
  0xc8   :  { %1409 = vmatmul.msk.f32.gmra.mxu1 %vm158_vm1, %v60_v62  ;;  %v121_v62 = vld [vmem:[%s3235_s0 + $0x370] sm:$0xff] }
  0xc9   :  { %434 = vmatmul.f32.gmra.mxu0 %v53_v1  ;;  %v63_v1 = vld [vmem:[%s3235_s0 + $0x1a0] sm:$0xff] }
  0xca   :  { %1439 = vmatmul.msk.f32.gmra.mxu3 %vm158_vm1, %v120_v2 }
  0xcb   :  { %527 = vmatmul.f32.gmra.mxu2 %v115_v19  ;;  %v132_v19 = vld [vmem:[%s3235_s0 + $0x3c8] sm:$0xff] }
  0xcd   :  { %v608_v5 = vpop.f32.mrf.mxu1  ;;  %v695_v11 = vpop.f32.mrf.mxu3 }
  0xce   :  { %v1931_v9 = vpop.f32.mrf.mxu0  ;;  %v480_v27 = vpop.f32.mrf.mxu2 }
  0xcf   :  { %v1959_v28 = vadd.f32 %v689_v53, %v480_v27  ;;  %v125_v27 = vld [vmem:[%s3235_s0 + $0x390] sm:$0xff] }
  0xd0   :  { %1410 = vmatmul.msk.f32.gmra.mxu1 %vm158_vm1, %v62_v6 }
  0xd1   :  { %437 = vmatmul.f32.gmra.mxu0 %v55_v10  ;;  %v72_v10 = vld [vmem:[%s3235_s0 + $0x1e8] sm:$0xff] }
  0xd2   :  { %1440 = vmatmul.msk.f32.gmra.mxu3 %vm158_vm1, %v122_v12 }
  0xd3   :  { %530 = vmatmul.f32.gmra.mxu2 %v117_v34 }
  0xd5   :  { %v611_v16 = vpop.f32.mrf.mxu1  ;;  %v698_v25 = vpop.f32.mrf.mxu3 }
  0xd6   :  { %v393_v20 = vpop.f32.mrf.mxu0  ;;  %v483_v41 = vpop.f32.mrf.mxu2 }
  0xd7   :  { %v1952_v22 = vadd.f32 %v602_v52, %v393_v20  ;;  %v1977_v42 = vadd.f32 %v692_v61, %v483_v41  ;;  %v61_v52 = vld [vmem:[%s3235_s0 + $0x190] sm:$0xff]  ;;  %v70_v61 = vld [vmem:[%s3235_s0 + $0x1d8] sm:$0xff] }
  0xd8   :  { %1411 = vmatmul.msk.f32.gmra.mxu1 %vm158_vm1, %v64_v17 }
  0xd9   :  { %440 = vmatmul.f32.gmra.mxu0 %v57_v21 }
  0xda   :  { %1441 = vmatmul.msk.f32.gmra.mxu3 %vm158_vm1, %v124_v24 }
  0xdb   :  { %533 = vmatmul.f32.gmra.mxu2 %v119_v49 }
  0xdd   :  { %v614_v31 = vpop.f32.mrf.mxu1  ;;  %v701_v45 = vpop.f32.mrf.mxu3 }
  0xde   :  { %v396_v35 = vpop.f32.mrf.mxu0  ;;  %v486_v55 = vpop.f32.mrf.mxu2 }
  0xdf   :  { %v1970_v38 = vadd.f32 %v605_v60, %v396_v35  ;;  %v1995_v57 = vadd.f32 %v695_v11, %v486_v55  ;;  %v123_v11 = vld [vmem:[%s3235_s0 + $0x380] sm:$0xff]  ;;  %v134_v35 = vld [vmem:[%s3235_s0 + $0x3d8] sm:$0xff] }
  0xe0   :  { %1412 = vmatmul.msk.f32.gmra.mxu1 %vm158_vm1, %v66_v32  ;;  %v67_v32 = vld [vmem:[%s3235_s0 + $0x1c0] sm:$0xff] }
  0xe1   :  { %3276 = vst [vmem:[#allocation2_spill] sm:$0xff] %v1970_v38  ;;  %443 = vmatmul.f32.gmra.mxu0 %v59_v37 }
  0xe2   :  { %1442 = vmatmul.msk.f32.gmra.mxu3 %vm158_vm1, %v126_v39  ;;  %3278 = vst [vmem:[#allocation4_spill] sm:$0xff] %v1995_v57 }
  0xe3   :  { %536 = vmatmul.f32.gmra.mxu2 %v121_v62 }
  0xe5   :  { %v617_v46 = vpop.f32.mrf.mxu1  ;;  %v704_v58 = vpop.f32.mrf.mxu3 }
  0xe6   :  { %v399_v50 = vpop.f32.mrf.mxu0 }
  0xe7   :  { %v1988_v53 = vadd.f32 %v608_v5, %v399_v50  ;;  %v489_v5 = vpop.f32.mrf.mxu2  ;;  %v69_v50 = vld [vmem:[%s3235_s0 + $0x1d0] sm:$0xff] }
  0xe8   :  { %1413 = vmatmul.msk.f32.gmra.mxu1 %vm158_vm1, %v68_v47  ;;  %v2013_v6 = vadd.f32 %v698_v25, %v489_v5  ;;  %v74_v25 = vld [vmem:[%s3235_s0 + $0x1f8] sm:$0xff]  ;;  %v76_v47 = vld [vmem:[%s3235_s0 + $0x208] sm:$0xff] }
  0xe9   :  { %3277 = vst [vmem:[#allocation3_spill] sm:$0xff] %v1988_v53  ;;  %446 = vmatmul.f32.gmra.mxu0 %v61_v52 }
  0xea   :  { %1443 = vmatmul.msk.f32.gmra.mxu3 %vm158_vm1, %v128_v54  ;;  %v136_v54 = vld [vmem:[%s3235_s0 + $0x3e8] sm:$0xff] }
  0xeb   :  { %539 = vmatmul.f32.gmra.mxu2 %v123_v11 }
  0xed   :  { %v620_v60 = vpop.f32.mrf.mxu1 }
  0xee   :  { %v402_v63 = vpop.f32.mrf.mxu0 }
  0xef   :  { %v2006_v2 = vadd.f32 %v611_v16, %v402_v63  ;;  %v707_v16 = vpop.f32.mrf.mxu3  ;;  %v492_v20 = vpop.f32.mrf.mxu2  ;;  %v78_v63 = vld [vmem:[%s3235_s0 + $0x218] sm:$0xff] }
  0xf0   :  { %1414 = vmatmul.msk.f32.gmra.mxu1 %vm158_vm1, %v70_v61  ;;  %v2031_v21 = vadd.f32 %v701_v45, %v492_v20 }
  0xf1   :  { %3279 = vst [vmem:[#allocation5_spill] sm:$0xff] %v2006_v2  ;;  %449 = vmatmul.f32.gmra.mxu0 %v63_v1 }
  0xf2   :  { %1444 = vmatmul.msk.f32.gmra.mxu3 %vm158_vm1, %v130_v3  ;;  %v71_v3 = vld [vmem:[%s3235_s0 + $0x1e0] sm:$0xff] }
  0xf3   :  { %542 = vmatmul.f32.gmra.mxu2 %v125_v27 }
  0xf5   :  { %v623_v7 = vpop.f32.mrf.mxu1 }
  0xf6   :  { %v405_v12 = vpop.f32.mrf.mxu0 }
  0xf7   :  { %v2024_v17 = vadd.f32 %v614_v31, %v405_v12  ;;  %v710_v37 = vpop.f32.mrf.mxu3  ;;  %v495_v39 = vpop.f32.mrf.mxu2 }
  0xf8   :  { %1415 = vmatmul.msk.f32.gmra.mxu1 %vm158_vm1, %v72_v10  ;;  %v2049_v41 = vadd.f32 %v704_v58, %v495_v39  ;;  %v138_v10 = vld [vmem:[%s3235_s0 + $0x3f8] sm:$0xff] }
  0xf9   :  { %3280 = vst [vmem:[#allocation6_spill] sm:$0xff] %v2024_v17  ;;  %452 = vmatmul.f32.gmra.mxu0 %v65_v14 }
  0xfa   :  { %1445 = vmatmul.msk.f32.gmra.mxu3 %vm158_vm1, %v132_v19  ;;  %3282 = vst [vmem:[#allocation8_spill] sm:$0xff] %v2049_v41  ;;  %v131_v19 = vld [vmem:[%s3235_s0 + $0x3c0] sm:$0xff] }
  0xfd   :  { %v626_v24 = vpop.f32.mrf.mxu1 }
  0xfe   :  { %v408_v31 = vpop.f32.mrf.mxu0 }
  0xff   :  { %v2042_v34 = vadd.f32 %v617_v46, %v408_v31  ;;  %v127_v46 = vld [vmem:[%s3235_s0 + $0x3a0] sm:$0xff]  ;;  %v498_v55 = vpop.f32.mrf.mxu2  ;;  %v713_v61 = vpop.f32.mrf.mxu3 }
 0x100   :  { %1416 = vmatmul.msk.f32.gmra.mxu1 %vm158_vm1, %v74_v25  ;;  %545 = vmatmul.f32.gmra.mxu2 %v127_v46  ;;  %v2067_v58 = vadd.f32 %v707_v16, %v498_v55 }
 0x101   :  { %3281 = vst [vmem:[#allocation7_spill] sm:$0xff] %v2042_v34  ;;  %455 = vmatmul.f32.gmra.mxu0 %v67_v32  ;;  %v133_v32 = vld [vmem:[%s3235_s0 + $0x3d0] sm:$0xff] }
 0x102   :  { %1446 = vmatmul.msk.f32.gmra.mxu3 %vm158_vm1, %v134_v35 }
 0x105   :  { %v629_v45 = vpop.f32.mrf.mxu1 }
 0x106   :  { %v411_v49 = vpop.f32.mrf.mxu0 }
 0x107   :  { %v2060_v52 = vadd.f32 %v620_v60, %v411_v49  ;;  %v129_v60 = vld [vmem:[%s3235_s0 + $0x3b0] sm:$0xff]  ;;  %v501_v11 = vpop.f32.mrf.mxu2  ;;  %v716_v14 = vpop.f32.mrf.mxu3 }
 0x108   :  { %1417 = vmatmul.msk.f32.gmra.mxu1 %vm158_vm1, %v76_v47  ;;  %548 = vmatmul.f32.gmra.mxu2 %v129_v60  ;;  %v2085_v12 = vadd.f32 %v710_v37, %v501_v11 }
 0x109   :  { %3283 = vst [vmem:[#allocation9_spill] sm:$0xff] %v2060_v52  ;;  %458 = vmatmul.f32.gmra.mxu0 %v69_v50 }
 0x10a   :  { %1447 = vmatmul.msk.f32.gmra.mxu3 %vm158_vm1, %v136_v54  ;;  %3284 = vst [vmem:[#allocation10_spill] sm:$0xff] %v2085_v12 }
 0x10d   :  { %v632_v62 = vpop.f32.mrf.mxu1 }
 0x10e   :  { %v414_v1 = vpop.f32.mrf.mxu0 }
 0x10f   :  { %v2078_v5 = vadd.f32 %v623_v7, %v414_v1  ;;  %v504_v25 = vpop.f32.mrf.mxu2  ;;  %v719_v37 = vpop.f32.mrf.mxu3 }
 0x110   :  { %1418 = vmatmul.msk.f32.gmra.mxu1 %vm158_vm1, %v78_v63  ;;  %551 = vmatmul.f32.gmra.mxu2 %v131_v19  ;;  %v2092_v27 = vadd.f32 %v713_v61, %v504_v25 }
 0x111   :  { %461 = vmatmul.f32.gmra.mxu0 %v71_v3 }
 0x112   :  { %1448 = vmatmul.msk.f32.gmra.mxu3 %vm158_vm1, %v138_v10 }
 0x115   :  { %v635_v16 = vpop.f32.mrf.mxu1 }
 0x116   :  { %v417_v7 = vpop.f32.mrf.mxu0 }
 0x117   :  { %v2090_v20 = vadd.f32 %v626_v24, %v417_v7  ;;  %v507_v47 = vpop.f32.mrf.mxu2  ;;  %v135_v24 = vld [vmem:[%s3235_s0 + $0x3e0] sm:$0xff]  ;;  %v722_v55 = vpop.f32.mrf.mxu3 }
 0x118   :  { %554 = vmatmul.f32.gmra.mxu2 %v133_v32  ;;  %v2099_v46 = vadd.f32 %v716_v14, %v507_v47 }
 0x11d   :  { %v638_v31 = vpop.f32.mrf.mxu1 }
 0x11e   :  { %v420_v35 = vpop.f32.mrf.mxu0 }
 0x11f   :  { %v2097_v39 = vadd.f32 %v629_v45, %v420_v35  ;;  %v510_v61 = vpop.f32.mrf.mxu2  ;;  %v725_v11 = vpop.f32.mrf.mxu3 }
 0x120   :  { %557 = vmatmul.f32.gmra.mxu2 %v135_v24  ;;  %v2108_v63 = vadd.f32 %v719_v37, %v510_v61 }
 0x125   :  { %v2101_v49 = vpop.f32.mrf.mxu1 }
 0x126   :  { %v423_v50 = vpop.f32.mrf.mxu0 }
 0x127   :  { %v2106_v54 = vadd.f32 %v632_v62, %v423_v50  ;;  %v513_v3 = vpop.f32.mrf.mxu2  ;;  %v728_v32 = vpop.f32.mrf.mxu3 }
 0x128   :  { %v2114_v10 = vadd.f32 %v722_v55, %v513_v3 }
 0x12d   :  { %v2110_v60 = vpop.f32.mrf.mxu1 }
 0x12e   :  { %v426_v45 = vpop.f32.mrf.mxu0 }
 0x12f   :  { %v2112_v1 = vadd.f32 %v635_v16, %v426_v45  ;;  %v516_v62 = vpop.f32.mrf.mxu2  ;;  %v731_v55 = vpop.f32.mrf.mxu3 }
 0x130   :  { %v2120_v25 = vadd.f32 %v725_v11, %v516_v62  ;;  %v2140_v11 = vadd.f32 %v1779_v13, %v1839_v33  ;;  %v2156_v13 = vadd.f32 %v1811_v23, %v1877_v48  ;;  %v2172_v23 = vadd.f32 %v1849_v36, %v1913_v0 }
 0x131   :  { %3285 = vst [vmem:[#allocation11_spill] sm:$0xff] %v2112_v1 }
 0x132   :  { %3287 = vst [vmem:[#allocation13_spill] sm:$0xff] %v2140_v11 }
 0x133   :  { %3291 = vst [vmem:[#allocation17_spill] sm:$0xff] %v2172_v23 }
 0x135   :  { %v2116_v14 = vpop.f32.mrf.mxu1 }
 0x136   :  { %v429_v19 = vpop.f32.mrf.mxu0 }
 0x137   :  { %v2118_v7 = vadd.f32 %v638_v31, %v429_v19  ;;  %v519_v47 = vpop.f32.mrf.mxu2  ;;  %v734_v19 = vpop.f32.mrf.mxu3 }
 0x138   :  { %v2126_v16 = vadd.f32 %v728_v32, %v519_v47  ;;  %v2146_v47 = vadd.f32 %v1763_v8, %v1819_v26 }
 0x139   :  { %3286 = vst [vmem:[#allocation12_spill] sm:$0xff] %v2118_v7 }
 0x13a   :  { %3288 = vst [vmem:[#allocation14_spill] sm:$0xff] %v2146_v47 }
 0x13d   :  { %v2122_v35 = vpop.f32.mrf.mxu1 }
 0x13e   :  { %v2124_v37 = vpop.f32.mrf.mxu0 }
 0x13f   :  { %v522_v61 = vpop.f32.mrf.mxu2 }
 0x140   :  { %v2132_v45 = vadd.f32 %v731_v55, %v522_v61  ;;  %v2150_v55 = vadd.f32 %v1795_v18, %v1857_v40  ;;  %v775_v61 = vsel %vm773_vm2, %v2140_v11, 0.0  ;;  %v2166_v18 = vadd.f32 %v1831_v30, %v1895_v56 }
 0x141   :  { %v779_v40 = vsel %vm773_vm2, %v2156_v13, 0.0  ;;  %v783_v30 = vsel %vm773_vm2, %v2172_v23, 0.0 }
 0x142   :  { %3289 = vst [vmem:[#allocation15_spill] sm:$0xff] %v2150_v55  ;;  %v777_v8 = vsel %vm773_vm2, %v2150_v55, 0.0  ;;  %v781_v11 = vsel %vm773_vm2, %v2166_v18, 0.0 }
 0x143   :  { %3290 = vst [vmem:[#allocation16_spill] sm:$0xff] %v2166_v18  ;;  %v2192_v18 = vpop.f32.mrf.mxu3 }
 0x145   :  { %v2128_v24 = vpop.f32.mrf.mxu1 }
 0x146   :  { %v2130_v50 = vpop.f32.mrf.mxu0 }
 0x147   :  { %v525_v62 = vpop.f32.mrf.mxu2 }
 0x148   :  { %v2142_v32 = vadd.f32 %v734_v19, %v525_v62  ;;  %v774_v62 = vsel %vm773_vm2, %v2146_v47, 0.0  ;;  %v2178_v47 = vadd.f32 %v1869_v44, %v1931_v9  ;;  %v789_v44 = vsel %vm773_vm2, %v1970_v38, 0.0 }
 0x149   :  { %v776_v26 = vadd.f32 %v775_v61, %v774_v62 }
 0x14a   :  { %v785_v36 = vsel %vm773_vm2, %v2178_v47, 0.0 }
 0x14b   :  { %v778_v48 = vadd.f32 %v777_v8, %v776_v26  ;;  %v787_v8 = vsel %vm773_vm2, %v1952_v22, 0.0 }
 0x14d   :  { %v2134_v31 = vpop.f32.mrf.mxu1  ;;  %v780_v55 = vadd.f32 %v779_v40, %v778_v48  ;;  %v791_v40 = vsel %vm773_vm2, %v1988_v53, 0.0 }
 0x14e   :  { %v2136_v3 = vpop.f32.mrf.mxu0 }
 0x14f   :  { %v782_v61 = vadd.f32 %v781_v11, %v780_v55  ;;  %v793_v55 = vsel %vm773_vm2, %v2006_v2, 0.0  ;;  %v801_v2 = vsel %vm773_vm2, %v2078_v5, 0.0 }
 0x151   :  { %v784_v0 = vadd.f32 %v783_v30, %v782_v61  ;;  %v795_v61 = vsel %vm773_vm2, %v2024_v17, 0.0 }
 0x153   :  { %v786_v26 = vadd.f32 %v785_v36, %v784_v0  ;;  %v797_v0 = vsel %vm773_vm2, %v2042_v34, 0.0 }
 0x155   :  { %v2158_v33 = vpop.f32.mrf.mxu1  ;;  %v788_v9 = vadd.f32 %v787_v8, %v786_v26  ;;  %v2200_v26 = vpop.f32.mrf.mxu2 }
 0x156   :  { %v441_v19 = vpop.f32.mrf.mxu0 }
 0x157   :  { %v790_v23 = vadd.f32 %v789_v44, %v788_v9  ;;  %v799_v44 = vsel %vm773_vm2, %v2060_v52, 0.0  ;;  %v807_v52 = vsel %vm773_vm2, %v2106_v54, 0.0 }
 0x159   :  { %v792_v30 = vadd.f32 %v791_v40, %v790_v23  ;;  %v2206_v40 = vpop.f32.mrf.mxu3 }
 0x15b   :  { %v794_v36 = vadd.f32 %v793_v55, %v792_v30  ;;  %v803_v55 = vsel %vm773_vm2, %v2090_v20, 0.0 }
 0x15d   :  { %v2182_v56 = vpop.f32.mrf.mxu1  ;;  %v796_v8 = vadd.f32 %v795_v61, %v794_v36  ;;  %v805_v61 = vsel %vm773_vm2, %v2097_v39, 0.0  ;;  %v2214_v17 = vpop.f32.mrf.mxu2 }
 0x15e   :  { %v444_v62 = vpop.f32.mrf.mxu0 }
 0x15f   :  { %v798_v53 = vadd.f32 %v797_v0, %v796_v8 }
 0x161   :  { %v800_v23 = vadd.f32 %v799_v44, %v798_v53  ;;  %v809_v53 = vsel %vm773_vm2, %v2112_v1, 0.0  ;;  %v2220_v44 = vadd.f32 %v2101_v49, %v2124_v37  ;;  %v2234_v1 = vadd.f32 %v2116_v14, %v2136_v3 }
 0x162   :  { %v2239_v37 = vadd.f32 %v2122_v35, %v441_v19 }
 0x163   :  { %v802_v30 = vadd.f32 %v801_v2, %v800_v23  ;;  %3292 = vst [vmem:[#allocation18_spill] sm:$0xff] %v2220_v44  ;;  %v811_v23 = vsel %vm773_vm2, %v2118_v7, 0.0 }
 0x164   :  { %v819_v14 = vsel %vm773_vm2, %v2239_v37, 0.0 }
 0x165   :  { %v665_v48 = vpop.f32.mrf.mxu1  ;;  %v804_v36 = vadd.f32 %v803_v55, %v802_v30  ;;  %v2226_v55 = vadd.f32 %v2110_v60, %v2130_v50  ;;  %v2246_v7 = vpop.f32.mrf.mxu2 }
 0x166   :  { %v447_v11 = vpop.f32.mrf.mxu0 }
 0x167   :  { %v806_v0 = vadd.f32 %v805_v61, %v804_v36  ;;  %v2228_v61 = vpop.f32.mrf.mxu3  ;;  %v813_v36 = vsel %vm773_vm2, %v2220_v44, 0.0  ;;  %v2251_v3 = vadd.f32 %v2134_v31, %v447_v11 }
 0x169   :  { %v808_v2 = vadd.f32 %v807_v52, %v806_v0  ;;  %v815_v52 = vsel %vm773_vm2, %v2226_v55, 0.0 }
 0x16b   :  { %v810_v30 = vadd.f32 %v809_v53, %v808_v2  ;;  %v817_v53 = vsel %vm773_vm2, %v2234_v1, 0.0  ;;  %v2244_v2 = vadd.f32 %v2128_v24, %v444_v62  ;;  %v823_v62 = vsel %vm773_vm2, %v2251_v3, 0.0 }
 0x16d   :  { %v668_v9 = vpop.f32.mrf.mxu1  ;;  %v812_v49 = vadd.f32 %v811_v23, %v810_v30  ;;  %v821_v19 = vsel %vm773_vm2, %v2244_v2, 0.0 }
 0x16e   :  { %v450_v38 = vpop.f32.mrf.mxu0 }
 0x16f   :  { %v814_v60 = vadd.f32 %v813_v36, %v812_v49  ;;  %v2256_v23 = vadd.f32 %v2158_v33, %v450_v38  ;;  %v2258_v30 = vpop.f32.mrf.mxu3 }
 0x171   :  { %v816_v44 = vadd.f32 %v815_v52, %v814_v60  ;;  %v825_v11 = vsel %vm773_vm2, %v2256_v23, 0.0 }
 0x173   :  { %v818_v35 = vadd.f32 %v817_v53, %v816_v44 }
 0x175   :  { %v671_v34 = vpop.f32.mrf.mxu1  ;;  %v820_v24 = vadd.f32 %v819_v14, %v818_v35  ;;  %v2273_v14 = vpop.f32.mrf.mxu2 }
 0x176   :  { %v453_v8 = vpop.f32.mrf.mxu0 }
 0x177   :  { %v2263_v36 = vadd.f32 %v2182_v56, %v453_v8  ;;  %v822_v49 = vadd.f32 %v821_v19, %v820_v24  ;;  %v2279_v19 = vpop.f32.mrf.mxu3 }
 0x179   :  { %v824_v60 = vadd.f32 %v823_v62, %v822_v49  ;;  %v827_v38 = vsel %vm773_vm2, %v2263_v36, 0.0 }
 0x17b   :  { %v826_v53 = vadd.f32 %v825_v11, %v824_v60 }
 0x17d   :  { %v674_v0 = vpop.f32.mrf.mxu1  ;;  %v828_v8 = vadd.f32 %v827_v38, %v826_v53 }
 0x17e   :  { %v456_v50 = vpop.f32.mrf.mxu0  ;;  %v2282_v24 = vadd.f32 %v674_v0, %v1866_v43  ;;  %v540_v43 = vpop.f32.mrf.mxu2 }
 0x17f   :  { %v2267_v44 = vadd.f32 %v665_v48, %v456_v50 }
 0x180   :  { %v835_v38 = vsel %vm773_vm2, %v2282_v24, 0.0 }
 0x181   :  { %v829_v56 = vsel %vm773_vm2, %v2267_v44, 0.0 }
 0x182   :  { %v830_v48 = vadd.f32 %v829_v56, %v828_v8 }
 0x185   :  { %v677_v52 = vpop.f32.mrf.mxu1 }
 0x186   :  { %v459_v31 = vpop.f32.mrf.mxu0 }
 0x187   :  { %v2271_v33 = vadd.f32 %v668_v9, %v459_v31  ;;  %v2287_v31 = vadd.f32 %v677_v52, %v1886_v51  ;;  %v752_v52 = vpop.f32.mrf.mxu3 }
 0x189   :  { %v831_v35 = vsel %vm773_vm2, %v2271_v33, 0.0 }
 0x18a   :  { %v832_v9 = vadd.f32 %v831_v35, %v830_v48  ;;  %v841_v35 = vsel %vm773_vm2, %v1923_v4, 0.0 }
 0x18d   :  { %v680_v49 = vpop.f32.mrf.mxu1 }
 0x18e   :  { %v462_v50 = vpop.f32.mrf.mxu0  ;;  %v2294_v53 = vadd.f32 %v680_v49, %v1904_v59 }
 0x18f   :  { %v2284_v62 = vadd.f32 %v671_v34, %v462_v50  ;;  %v837_v34 = vsel %vm773_vm2, %v2287_v31, 0.0  ;;  %v843_v50 = vsel %vm773_vm2, %v1941_v15, 0.0 }
 0x190   :  { %v839_v51 = vsel %vm773_vm2, %v2294_v53, 0.0 }
 0x191   :  { %v833_v11 = vsel %vm773_vm2, %v2284_v62, 0.0 }
 0x192   :  { %v834_v60 = vadd.f32 %v833_v11, %v832_v9  ;;  %v845_v9 = vsel %vm773_vm2, %v1959_v28, 0.0  ;;  %v543_v11 = vpop.f32.mrf.mxu2 }
 0x194   :  { %v836_v56 = vadd.f32 %v835_v38, %v834_v60  ;;  %v847_v60 = vsel %vm773_vm2, %v1977_v42, 0.0 }
 0x196   :  { %v838_v0 = vadd.f32 %v837_v34, %v836_v56  ;;  %v849_v56 = vsel %vm773_vm2, %v1995_v57, 0.0  ;;  %v755_v34 = vpop.f32.mrf.mxu3 }
 0x198   :  { %v840_v8 = vadd.f32 %v839_v51, %v838_v0  ;;  %v851_v51 = vsel %vm773_vm2, %v2013_v6, 0.0 }
 0x19a   :  { %v842_v48 = vadd.f32 %v841_v35, %v840_v8  ;;  %v853_v35 = vsel %vm773_vm2, %v2031_v21, 0.0 }
 0x19c   :  { %v844_v59 = vadd.f32 %v843_v50, %v842_v48  ;;  %v855_v50 = vsel %vm773_vm2, %v2049_v41, 0.0 }
 0x19e   :  { %v846_v49 = vadd.f32 %v845_v9, %v844_v59  ;;  %v546_v9 = vpop.f32.mrf.mxu2 }
 0x1a0   :  { %v848_v38 = vadd.f32 %v847_v60, %v846_v49  ;;  %v857_v49 = vsel %vm773_vm2, %v2067_v58, 0.0 }
 0x1a2   :  { %v850_v0 = vadd.f32 %v849_v56, %v848_v38  ;;  %v859_v38 = vsel %vm773_vm2, %v2085_v12, 0.0  ;;  %v758_v56 = vpop.f32.mrf.mxu3 }
 0x1a4   :  { %v852_v8 = vadd.f32 %v851_v51, %v850_v0  ;;  %v861_v0 = vsel %vm773_vm2, %v2092_v27, 0.0 }
 0x1a6   :  { %v854_v48 = vadd.f32 %v853_v35, %v852_v8  ;;  %v863_v8 = vsel %vm773_vm2, %v2099_v46, 0.0  ;;  %v549_v41 = vpop.f32.mrf.mxu2 }
 0x1a8   :  { %v856_v59 = vadd.f32 %v855_v50, %v854_v48  ;;  %v865_v48 = vsel %vm773_vm2, %v2108_v63, 0.0 }
 0x1aa   :  { %v858_v60 = vadd.f32 %v857_v49, %v856_v59  ;;  %v867_v59 = vsel %vm773_vm2, %v2114_v10, 0.0 }
 0x1ac   :  { %v860_v57 = vadd.f32 %v859_v38, %v858_v60  ;;  %v869_v60 = vsel %vm773_vm2, %v2120_v25, 0.0  ;;  %v761_v38 = vpop.f32.mrf.mxu3 }
 0x1ae   :  { %v862_v51 = vadd.f32 %v861_v0, %v860_v57  ;;  %v871_v57 = vsel %vm773_vm2, %v2126_v16, 0.0 }
 0x1b0   :  { %v864_v35 = vadd.f32 %v863_v8, %v862_v51  ;;  %v873_v51 = vsel %vm773_vm2, %v2132_v45, 0.0  ;;  %v2336_v8 = vadd.f32 %v2192_v18, %v2200_v26  ;;  %v2354_v26 = vadd.f32 %v2258_v30, %v2273_v14 }
 0x1b1   :  { %v2367_v30 = vadd.f32 %v755_v34, %v546_v9 }
 0x1b2   :  { %v866_v50 = vadd.f32 %v865_v48, %v864_v35  ;;  %v875_v48 = vsel %vm773_vm2, %v2142_v32, 0.0 }
 0x1b4   :  { %v868_v49 = vadd.f32 %v867_v59, %v866_v50  ;;  %v2342_v50 = vadd.f32 %v2206_v40, %v2214_v17 }
 0x1b6   :  { %v870_v12 = vadd.f32 %v869_v60, %v868_v49  ;;  %v552_v49 = vpop.f32.mrf.mxu2  ;;  %v2348_v60 = vadd.f32 %v2228_v61, %v2246_v7  ;;  %v879_v18 = vsel %vm773_vm2, %v2342_v50, 0.0  ;;  %v883_v7 = vsel %vm773_vm2, %v2354_v26, 0.0 }
 0x1b7   :  { %v2363_v61 = vadd.f32 %v752_v52, %v543_v11 }
 0x1b8   :  { %v872_v0 = vadd.f32 %v871_v57, %v870_v12  ;;  %v877_v12 = vsel %vm773_vm2, %v2336_v8, 0.0  ;;  %v881_v40 = vsel %vm773_vm2, %v2348_v60, 0.0 }
 0x1ba   :  { %v874_v35 = vadd.f32 %v873_v51, %v872_v0  ;;  %v764_v0 = vpop.f32.mrf.mxu3  ;;  %v2359_v51 = vadd.f32 %v2279_v19, %v540_v43  ;;  %v889_v43 = vsel %vm773_vm2, %v2367_v30, 0.0 }
 0x1bc   :  { %v876_v59 = vadd.f32 %v875_v48, %v874_v35 }
 0x1be   :  { %v878_v57 = vadd.f32 %v877_v12, %v876_v59  ;;  %v885_v59 = vsel %vm773_vm2, %v2359_v51, 0.0  ;;  %v555_v12 = vpop.f32.mrf.mxu2 }
 0x1c0   :  { %v880_v17 = vadd.f32 %v879_v18, %v878_v57  ;;  %v887_v57 = vsel %vm773_vm2, %v2363_v61, 0.0  ;;  %v2371_v18 = vadd.f32 %v758_v56, %v549_v41 }
 0x1c2   :  { %v882_v35 = vadd.f32 %v881_v40, %v880_v17  ;;  %v767_v17 = vpop.f32.mrf.mxu3  ;;  %v891_v11 = vsel %vm773_vm2, %v2371_v18, 0.0  ;;  %v2377_v40 = vadd.f32 %v761_v38, %v552_v49 }
 0x1c4   :  { %v884_v48 = vadd.f32 %v883_v7, %v882_v35  ;;  %v893_v9 = vsel %vm773_vm2, %v2377_v40, 0.0  ;;  %v2381_v35 = vadd.f32 %v764_v0, %v555_v12 }
 0x1c6   :  { %v886_v14 = vadd.f32 %v885_v59, %v884_v48  ;;  %v558_v41 = vpop.f32.mrf.mxu2  ;;  %v895_v56 = vsel %vm773_vm2, %v2381_v35, 0.0 }
 0x1c7   :  { %v2385_v48 = vadd.f32 %v767_v17, %v558_v41 }
 0x1c8   :  { %v888_v19 = vadd.f32 %v887_v57, %v886_v14 }
 0x1c9   :  { %3293 = vst [vmem:[#allocation19_spill] sm:$0xff] %v2385_v48  ;;  %v897_v38 = vsel %vm773_vm2, %v2385_v48, 0.0 }
 0x1ca   :  { %v890_v52 = vadd.f32 %v889_v43, %v888_v19  ;;  %v770_v59 = vpop.f32.mrf.mxu3  ;;  %v1489_v19 = vmov 512.0  }
 0x1cb   :  { %v2388_v57 = vadd.f32 %v770_v59, %v1829_v29  ;;  %1485 = vrcp.f32 %v1489_v19  ;;  %v3296_v19 = vld [vmem:[#allocation15_spill] sm:$0xff] }
 0x1cc   :  { %v892_v34 = vadd.f32 %v891_v11, %v890_v52 }
 0x1cd   :  { %v899_v0 = vsel %vm773_vm2, %v2388_v57, 0.0 }
 0x1ce   :  { %v894_v7 = vadd.f32 %v893_v9, %v892_v34 }
 0x1d0   :  { %v896_v14 = vadd.f32 %v895_v56, %v894_v7 }
 0x1d1   :  { %v1486_v52 = vpop.eup %1485 }
 0x1d2   :  { %v898_v49 = vadd.f32 %v897_v38, %v896_v14  ;;  %v908_v17 = vmul.f32 512.0, %v1486_v52  ;;  %vm912_vm3 = vweird.f32 %v1486_v52  ;;  %v3294_v38 = vld [vmem:[#allocation14_spill] sm:$0xff] }
 0x1d4   :  { %v900_v12 = vadd.f32 %v899_v0, %v898_v49  ;;  %v909_v9 = vsub.f32 1.0, %v908_v17  ;;  %v3295_v0 = vld [vmem:[#allocation13_spill] sm:$0xff] }
 0x1d6   :  { %v901_v43 = vrot.slane %v900_v12, 4  ;;  %v910_v41 = vmul.f32 %v1486_v52, %v909_v9 }
 0x1d8   :  { %v902_v11 = vadd.f32 %v901_v43, %v900_v12  ;;  %v911_v56 = vadd.f32 %v1486_v52, %v910_v41  ;;  %v3300_v41 = vld [vmem:[#allocation17_spill] sm:$0xff] }
 0x1da   :  { %v903_v34 = vrot.slane %v902_v11, 2  ;;  %v2394_v48 = vsel %vm912_vm3, %v1486_v52, %v911_v56 }
 0x1dc   :  { %v904_v7 = vadd.f32 %v903_v34, %v902_v11  ;;  %v3298_v34 = vld [vmem:[#allocation16_spill] sm:$0xff] }
 0x1de   :  { %v905_v29 = vrot.slane %v904_v7, 1 }
 0x1e0   :  { %v906_v59 = vadd.f32 %v905_v29, %v904_v7 }
 0x1e2   :  { %v2397_v14 = vmul.f32 %v2394_v48, %v906_v59 }
 0x1e4   :  { %v2401_v49 = vsub.f32 %v3294_v38, %v2397_v14  ;;  %v2405_v12 = vsub.f32 %v3295_v0, %v2397_v14  ;;  %v2409_v43 = vsub.f32 %v3296_v19, %v2397_v14  ;;  %v2413_v11 = vsub.f32 %v2156_v13, %v2397_v14 }
 0x1e5   :  { %v2421_v9 = vsub.f32 %v3298_v34, %v2397_v14  ;;  %v2427_v29 = vsub.f32 %v3300_v41, %v2397_v14  ;;  %v2435_v0 = vsub.f32 %v2178_v47, %v2397_v14  ;;  %v2442_v41 = vsub.f32 %v1952_v22, %v2397_v14 }
 0x1e6   :  { %3297 = vst [vmem:[#allocation14_spill] sm:$0xff] %v2409_v43  ;;  %v979_v52 = vmul.f32 %v2401_v49, %v2401_v49  ;;  %v980_v17 = vmul.f32 %v2405_v12, %v2405_v12  ;;  %v981_v7 = vmul.f32 %v2409_v43, %v2409_v43  ;;  %v982_v13 = vmul.f32 %v2413_v11, %v2413_v11 }
 0x1e7   :  { %3299 = vst [vmem:[#allocation13_spill] sm:$0xff] %v2421_v9  ;;  %v983_v19 = vmul.f32 %v2421_v9, %v2421_v9  ;;  %v985_v9 = vmul.f32 %v2435_v0, %v2435_v0 }
 0x1e8   :  { %3301 = vst [vmem:[#allocation15_spill] sm:$0xff] %v2427_v29  ;;  %v1043_v56 = vsel %vm773_vm2, %v979_v52, 0.0  ;;  %v1044_v59 = vsel %vm773_vm2, %v980_v17, 0.0  ;;  %v1046_v34 = vsel %vm773_vm2, %v981_v7, 0.0  ;;  %v984_v52 = vmul.f32 %v2427_v29, %v2427_v29 }
 0x1e9   :  { %v1045_v38 = vadd.f32 %v1044_v59, %v1043_v56  ;;  %3302 = vst [vmem:[#allocation16_spill] sm:$0xff] %v2435_v0  ;;  %v1048_v17 = vsel %vm773_vm2, %v982_v13, 0.0  ;;  %v3304_v59 = vld [vmem:[#allocation2_spill] sm:$0xff]  ;;  %v1050_v7 = vsel %vm773_vm2, %v983_v19, 0.0  ;;  %v986_v29 = vmul.f32 %v2442_v41, %v2442_v41 }
 0x1ea   :  { %3303 = vst [vmem:[#allocation17_spill] sm:$0xff] %v2442_v41  ;;  %v2449_v47 = vsub.f32 %v3304_v59, %v2397_v14  ;;  %v1052_v13 = vsel %vm773_vm2, %v984_v52, 0.0  ;;  %v1054_v19 = vsel %vm773_vm2, %v985_v9, 0.0 }
 0x1eb   :  { %v1047_v43 = vadd.f32 %v1046_v34, %v1045_v38  ;;  %v3306_v34 = vld [vmem:[#allocation3_spill] sm:$0xff]  ;;  %v1056_v52 = vsel %vm773_vm2, %v986_v29, 0.0 }
 0x1ec   :  { %3305 = vst [vmem:[#allocation2_spill] sm:$0xff] %v2449_v47  ;;  %v2456_v22 = vsub.f32 %v3306_v34, %v2397_v14  ;;  %v987_v0 = vmul.f32 %v2449_v47, %v2449_v47 }
 0x1ed   :  { %v1049_v56 = vadd.f32 %v1048_v17, %v1047_v43  ;;  %v3308_v17 = vld [vmem:[#allocation5_spill] sm:$0xff] }
 0x1ee   :  { %3307 = vst [vmem:[#allocation3_spill] sm:$0xff] %v2456_v22  ;;  %v2463_v59 = vsub.f32 %v3308_v17, %v2397_v14  ;;  %v988_v41 = vmul.f32 %v2456_v22, %v2456_v22  ;;  %v1058_v9 = vsel %vm773_vm2, %v987_v0, 0.0 }
 0x1ef   :  { %v1051_v38 = vadd.f32 %v1050_v7, %v1049_v56  ;;  %v3309_v7 = vld [vmem:[#allocation6_spill] sm:$0xff] }
 0x1f0   :  { %v2470_v34 = vsub.f32 %v3309_v7, %v2397_v14  ;;  %v989_v47 = vmul.f32 %v2463_v59, %v2463_v59  ;;  %v1060_v29 = vsel %vm773_vm2, %v988_v41, 0.0 }
 0x1f1   :  { %v1053_v43 = vadd.f32 %v1052_v13, %v1051_v38  ;;  %v3310_v13 = vld [vmem:[#allocation7_spill] sm:$0xff] }
 0x1f2   :  { %v2477_v17 = vsub.f32 %v3310_v13, %v2397_v14  ;;  %v990_v22 = vmul.f32 %v2470_v34, %v2470_v34  ;;  %v1062_v0 = vsel %vm773_vm2, %v989_v47, 0.0 }
 0x1f3   :  { %v1055_v56 = vadd.f32 %v1054_v19, %v1053_v43  ;;  %v3311_v19 = vld [vmem:[#allocation9_spill] sm:$0xff] }
 0x1f4   :  { %v2484_v7 = vsub.f32 %v3311_v19, %v2397_v14  ;;  %v991_v13 = vmul.f32 %v2477_v17, %v2477_v17  ;;  %v1064_v41 = vsel %vm773_vm2, %v990_v22, 0.0 }
 0x1f5   :  { %v1057_v38 = vadd.f32 %v1056_v52, %v1055_v56  ;;  %v2491_v52 = vsub.f32 %v2078_v5, %v2397_v14  ;;  %v2505_v5 = vsub.f32 %v2097_v39, %v2397_v14 }
 0x1f6   :  { %v992_v19 = vmul.f32 %v2484_v7, %v2484_v7  ;;  %v1066_v47 = vsel %vm773_vm2, %v991_v13, 0.0 }
 0x1f7   :  { %v1059_v43 = vadd.f32 %v1058_v9, %v1057_v38  ;;  %3312 = vst [vmem:[#allocation5_spill] sm:$0xff] %v2491_v52  ;;  %v2498_v9 = vsub.f32 %v2090_v20, %v2397_v14  ;;  %v2512_v20 = vsub.f32 %v2106_v54, %v2397_v14 }
 0x1f8   :  { %3314 = vst [vmem:[#allocation7_spill] sm:$0xff] %v2505_v5  ;;  %v1068_v22 = vsel %vm773_vm2, %v992_v19, 0.0 }
 0x1f9   :  { %v1061_v56 = vadd.f32 %v1060_v29, %v1059_v43  ;;  %3313 = vst [vmem:[#allocation6_spill] sm:$0xff] %v2498_v9  ;;  %v993_v29 = vmul.f32 %v2491_v52, %v2491_v52  ;;  %v995_v52 = vmul.f32 %v2505_v5, %v2505_v5 }
 0x1fb   :  { %v1063_v38 = vadd.f32 %v1062_v0, %v1061_v56  ;;  %v994_v0 = vmul.f32 %v2498_v9, %v2498_v9  ;;  %v1070_v13 = vsel %vm773_vm2, %v993_v29, 0.0  ;;  %v996_v9 = vmul.f32 %v2512_v20, %v2512_v20 }
 0x1fc   :  { %v1074_v29 = vsel %vm773_vm2, %v995_v52, 0.0 }
 0x1fd   :  { %v1065_v43 = vadd.f32 %v1064_v41, %v1063_v38  ;;  %v3315_v41 = vld [vmem:[#allocation11_spill] sm:$0xff]  ;;  %v1072_v19 = vsel %vm773_vm2, %v994_v0, 0.0  ;;  %v1076_v0 = vsel %vm773_vm2, %v996_v9, 0.0 }
 0x1fe   :  { %v2519_v39 = vsub.f32 %v3315_v41, %v2397_v14 }
 0x1ff   :  { %v1067_v56 = vadd.f32 %v1066_v47, %v1065_v43  ;;  %v3316_v47 = vld [vmem:[#allocation12_spill] sm:$0xff] }
 0x200   :  { %v2526_v54 = vsub.f32 %v3316_v47, %v2397_v14  ;;  %v997_v5 = vmul.f32 %v2519_v39, %v2519_v39 }
 0x201   :  { %v1069_v38 = vadd.f32 %v1068_v22, %v1067_v56  ;;  %v3317_v22 = vld [vmem:[#allocation18_spill] sm:$0xff] }
 0x202   :  { %v2533_v41 = vsub.f32 %v3317_v22, %v2397_v14  ;;  %v998_v47 = vmul.f32 %v2526_v54, %v2526_v54  ;;  %v1078_v52 = vsel %vm773_vm2, %v997_v5, 0.0 }
 0x203   :  { %v1071_v43 = vadd.f32 %v1070_v13, %v1069_v38  ;;  %v2540_v13 = vsub.f32 %v2226_v55, %v2397_v14  ;;  %v2554_v55 = vsub.f32 %v2239_v37, %v2397_v14  ;;  %v2568_v37 = vsub.f32 %v2251_v3, %v2397_v14 }
 0x204   :  { %v999_v22 = vmul.f32 %v2533_v41, %v2533_v41  ;;  %v1080_v9 = vsel %vm773_vm2, %v998_v47, 0.0  ;;  %v2582_v3 = vsub.f32 %v2263_v36, %v2397_v14  ;;  %v2596_v36 = vsub.f32 %v2271_v33, %v2397_v14 }
 0x205   :  { %v1073_v56 = vadd.f32 %v1072_v19, %v1071_v43  ;;  %v2547_v19 = vsub.f32 %v2234_v1, %v2397_v14  ;;  %v2561_v1 = vsub.f32 %v2244_v2, %v2397_v14  ;;  %v2575_v2 = vsub.f32 %v2256_v23, %v2397_v14 }
 0x206   :  { %v1082_v5 = vsel %vm773_vm2, %v999_v22, 0.0  ;;  %v2589_v23 = vsub.f32 %v2267_v44, %v2397_v14  ;;  %v2603_v44 = vsub.f32 %v2284_v62, %v2397_v14  ;;  %v2610_v33 = vsub.f32 %v2282_v24, %v2397_v14 }
 0x207   :  { %v1075_v38 = vadd.f32 %v1074_v29, %v1073_v56  ;;  %v1000_v29 = vmul.f32 %v2540_v13, %v2540_v13  ;;  %v2617_v62 = vsub.f32 %v2287_v31, %v2397_v14  ;;  %v2624_v24 = vsub.f32 %v2294_v53, %v2397_v14 }
 0x208   :  { %v2631_v31 = vsub.f32 %v1923_v4, %v2397_v14  ;;  %v2638_v53 = vsub.f32 %v1941_v15, %v2397_v14  ;;  %v2645_v4 = vsub.f32 %v1959_v28, %v2397_v14  ;;  %v2652_v15 = vsub.f32 %v1977_v42, %v2397_v14 }
 0x209   :  { %v1077_v43 = vadd.f32 %v1076_v0, %v1075_v38  ;;  %v1001_v0 = vmul.f32 %v2547_v19, %v2547_v19  ;;  %v1084_v47 = vsel %vm773_vm2, %v1000_v29, 0.0  ;;  %v2666_v42 = vsub.f32 %v2013_v6, %v2397_v14 }
 0x20a   :  { %3318 = vst [vmem:[#allocation9_spill] sm:$0xff] %v2631_v31 }
 0x20b   :  { %v1079_v56 = vadd.f32 %v1078_v52, %v1077_v43  ;;  %v1002_v52 = vmul.f32 %v2554_v55, %v2554_v55  ;;  %v1086_v22 = vsel %vm773_vm2, %v1001_v0, 0.0  ;;  %3319 = vst [vmem:[#allocation11_spill] sm:$0xff] %v2652_v15 }
 0x20c   :  { %3321 = vst [vmem:[#allocation12_spill] sm:$0xff] %v2666_v42 }
 0x20d   :  { %v1081_v38 = vadd.f32 %v1080_v9, %v1079_v56  ;;  %v1003_v9 = vmul.f32 %v2561_v1, %v2561_v1  ;;  %v1088_v29 = vsel %vm773_vm2, %v1002_v52, 0.0 }
 0x20f   :  { %v1083_v43 = vadd.f32 %v1082_v5, %v1081_v38  ;;  %v1004_v5 = vmul.f32 %v2568_v37, %v2568_v37  ;;  %v1090_v0 = vsel %vm773_vm2, %v1003_v9, 0.0 }
 0x211   :  { %v1085_v56 = vadd.f32 %v1084_v47, %v1083_v43  ;;  %v1005_v47 = vmul.f32 %v2575_v2, %v2575_v2  ;;  %v1092_v52 = vsel %vm773_vm2, %v1004_v5, 0.0 }
 0x213   :  { %v1087_v38 = vadd.f32 %v1086_v22, %v1085_v56  ;;  %v1006_v22 = vmul.f32 %v2582_v3, %v2582_v3  ;;  %v1094_v9 = vsel %vm773_vm2, %v1005_v47, 0.0 }
 0x215   :  { %v1089_v43 = vadd.f32 %v1088_v29, %v1087_v38  ;;  %v1007_v29 = vmul.f32 %v2589_v23, %v2589_v23  ;;  %v1096_v5 = vsel %vm773_vm2, %v1006_v22, 0.0 }
 0x217   :  { %v1091_v56 = vadd.f32 %v1090_v0, %v1089_v43  ;;  %v1008_v0 = vmul.f32 %v2596_v36, %v2596_v36  ;;  %v1098_v47 = vsel %vm773_vm2, %v1007_v29, 0.0 }
 0x219   :  { %v1093_v38 = vadd.f32 %v1092_v52, %v1091_v56  ;;  %v1009_v52 = vmul.f32 %v2603_v44, %v2603_v44  ;;  %v1100_v22 = vsel %vm773_vm2, %v1008_v0, 0.0 }
 0x21b   :  { %v1095_v43 = vadd.f32 %v1094_v9, %v1093_v38  ;;  %v1010_v9 = vmul.f32 %v2610_v33, %v2610_v33  ;;  %v1102_v29 = vsel %vm773_vm2, %v1009_v52, 0.0 }
 0x21d   :  { %v1097_v56 = vadd.f32 %v1096_v5, %v1095_v43  ;;  %v1011_v5 = vmul.f32 %v2617_v62, %v2617_v62  ;;  %v1104_v0 = vsel %vm773_vm2, %v1010_v9, 0.0 }
 0x21f   :  { %v1099_v38 = vadd.f32 %v1098_v47, %v1097_v56  ;;  %v1012_v47 = vmul.f32 %v2624_v24, %v2624_v24  ;;  %v1106_v52 = vsel %vm773_vm2, %v1011_v5, 0.0 }
 0x221   :  { %v1101_v43 = vadd.f32 %v1100_v22, %v1099_v38  ;;  %v1013_v22 = vmul.f32 %v2631_v31, %v2631_v31  ;;  %v1108_v9 = vsel %vm773_vm2, %v1012_v47, 0.0  ;;  %v1015_v31 = vmul.f32 %v2645_v4, %v2645_v4 }
 0x223   :  { %v1103_v56 = vadd.f32 %v1102_v29, %v1101_v43  ;;  %v1014_v29 = vmul.f32 %v2638_v53, %v2638_v53  ;;  %v1110_v5 = vsel %vm773_vm2, %v1013_v22, 0.0  ;;  %v1114_v22 = vsel %vm773_vm2, %v1015_v31, 0.0 }
 0x225   :  { %v1105_v38 = vadd.f32 %v1104_v0, %v1103_v56  ;;  %v3320_v0 = vld [vmem:[#allocation4_spill] sm:$0xff]  ;;  %v1112_v47 = vsel %vm773_vm2, %v1014_v29, 0.0 }
 0x226   :  { %v2659_v28 = vsub.f32 %v3320_v0, %v2397_v14 }
 0x227   :  { %v1107_v43 = vadd.f32 %v1106_v52, %v1105_v38  ;;  %v1016_v52 = vmul.f32 %v2652_v15, %v2652_v15  ;;  %v1018_v15 = vmul.f32 %v2666_v42, %v2666_v42 }
 0x228   :  { %v1017_v0 = vmul.f32 %v2659_v28, %v2659_v28 }
 0x229   :  { %v1109_v56 = vadd.f32 %v1108_v9, %v1107_v43  ;;  %v2673_v9 = vsub.f32 %v2031_v21, %v2397_v14  ;;  %v1116_v29 = vsel %vm773_vm2, %v1016_v52, 0.0  ;;  %v2687_v21 = vsub.f32 %v2067_v58, %v2397_v14 }
 0x22a   :  { %v1118_v31 = vsel %vm773_vm2, %v1017_v0, 0.0  ;;  %v1120_v52 = vsel %vm773_vm2, %v1018_v15, 0.0  ;;  %v2701_v58 = vsub.f32 %v2092_v27, %v2397_v14  ;;  %v2715_v27 = vsub.f32 %v2108_v63, %v2397_v14 }
 0x22b   :  { %v1111_v38 = vadd.f32 %v1110_v5, %v1109_v56  ;;  %v3322_v5 = vld [vmem:[#allocation8_spill] sm:$0xff]  ;;  %v2729_v63 = vsub.f32 %v2120_v25, %v2397_v14  ;;  %v2743_v25 = vsub.f32 %v2132_v45, %v2397_v14  ;;  %v2757_v45 = vsub.f32 %v2336_v8, %v2397_v14 }
 0x22c   :  { %v2680_v6 = vsub.f32 %v3322_v5, %v2397_v14  ;;  %v2771_v8 = vsub.f32 %v2348_v60, %v2397_v14  ;;  %v2785_v60 = vsub.f32 %v2359_v51, %v2397_v14  ;;  %v2799_v51 = vsub.f32 %v2367_v30, %v2397_v14 }
 0x22d   :  { %v1113_v43 = vadd.f32 %v1112_v47, %v1111_v38  ;;  %v1019_v47 = vmul.f32 %v2673_v9, %v2673_v9  ;;  %v2813_v30 = vsub.f32 %v2377_v40, %v2397_v14 }
 0x22e   :  { %v1020_v42 = vmul.f32 %v2680_v6, %v2680_v6  ;;  %3324 = vst [vmem:[#allocation18_spill] sm:$0xff] %v2785_v60 }
 0x22f   :  { %v1115_v56 = vadd.f32 %v1114_v22, %v1113_v43  ;;  %v3323_v22 = vld [vmem:[#allocation10_spill] sm:$0xff]  ;;  %v1122_v0 = vsel %vm773_vm2, %v1019_v47, 0.0  ;;  %3326 = vst [vmem:[#allocation8_spill] sm:$0xff] %v2799_v51 }
 0x230   :  { %v2694_v5 = vsub.f32 %v3323_v22, %v2397_v14  ;;  %v1124_v15 = vsel %vm773_vm2, %v1020_v42, 0.0  ;;  %3328 = vst [vmem:[#allocation20_spill] sm:$0xff] %v2813_v30 }
 0x231   :  { %v1117_v38 = vadd.f32 %v1116_v29, %v1115_v56  ;;  %v1021_v29 = vmul.f32 %v2687_v21, %v2687_v21 }
 0x232   :  { %v1022_v22 = vmul.f32 %v2694_v5, %v2694_v5 }
 0x233   :  { %v1119_v43 = vadd.f32 %v1118_v31, %v1117_v38  ;;  %v2708_v31 = vsub.f32 %v2099_v46, %v2397_v14  ;;  %v1126_v47 = vsel %vm773_vm2, %v1021_v29, 0.0  ;;  %v2722_v46 = vsub.f32 %v2114_v10, %v2397_v14 }
 0x234   :  { %v1128_v42 = vsel %vm773_vm2, %v1022_v22, 0.0  ;;  %v2736_v10 = vsub.f32 %v2126_v16, %v2397_v14  ;;  %v2750_v16 = vsub.f32 %v2142_v32, %v2397_v14  ;;  %v2764_v32 = vsub.f32 %v2342_v50, %v2397_v14 }
 0x235   :  { %v1121_v56 = vadd.f32 %v1120_v52, %v1119_v43  ;;  %v1023_v52 = vmul.f32 %v2701_v58, %v2701_v58  ;;  %v2778_v50 = vsub.f32 %v2354_v26, %v2397_v14  ;;  %v2792_v26 = vsub.f32 %v2363_v61, %v2397_v14 }
 0x236   :  { %v2806_v61 = vsub.f32 %v2371_v18, %v2397_v14  ;;  %v2820_v18 = vsub.f32 %v2381_v35, %v2397_v14  ;;  %v2834_v35 = vsub.f32 %v2388_v57, %v2397_v14 }
 0x237   :  { %v1123_v38 = vadd.f32 %v1122_v0, %v1121_v56  ;;  %v1024_v0 = vmul.f32 %v2708_v31, %v2708_v31  ;;  %v1130_v29 = vsel %vm773_vm2, %v1023_v52, 0.0  ;;  %3325 = vst [vmem:[#allocation4_spill] sm:$0xff] %v2792_v26 }
 0x238   :  { %3327 = vst [vmem:[#allocation10_spill] sm:$0xff] %v2806_v61 }
 0x239   :  { %v1125_v43 = vadd.f32 %v1124_v15, %v1123_v38  ;;  %v1025_v15 = vmul.f32 %v2715_v27, %v2715_v27  ;;  %v1132_v22 = vsel %vm773_vm2, %v1024_v0, 0.0  ;;  %3329 = vst [vmem:[#allocation21_spill] sm:$0xff] %v2820_v18 }
 0x23a   :  { %3332 = vst [vmem:[#allocation22_spill] sm:$0xff] %v2834_v35 }
 0x23b   :  { %v1127_v56 = vadd.f32 %v1126_v47, %v1125_v43  ;;  %v1026_v47 = vmul.f32 %v2722_v46, %v2722_v46  ;;  %v1134_v52 = vsel %vm773_vm2, %v1025_v15, 0.0 }
 0x23d   :  { %v1129_v38 = vadd.f32 %v1128_v42, %v1127_v56  ;;  %v1027_v42 = vmul.f32 %v2729_v63, %v2729_v63  ;;  %v1136_v0 = vsel %vm773_vm2, %v1026_v47, 0.0 }
 0x23f   :  { %v1131_v43 = vadd.f32 %v1130_v29, %v1129_v38  ;;  %v1028_v29 = vmul.f32 %v2736_v10, %v2736_v10  ;;  %v1138_v15 = vsel %vm773_vm2, %v1027_v42, 0.0 }
 0x241   :  { %v1133_v56 = vadd.f32 %v1132_v22, %v1131_v43  ;;  %v1029_v22 = vmul.f32 %v2743_v25, %v2743_v25  ;;  %v1140_v47 = vsel %vm773_vm2, %v1028_v29, 0.0 }
 0x243   :  { %v1135_v38 = vadd.f32 %v1134_v52, %v1133_v56  ;;  %v1030_v52 = vmul.f32 %v2750_v16, %v2750_v16  ;;  %v1142_v42 = vsel %vm773_vm2, %v1029_v22, 0.0 }
 0x245   :  { %v1137_v43 = vadd.f32 %v1136_v0, %v1135_v38  ;;  %v1031_v0 = vmul.f32 %v2757_v45, %v2757_v45  ;;  %v1144_v29 = vsel %vm773_vm2, %v1030_v52, 0.0 }
 0x247   :  { %v1139_v56 = vadd.f32 %v1138_v15, %v1137_v43  ;;  %v1032_v15 = vmul.f32 %v2764_v32, %v2764_v32  ;;  %v1146_v22 = vsel %vm773_vm2, %v1031_v0, 0.0 }
 0x249   :  { %v1141_v38 = vadd.f32 %v1140_v47, %v1139_v56  ;;  %v1033_v47 = vmul.f32 %v2771_v8, %v2771_v8  ;;  %v1148_v52 = vsel %vm773_vm2, %v1032_v15, 0.0 }
 0x24b   :  { %v1143_v43 = vadd.f32 %v1142_v42, %v1141_v38  ;;  %v1034_v42 = vmul.f32 %v2778_v50, %v2778_v50  ;;  %v1150_v0 = vsel %vm773_vm2, %v1033_v47, 0.0 }
 0x24d   :  { %v1145_v56 = vadd.f32 %v1144_v29, %v1143_v43  ;;  %v1035_v29 = vmul.f32 %v2785_v60, %v2785_v60  ;;  %v1152_v15 = vsel %vm773_vm2, %v1034_v42, 0.0 }
 0x24f   :  { %v1147_v38 = vadd.f32 %v1146_v22, %v1145_v56  ;;  %v1036_v22 = vmul.f32 %v2792_v26, %v2792_v26  ;;  %v1154_v47 = vsel %vm773_vm2, %v1035_v29, 0.0 }
 0x251   :  { %v1149_v43 = vadd.f32 %v1148_v52, %v1147_v38  ;;  %v1037_v52 = vmul.f32 %v2799_v51, %v2799_v51  ;;  %v1156_v42 = vsel %vm773_vm2, %v1036_v22, 0.0  ;;  %v1039_v51 = vmul.f32 %v2813_v30, %v2813_v30 }
 0x253   :  { %v1151_v56 = vadd.f32 %v1150_v0, %v1149_v43  ;;  %v1038_v0 = vmul.f32 %v2806_v61, %v2806_v61  ;;  %v1158_v29 = vsel %vm773_vm2, %v1037_v52, 0.0  ;;  %v1042_v52 = vmul.f32 %v2834_v35, %v2834_v35 }
 0x255   :  { %v1153_v38 = vadd.f32 %v1152_v15, %v1151_v56  ;;  %v3330_v15 = vld [vmem:[#allocation19_spill] sm:$0xff]  ;;  %v1160_v22 = vsel %vm773_vm2, %v1038_v0, 0.0 }
 0x256   :  { %v2827_v40 = vsub.f32 %v3330_v15, %v2397_v14  ;;  %v1162_v15 = vsel %vm773_vm2, %v1039_v51, 0.0 }
 0x257   :  { %v1155_v43 = vadd.f32 %v1154_v47, %v1153_v38  ;;  %v1040_v47 = vmul.f32 %v2820_v18, %v2820_v18  ;;  %v1168_v18 = vsel %vm773_vm2, %v1042_v52, 0.0 }
 0x258   :  { %3331 = vst [vmem:[#allocation19_spill] sm:$0xff] %v2827_v40 }
 0x259   :  { %v1157_v56 = vadd.f32 %v1156_v42, %v1155_v43  ;;  %v1041_v42 = vmul.f32 %v2827_v40, %v2827_v40 }
 0x25b   :  { %v1159_v38 = vadd.f32 %v1158_v29, %v1157_v56  ;;  %v1164_v56 = vsel %vm773_vm2, %v1040_v47, 0.0  ;;  %v1166_v57 = vsel %vm773_vm2, %v1041_v42, 0.0 }
 0x25d   :  { %v1161_v43 = vadd.f32 %v1160_v22, %v1159_v38 }
 0x25f   :  { %v1163_v61 = vadd.f32 %v1162_v15, %v1161_v43 }
 0x261   :  { %v1165_v29 = vadd.f32 %v1164_v56, %v1163_v61 }
 0x263   :  { %v1167_v14 = vadd.f32 %v1166_v57, %v1165_v29  ;;  %v3335_v29 = vld [vmem:[#allocation15_spill] sm:$0xff] }
 0x265   :  { %v1169_v30 = vadd.f32 %v1168_v18, %v1167_v14  ;;  %v3336_v14 = vld [vmem:[#allocation16_spill] sm:$0xff] }
 0x267   :  { %v1170_v0 = vrot.slane %v1169_v30, 4 }
 0x269   :  { %v1171_v38 = vadd.f32 %v1170_v0, %v1169_v30 }
 0x26b   :  { %v1172_v22 = vrot.slane %v1171_v38, 2 }
 0x26d   :  { %v1173_v26 = vadd.f32 %v1172_v22, %v1171_v38 }
 0x26f   :  { %v1174_v40 = vrot.slane %v1173_v26, 1 }
 0x271   :  { %v1175_v60 = vadd.f32 %v1174_v40, %v1173_v26 }
 0x273   :  { %v1176_v51 = vmul.f32 %v1175_v60, %v2394_v48  ;;  %v3333_v48 = vld [vmem:[#allocation14_spill] sm:$0xff] }
 0x275   :  { %v1177_v43 = vadd.f32 1e-05, %v1176_v51  ;;  %v3337_v51 = vld [vmem:[#allocation17_spill] sm:$0xff] }
 0x277   :  { %1487 = vrsqrt.f32 %v1177_v43  ;;  %vm1184_vm5 = vweird.f32 %v1177_v43 }
 0x27d   :  { %v1488_v15 = vpop.eup %1487 }
 0x27e   :  { %v1179_v35 = vmul.f32 %v1488_v15, %v1177_v43  ;;  %vm1185_vm4 = vweird.f32 %v1488_v15 }
 0x27f   :  { %vm1186_vm6 = vmor %vm1184_vm5, %vm1185_vm4 }
 0x280   :  { %v1180_v47 = vmul.f32 %v1488_v15, %v1179_v35  ;;  %v3334_v35 = vld [vmem:[#allocation13_spill] sm:$0xff] }
 0x282   :  { %v1181_v61 = vmul.f32 0.5, %v1180_v47 }
 0x284   :  { %v1182_v56 = vsub.f32 1.5, %v1181_v61  ;;  %v3339_v61 = vld [vmem:[#allocation3_spill] sm:$0xff] }
 0x286   :  { %v1183_v42 = vmul.f32 %v1488_v15, %v1182_v56 }
 0x288   :  { %v2848_v18 = vsel %vm1186_vm6, %v1488_v15, %v1183_v42  ;;  %v3338_v15 = vld [vmem:[#allocation2_spill] sm:$0xff] }
 0x289   :  { %v1188_v30 = vmul.f32 %v2848_v18, %v2401_v49  ;;  %v1189_v26 = vmul.f32 %v2848_v18, %v2405_v12  ;;  %v1190_v60 = vmul.f32 %v2848_v18, %v3333_v48  ;;  %v1191_v40 = vmul.f32 %v2848_v18, %v2413_v11 }
 0x28a   :  { %v1192_v52 = vmul.f32 %v2848_v18, %v3334_v35  ;;  %v1193_v57 = vmul.f32 %v2848_v18, %v3335_v29  ;;  %v1194_v0 = vmul.f32 %v2848_v18, %v3336_v14  ;;  %v1195_v12 = vmul.f32 %v2848_v18, %v3337_v51 }
 0x28b   :  { %v1252_v38 = vmax.f32 %v1188_v30, 0.0  ;;  %v1253_v49 = vmax.f32 %v1189_v26, 0.0  ;;  %v1254_v22 = vmax.f32 %v1190_v60, 0.0  ;;  %v1255_v43 = vmax.f32 %v1191_v40, 0.0 }
 0x28c   :  { %v1196_v47 = vmul.f32 %v2848_v18, %v3338_v15  ;;  %v1256_v11 = vmax.f32 %v1192_v52, 0.0  ;;  %v1197_v56 = vmul.f32 %v2848_v18, %v3339_v61  ;;  %v1257_v42 = vmax.f32 %v1193_v57, 0.0 }
 0x28d   :  { %1316 = vst.msk [vmem:[%s3236_s2] sm:$0xff] %vm773_vm2, %v1252_v38  ;;  %v1198_v30 = vmul.f32 %v2848_v18, %v2463_v59  ;;  %v1258_v26 = vmax.f32 %v1194_v0, 0.0  ;;  %v1199_v48 = vmul.f32 %v2848_v18, %v2470_v34  ;;  %v1259_v60 = vmax.f32 %v1195_v12, 0.0  ;;  %v3340_v34 = vld [vmem:[#allocation5_spill] sm:$0xff] }
 0x28e   :  { %1317 = vst.msk [vmem:[%s3236_s2 + $0x8] sm:$0xff] %vm773_vm2, %v1253_v49  ;;  %v1200_v40 = vmul.f32 %v2848_v18, %v2477_v17  ;;  %v1260_v35 = vmax.f32 %v1196_v47, 0.0  ;;  %v1201_v59 = vmul.f32 %v2848_v18, %v2484_v7  ;;  %v1261_v52 = vmax.f32 %v1197_v56, 0.0  ;;  %v3341_v17 = vld [vmem:[#allocation6_spill] sm:$0xff]  ;;  %v3342_v7 = vld [vmem:[#allocation7_spill] sm:$0xff] }
 0x28f   :  { %1318 = vst.msk [vmem:[%s3236_s2 + $0x10] sm:$0xff] %vm773_vm2, %v1254_v22  ;;  %v1202_v29 = vmul.f32 %v2848_v18, %v3340_v34  ;;  %v1262_v57 = vmax.f32 %v1198_v30, 0.0  ;;  %v1203_v14 = vmul.f32 %v2848_v18, %v3341_v17  ;;  %v1263_v0 = vmax.f32 %v1199_v48, 0.0 }
 0x290   :  { %1319 = vst.msk [vmem:[%s3236_s2 + $0x18] sm:$0xff] %vm773_vm2, %v1255_v43  ;;  %v1204_v38 = vmul.f32 %v2848_v18, %v3342_v7  ;;  %v1264_v49 = vmax.f32 %v1200_v40, 0.0  ;;  %v1205_v22 = vmul.f32 %v2848_v18, %v2512_v20  ;;  %v1265_v51 = vmax.f32 %v1201_v59, 0.0  ;;  %v3344_v7 = vld [vmem:[#allocation11_spill] sm:$0xff] }
 0x291   :  { %1320 = vst.msk [vmem:[%s3236_s2 + $0x20] sm:$0xff] %vm773_vm2, %v1256_v11  ;;  %v1206_v12 = vmul.f32 %v2848_v18, %v2519_v39  ;;  %v1266_v43 = vmax.f32 %v1202_v29, 0.0  ;;  %v1207_v15 = vmul.f32 %v2848_v18, %v2526_v54  ;;  %v1267_v47 = vmax.f32 %v1203_v14, 0.0 }
 0x292   :  { %1321 = vst.msk [vmem:[%s3236_s2 + $0x28] sm:$0xff] %vm773_vm2, %v1257_v42  ;;  %v1208_v20 = vmul.f32 %v2848_v18, %v2533_v41  ;;  %v1268_v11 = vmax.f32 %v1204_v38, 0.0  ;;  %v1209_v39 = vmul.f32 %v2848_v18, %v2540_v13  ;;  %v1269_v61 = vmax.f32 %v1205_v22, 0.0 }
 0x293   :  { %1322 = vst.msk [vmem:[%s3236_s2 + $0x30] sm:$0xff] %vm773_vm2, %v1258_v26  ;;  %v1210_v54 = vmul.f32 %v2848_v18, %v2547_v19  ;;  %v1270_v56 = vmax.f32 %v1206_v12, 0.0  ;;  %v1211_v41 = vmul.f32 %v2848_v18, %v2554_v55  ;;  %v1271_v42 = vmax.f32 %v1207_v15, 0.0 }
 0x294   :  { %1323 = vst.msk [vmem:[%s3236_s2 + $0x38] sm:$0xff] %vm773_vm2, %v1259_v60  ;;  %v1212_v13 = vmul.f32 %v2848_v18, %v2561_v1  ;;  %v1272_v30 = vmax.f32 %v1208_v20, 0.0  ;;  %v1213_v19 = vmul.f32 %v2848_v18, %v2568_v37  ;;  %v1273_v26 = vmax.f32 %v1209_v39, 0.0 }
 0x295   :  { %1324 = vst.msk [vmem:[%s3236_s2 + $0x40] sm:$0xff] %vm773_vm2, %v1260_v35  ;;  %v1214_v55 = vmul.f32 %v2848_v18, %v2575_v2  ;;  %v1274_v48 = vmax.f32 %v1210_v54, 0.0  ;;  %v1215_v1 = vmul.f32 %v2848_v18, %v2582_v3  ;;  %v1275_v60 = vmax.f32 %v1211_v41, 0.0 }
 0x296   :  { %1325 = vst.msk [vmem:[%s3236_s2 + $0x48] sm:$0xff] %vm773_vm2, %v1261_v52  ;;  %v1216_v37 = vmul.f32 %v2848_v18, %v2589_v23  ;;  %v1276_v40 = vmax.f32 %v1212_v13, 0.0  ;;  %v1217_v2 = vmul.f32 %v2848_v18, %v2596_v36  ;;  %v1277_v35 = vmax.f32 %v1213_v19, 0.0 }
 0x297   :  { %1326 = vst.msk [vmem:[%s3236_s2 + $0x50] sm:$0xff] %vm773_vm2, %v1262_v57  ;;  %v1218_v3 = vmul.f32 %v2848_v18, %v2603_v44  ;;  %v1278_v59 = vmax.f32 %v1214_v55, 0.0  ;;  %v1219_v23 = vmul.f32 %v2848_v18, %v2610_v33  ;;  %v1279_v52 = vmax.f32 %v1215_v1, 0.0  ;;  %v3343_v33 = vld [vmem:[#allocation9_spill] sm:$0xff] }
 0x298   :  { %1327 = vst.msk [vmem:[%s3236_s2 + $0x58] sm:$0xff] %vm773_vm2, %v1263_v0  ;;  %v1220_v36 = vmul.f32 %v2848_v18, %v2617_v62  ;;  %v1280_v34 = vmax.f32 %v1216_v37, 0.0  ;;  %v1221_v44 = vmul.f32 %v2848_v18, %v2624_v24  ;;  %v1281_v29 = vmax.f32 %v1217_v2, 0.0 }
 0x299   :  { %1328 = vst.msk [vmem:[%s3236_s2 + $0x60] sm:$0xff] %vm773_vm2, %v1264_v49  ;;  %v1222_v57 = vmul.f32 %v2848_v18, %v3343_v33  ;;  %v1282_v17 = vmax.f32 %v1218_v3, 0.0  ;;  %v1223_v62 = vmul.f32 %v2848_v18, %v2638_v53  ;;  %v1283_v14 = vmax.f32 %v1219_v23, 0.0 }
 0x29a   :  { %1329 = vst.msk [vmem:[%s3236_s2 + $0x68] sm:$0xff] %vm773_vm2, %v1265_v51  ;;  %v1224_v24 = vmul.f32 %v2848_v18, %v2645_v4  ;;  %v1284_v0 = vmax.f32 %v1220_v36, 0.0  ;;  %v1225_v38 = vmul.f32 %v2848_v18, %v3344_v7  ;;  %v1285_v49 = vmax.f32 %v1221_v44, 0.0  ;;  %v3345_v4 = vld [vmem:[#allocation12_spill] sm:$0xff] }
 0x29b   :  { %1330 = vst.msk [vmem:[%s3236_s2 + $0x70] sm:$0xff] %vm773_vm2, %v1266_v43  ;;  %v1226_v53 = vmul.f32 %v2848_v18, %v2659_v28  ;;  %v1286_v22 = vmax.f32 %v1222_v57, 0.0  ;;  %v1227_v51 = vmul.f32 %v2848_v18, %v3345_v4  ;;  %v1287_v12 = vmax.f32 %v1223_v62, 0.0  ;;  %v3350_v36 = vld [vmem:[#allocation20_spill] sm:$0xff] }
 0x29c   :  { %1331 = vst.msk [vmem:[%s3236_s2 + $0x78] sm:$0xff] %vm773_vm2, %v1267_v47  ;;  %v1228_v43 = vmul.f32 %v2848_v18, %v2673_v9  ;;  %v1288_v15 = vmax.f32 %v1224_v24, 0.0  ;;  %v1229_v28 = vmul.f32 %v2848_v18, %v2680_v6  ;;  %v1289_v47 = vmax.f32 %v1225_v38, 0.0  ;;  %v3353_v24 = vld [vmem:[#allocation22_spill] sm:$0xff] }
 0x29d   :  { %1332 = vst.msk [vmem:[%s3236_s2 + $0x80] sm:$0xff] %vm773_vm2, %v1268_v11  ;;  %v1230_v20 = vmul.f32 %v2848_v18, %v2687_v21  ;;  %v1290_v11 = vmax.f32 %v1226_v53, 0.0  ;;  %v1231_v9 = vmul.f32 %v2848_v18, %v2694_v5  ;;  %v1291_v39 = vmax.f32 %v1227_v51, 0.0 }
 0x29e   :  { %1333 = vst.msk [vmem:[%s3236_s2 + $0x88] sm:$0xff] %vm773_vm2, %v1269_v61  ;;  %v1232_v6 = vmul.f32 %v2848_v18, %v2701_v58  ;;  %v1292_v61 = vmax.f32 %v1228_v43, 0.0  ;;  %v1233_v21 = vmul.f32 %v2848_v18, %v2708_v31  ;;  %v1293_v54 = vmax.f32 %v1229_v28, 0.0 }
 0x29f   :  { %1334 = vst.msk [vmem:[%s3236_s2 + $0x90] sm:$0xff] %vm773_vm2, %v1270_v56  ;;  %v1234_v5 = vmul.f32 %v2848_v18, %v2715_v27  ;;  %v1294_v56 = vmax.f32 %v1230_v20, 0.0  ;;  %v1235_v58 = vmul.f32 %v2848_v18, %v2722_v46  ;;  %v1295_v41 = vmax.f32 %v1231_v9, 0.0 }
 0x2a0   :  { %1335 = vst.msk [vmem:[%s3236_s2 + $0x98] sm:$0xff] %vm773_vm2, %v1271_v42  ;;  %v1236_v31 = vmul.f32 %v2848_v18, %v2729_v63  ;;  %v1296_v42 = vmax.f32 %v1232_v6, 0.0  ;;  %v1237_v27 = vmul.f32 %v2848_v18, %v2736_v10  ;;  %v1297_v13 = vmax.f32 %v1233_v21, 0.0 }
 0x2a1   :  { %1336 = vst.msk [vmem:[%s3236_s2 + $0xa0] sm:$0xff] %vm773_vm2, %v1272_v30  ;;  %v1238_v46 = vmul.f32 %v2848_v18, %v2743_v25  ;;  %v1298_v30 = vmax.f32 %v1234_v5, 0.0  ;;  %v1239_v63 = vmul.f32 %v2848_v18, %v2750_v16  ;;  %v1299_v19 = vmax.f32 %v1235_v58, 0.0 }
 0x2a2   :  { %1337 = vst.msk [vmem:[%s3236_s2 + $0xa8] sm:$0xff] %vm773_vm2, %v1273_v26  ;;  %v1240_v10 = vmul.f32 %v2848_v18, %v2757_v45  ;;  %v1300_v26 = vmax.f32 %v1236_v31, 0.0  ;;  %v1241_v25 = vmul.f32 %v2848_v18, %v2764_v32  ;;  %v1301_v55 = vmax.f32 %v1237_v27, 0.0  ;;  %v3346_v32 = vld [vmem:[#allocation18_spill] sm:$0xff] }
 0x2a3   :  { %1338 = vst.msk [vmem:[%s3236_s2 + $0xb0] sm:$0xff] %vm773_vm2, %v1274_v48  ;;  %v1242_v16 = vmul.f32 %v2848_v18, %v2771_v8  ;;  %v1302_v48 = vmax.f32 %v1238_v46, 0.0  ;;  %v1243_v45 = vmul.f32 %v2848_v18, %v2778_v50  ;;  %v1303_v1 = vmax.f32 %v1239_v63, 0.0  ;;  %v3347_v8 = vld [vmem:[#allocation4_spill] sm:$0xff] }
 0x2a4   :  { %1339 = vst.msk [vmem:[%s3236_s2 + $0xb8] sm:$0xff] %vm773_vm2, %v1275_v60  ;;  %v1244_v60 = vmul.f32 %v2848_v18, %v3346_v32  ;;  %v1304_v37 = vmax.f32 %v1240_v10, 0.0  ;;  %v1305_v2 = vmax.f32 %v1241_v25, 0.0  ;;  %v3348_v50 = vld [vmem:[#allocation8_spill] sm:$0xff] }
 0x2a5   :  { %1340 = vst.msk [vmem:[%s3236_s2 + $0xc0] sm:$0xff] %vm773_vm2, %v1276_v40  ;;  %v1245_v40 = vmul.f32 %v2848_v18, %v3347_v8  ;;  %v1306_v3 = vmax.f32 %v1242_v16, 0.0 }
 0x2a6   :  { %1341 = vst.msk [vmem:[%s3236_s2 + $0xc8] sm:$0xff] %vm773_vm2, %v1277_v35  ;;  %v1246_v35 = vmul.f32 %v2848_v18, %v3348_v50  ;;  %v1308_v44 = vmax.f32 %v1244_v60, 0.0 }
 0x2a7   :  { %1342 = vst.msk [vmem:[%s3236_s2 + $0xd0] sm:$0xff] %vm773_vm2, %v1278_v59  ;;  %v3349_v59 = vld [vmem:[#allocation10_spill] sm:$0xff]  ;;  %v1309_v57 = vmax.f32 %v1245_v40, 0.0 }
 0x2a8   :  { %1343 = vst.msk [vmem:[%s3236_s2 + $0xd8] sm:$0xff] %vm773_vm2, %v1279_v52  ;;  %v1247_v23 = vmul.f32 %v2848_v18, %v3349_v59  ;;  %v1307_v52 = vmax.f32 %v1243_v45, 0.0 }
 0x2a9   :  { %1344 = vst.msk [vmem:[%s3236_s2 + $0xe0] sm:$0xff] %vm773_vm2, %v1280_v34  ;;  %v1248_v34 = vmul.f32 %v2848_v18, %v3350_v36 }
 0x2aa   :  { %1345 = vst.msk [vmem:[%s3236_s2 + $0xe8] sm:$0xff] %vm773_vm2, %v1281_v29  ;;  %v3351_v29 = vld [vmem:[#allocation21_spill] sm:$0xff]  ;;  %v1311_v7 = vmax.f32 %v1247_v23, 0.0 }
 0x2ab   :  { %1346 = vst.msk [vmem:[%s3236_s2 + $0xf0] sm:$0xff] %vm773_vm2, %v1282_v17  ;;  %v1249_v33 = vmul.f32 %v2848_v18, %v3351_v29  ;;  %v3352_v17 = vld [vmem:[#allocation19_spill] sm:$0xff]  ;;  %v1312_v38 = vmax.f32 %v1248_v34, 0.0 }
 0x2ac   :  { %1347 = vst.msk [vmem:[%s3236_s2 + $0xf8] sm:$0xff] %vm773_vm2, %v1283_v14  ;;  %v1250_v62 = vmul.f32 %v2848_v18, %v3352_v17  ;;  %v1310_v14 = vmax.f32 %v1246_v35, 0.0 }
 0x2ad   :  { %1348 = vst.msk [vmem:[%s3236_s2 + $0x100] sm:$0xff] %vm773_vm2, %v1284_v0  ;;  %v1251_v0 = vmul.f32 %v2848_v18, %v3353_v24 }
 0x2ae   :  { %1349 = vst.msk [vmem:[%s3236_s2 + $0x108] sm:$0xff] %vm773_vm2, %v1285_v49  ;;  %v1313_v49 = vmax.f32 %v1249_v33, 0.0  ;;  %v1314_v53 = vmax.f32 %v1250_v62, 0.0 }
 0x2af   :  { %1350 = vst.msk [vmem:[%s3236_s2 + $0x110] sm:$0xff] %vm773_vm2, %v1286_v22  ;;  %v1315_v18 = vmax.f32 %v1251_v0, 0.0 }
 0x2b0   :  { %1351 = vst.msk [vmem:[%s3236_s2 + $0x118] sm:$0xff] %vm773_vm2, %v1287_v12 }
 0x2b1   :  { %1352 = vst.msk [vmem:[%s3236_s2 + $0x120] sm:$0xff] %vm773_vm2, %v1288_v15 }
 0x2b2   :  { %1353 = vst.msk [vmem:[%s3236_s2 + $0x128] sm:$0xff] %vm773_vm2, %v1289_v47 }
 0x2b3   :  { %1354 = vst.msk [vmem:[%s3236_s2 + $0x130] sm:$0xff] %vm773_vm2, %v1290_v11 }
 0x2b4   :  { %1355 = vst.msk [vmem:[%s3236_s2 + $0x138] sm:$0xff] %vm773_vm2, %v1291_v39 }
 0x2b5   :  { %1356 = vst.msk [vmem:[%s3236_s2 + $0x140] sm:$0xff] %vm773_vm2, %v1292_v61 }
 0x2b6   :  { %1357 = vst.msk [vmem:[%s3236_s2 + $0x148] sm:$0xff] %vm773_vm2, %v1293_v54 }
 0x2b7   :  { %1358 = vst.msk [vmem:[%s3236_s2 + $0x150] sm:$0xff] %vm773_vm2, %v1294_v56 }
 0x2b8   :  { %1359 = vst.msk [vmem:[%s3236_s2 + $0x158] sm:$0xff] %vm773_vm2, %v1295_v41 }
 0x2b9   :  { %1360 = vst.msk [vmem:[%s3236_s2 + $0x160] sm:$0xff] %vm773_vm2, %v1296_v42 }
 0x2ba   :  { %1361 = vst.msk [vmem:[%s3236_s2 + $0x168] sm:$0xff] %vm773_vm2, %v1297_v13 }
 0x2bb   :  { %1362 = vst.msk [vmem:[%s3236_s2 + $0x170] sm:$0xff] %vm773_vm2, %v1298_v30 }
 0x2bc   :  { %1363 = vst.msk [vmem:[%s3236_s2 + $0x178] sm:$0xff] %vm773_vm2, %v1299_v19 }
 0x2bd   :  { %1364 = vst.msk [vmem:[%s3236_s2 + $0x180] sm:$0xff] %vm773_vm2, %v1300_v26 }
 0x2be   :  { %1365 = vst.msk [vmem:[%s3236_s2 + $0x188] sm:$0xff] %vm773_vm2, %v1301_v55 }
 0x2bf   :  { %1366 = vst.msk [vmem:[%s3236_s2 + $0x190] sm:$0xff] %vm773_vm2, %v1302_v48 }
 0x2c0   :  { %1367 = vst.msk [vmem:[%s3236_s2 + $0x198] sm:$0xff] %vm773_vm2, %v1303_v1 }
 0x2c1   :  { %1368 = vst.msk [vmem:[%s3236_s2 + $0x1a0] sm:$0xff] %vm773_vm2, %v1304_v37 }
 0x2c2   :  { %1369 = vst.msk [vmem:[%s3236_s2 + $0x1a8] sm:$0xff] %vm773_vm2, %v1305_v2 }
 0x2c3   :  { %1370 = vst.msk [vmem:[%s3236_s2 + $0x1b0] sm:$0xff] %vm773_vm2, %v1306_v3 }
 0x2c4   :  { %1371 = vst.msk [vmem:[%s3236_s2 + $0x1b8] sm:$0xff] %vm773_vm2, %v1307_v52 }
 0x2c5   :  { %1372 = vst.msk [vmem:[%s3236_s2 + $0x1c0] sm:$0xff] %vm773_vm2, %v1308_v44 }
 0x2c6   :  { %1373 = vst.msk [vmem:[%s3236_s2 + $0x1c8] sm:$0xff] %vm773_vm2, %v1309_v57 }
 0x2c7   :  { %1374 = vst.msk [vmem:[%s3236_s2 + $0x1d0] sm:$0xff] %vm773_vm2, %v1310_v14 }
 0x2c8   :  { %1375 = vst.msk [vmem:[%s3236_s2 + $0x1d8] sm:$0xff] %vm773_vm2, %v1311_v7 }
 0x2c9   :  { %1376 = vst.msk [vmem:[%s3236_s2 + $0x1e0] sm:$0xff] %vm773_vm2, %v1312_v38 }
 0x2ca   :  { %1377 = vst.msk [vmem:[%s3236_s2 + $0x1e8] sm:$0xff] %vm773_vm2, %v1313_v49 }
 0x2cb   :  { %1378 = vst.msk [vmem:[%s3236_s2 + $0x1f0] sm:$0xff] %vm773_vm2, %v1314_v53 }
 0x2cc   :  { %1379 = vst.msk [vmem:[%s3236_s2 + $0x1f8] sm:$0xff] %vm773_vm2, %v1315_v18 }

// kernel: strider_forward.5
= control target key start
LH: loop header
LB: loop body
LE: loop exit
PB: predicated region body
PF: predicated region fallthrough
CT: control target
= control target key end

     0   :  { %vm293_vm0 = vcmask 64512   ;;  %s1514_s1 = inlined_call_operand.vmem [shape: f32[8,8], index: 1, kind: input, shape index: {}]   ;;  %s1515_s0 = inlined_call_operand.vmem [shape: f32[9,128,8], index: 0, kind: input, shape index: {}]   ;;  %s1516_s2 = inlined_call_operand.vmem [shape: f32[128,8], index: 2, kind: output, shape index: {0}]   ;;  %s1517_s3 = inlined_call_operand.vmem [shape: f32[128,8], index: 3, kind: output, shape index: {1}]  }
   0x1   :  { %v310_v0 = vld [vmem:[%s1514_s1] sm:$0xff]  ;;  %v14_v7 = vld [vmem:[%s1515_s0 + $0x8] sm:$0xff]  ;;  %v15_v43 = vld [vmem:[%s1515_s0 + $0x10] sm:$0xff] }
   0x2   :  { %v13_v1 = vld [vmem:[%s1515_s0] sm:$0xff]  ;;  %374 = vmatpush.msra.mxu0 %v310_v0  ;;  %750 = vmatpush.msra.mxu1 %v310_v0  ;;  %v607_v8 = vld [vmem:[%s1515_s0 + $0x88] sm:$0xff]  ;;  %v608_v44 = vld [vmem:[%s1515_s0 + $0x90] sm:$0xff] }
   0x3   :  { %v606_v2 = vld [vmem:[%s1515_s0 + $0x80] sm:$0xff]  ;;  %751 = vmatpush.msra.mxu2 %v310_v0  ;;  %752 = vmatpush.msra.mxu3 %v310_v0  ;;  %v47_v10 = vmax.f32 %v14_v7, %v607_v8  ;;  %v623_v11 = vld [vmem:[%s1515_s0 + $0x108] sm:$0xff]  ;;  %v48_v49 = vmax.f32 %v15_v43, %v608_v44  ;;  %v624_v50 = vld [vmem:[%s1515_s0 + $0x110] sm:$0xff] }
   0x4   :  { %v46_v3 = vmax.f32 %v13_v1, %v606_v2  ;;  %v622_v4 = vld [vmem:[%s1515_s0 + $0x100] sm:$0xff]  ;;  %v639_v13 = vld [vmem:[%s1515_s0 + $0x188] sm:$0xff]  ;;  %v640_v55 = vld [vmem:[%s1515_s0 + $0x190] sm:$0xff] }
   0x5   :  { %v638_v5 = vld [vmem:[%s1515_s0 + $0x180] sm:$0xff]  ;;  %v80_v15 = vmax.f32 %v47_v10, %v623_v11  ;;  %v655_v19 = vld [vmem:[%s1515_s0 + $0x208] sm:$0xff]  ;;  %v81_v59 = vmax.f32 %v48_v49, %v624_v50  ;;  %v656_v1 = vld [vmem:[%s1515_s0 + $0x210] sm:$0xff] }
   0x6   :  { %v79_v6 = vmax.f32 %v46_v3, %v622_v4  ;;  %v654_v9 = vld [vmem:[%s1515_s0 + $0x200] sm:$0xff]  ;;  %v671_v26 = vld [vmem:[%s1515_s0 + $0x288] sm:$0xff]  ;;  %v672_v11 = vld [vmem:[%s1515_s0 + $0x290] sm:$0xff] }
   0x7   :  { %v670_v14 = vld [vmem:[%s1515_s0 + $0x280] sm:$0xff]  ;;  %v113_v23 = vmax.f32 %v80_v15, %v639_v13  ;;  %v687_v37 = vld [vmem:[%s1515_s0 + $0x308] sm:$0xff]  ;;  %v114_v7 = vmax.f32 %v81_v59, %v640_v55  ;;  %v641_v59 = vld [vmem:[%s1515_s0 + $0x198] sm:$0xff] }
   0x8   :  { %v112_v12 = vmax.f32 %v79_v6, %v638_v5  ;;  %v17_v16 = vld [vmem:[%s1515_s0 + $0x20] sm:$0xff]  ;;  %v703_v46 = vld [vmem:[%s1515_s0 + $0x388] sm:$0xff] }
   0x9   :  { %v610_v17 = vld [vmem:[%s1515_s0 + $0xa0] sm:$0xff]  ;;  %v146_v31 = vmax.f32 %v113_v23, %v655_v19  ;;  %v719_v52 = vld [vmem:[%s1515_s0 + $0x408] sm:$0xff]  ;;  %v688_v23 = vld [vmem:[%s1515_s0 + $0x310] sm:$0xff] }
   0xa   :  { %v145_v18 = vmax.f32 %v112_v12, %v654_v9  ;;  %v50_v20 = vmax.f32 %v17_v16, %v610_v17  ;;  %v626_v21 = vld [vmem:[%s1515_s0 + $0x120] sm:$0xff]  ;;  %v18_v60 = vld [vmem:[%s1515_s0 + $0x28] sm:$0xff]  ;;  %v147_v17 = vmax.f32 %v114_v7, %v656_v1  ;;  %v612_v1 = vld [vmem:[%s1515_s0 + $0xb0] sm:$0xff] }
   0xb   :  { %v686_v22 = vld [vmem:[%s1515_s0 + $0x300] sm:$0xff]  ;;  %v179_v40 = vmax.f32 %v146_v31, %v671_v26  ;;  %v611_v61 = vld [vmem:[%s1515_s0 + $0xa8] sm:$0xff]  ;;  %v628_v7 = vld [vmem:[%s1515_s0 + $0x130] sm:$0xff] }
   0xc   :  { %v642_v24 = vld [vmem:[%s1515_s0 + $0x1a0] sm:$0xff]  ;;  %v178_v25 = vmax.f32 %v145_v18, %v670_v14  ;;  %v83_v27 = vmax.f32 %v50_v20, %v626_v21  ;;  %v51_v2 = vmax.f32 %v18_v60, %v611_v61  ;;  %v627_v3 = vld [vmem:[%s1515_s0 + $0x128] sm:$0xff] }
   0xd   :  { %v21_v28 = vld [vmem:[%s1515_s0 + $0x40] sm:$0xff]  ;;  %v212_v51 = vmax.f32 %v179_v40, %v687_v37  ;;  %v643_v8 = vld [vmem:[%s1515_s0 + $0x1a8] sm:$0xff] }
   0xe   :  { %v614_v29 = vld [vmem:[%s1515_s0 + $0xc0] sm:$0xff]  ;;  %v211_v35 = vmax.f32 %v178_v25, %v686_v22  ;;  %v116_v38 = vmax.f32 %v83_v27, %v642_v24  ;;  %v84_v12 = vmax.f32 %v51_v2, %v627_v3  ;;  %v22_v13 = vld [vmem:[%s1515_s0 + $0x48] sm:$0xff]  ;;  %v180_v27 = vmax.f32 %v147_v17, %v672_v11  ;;  %v23_v17 = vld [vmem:[%s1515_s0 + $0x50] sm:$0xff] }
   0xf   :  { %v702_v30 = vld [vmem:[%s1515_s0 + $0x380] sm:$0xff]  ;;  %v54_v33 = vmax.f32 %v21_v28, %v614_v29  ;;  %v245_v62 = vmax.f32 %v212_v51, %v703_v46  ;;  %v615_v14 = vld [vmem:[%s1515_s0 + $0xc8] sm:$0xff] }
  0x10   :  { %v658_v32 = vld [vmem:[%s1515_s0 + $0x220] sm:$0xff]  ;;  %v244_v45 = vmax.f32 %v211_v35, %v702_v30  ;;  %v659_v18 = vld [vmem:[%s1515_s0 + $0x228] sm:$0xff]  ;;  %v55_v19 = vmax.f32 %v22_v13, %v615_v14  ;;  %v117_v24 = vmax.f32 %v84_v12, %v643_v8  ;;  %v644_v12 = vld [vmem:[%s1515_s0 + $0x1b0] sm:$0xff] }
  0x11   :  { %v630_v34 = vld [vmem:[%s1515_s0 + $0x140] sm:$0xff]  ;;  %v149_v47 = vmax.f32 %v116_v38, %v658_v32  ;;  %v278_v9 = vmax.f32 %v245_v62, %v719_v52  ;;  %v631_v20 = vld [vmem:[%s1515_s0 + $0x148] sm:$0xff]  ;;  %v213_v38 = vmax.f32 %v180_v27, %v688_v23  ;;  %v689_v27 = vld [vmem:[%s1515_s0 + $0x318] sm:$0xff] }
  0x12   :  { %v718_v36 = vld [vmem:[%s1515_s0 + $0x400] sm:$0xff]  ;;  %v87_v42 = vmax.f32 %v54_v33, %v630_v34  ;;  %v647_v25 = vld [vmem:[%s1515_s0 + $0x1c8] sm:$0xff]  ;;  %v88_v29 = vmax.f32 %v55_v19, %v631_v20  ;;  %v704_v33 = vld [vmem:[%s1515_s0 + $0x390] sm:$0xff]  ;;  %v150_v34 = vmax.f32 %v117_v24, %v659_v18 }
  0x13   :  { %v646_v39 = vld [vmem:[%s1515_s0 + $0x1c0] sm:$0xff]  ;;  %v277_v56 = vmax.f32 %v244_v45, %v718_v36  ;;  %295 = vst.msk [vmem:[%s1516_s2 + $0x8] sm:$0xff] %vm293_vm0, %v278_v9  ;;  %v675_v28 = vld [vmem:[%s1515_s0 + $0x2a8] sm:$0xff]  ;;  %v246_v49 = vmax.f32 %v213_v38, %v704_v33  ;;  %v616_v18 = vld [vmem:[%s1515_s0 + $0xd0] sm:$0xff] }
  0x14   :  { %v674_v41 = vld [vmem:[%s1515_s0 + $0x2a0] sm:$0xff]  ;;  %v120_v54 = vmax.f32 %v87_v42, %v646_v39  ;;  %v663_v35 = vld [vmem:[%s1515_s0 + $0x248] sm:$0xff]  ;;  %v720_v39 = vld [vmem:[%s1515_s0 + $0x410] sm:$0xff]  ;;  %v183_v44 = vmax.f32 %v150_v34, %v675_v28  ;;  %v56_v23 = vmax.f32 %v23_v17, %v616_v18 }
  0x15   :  { %v662_v48 = vld [vmem:[%s1515_s0 + $0x240] sm:$0xff]  ;;  %v182_v57 = vmax.f32 %v149_v47, %v674_v41  ;;  %294 = vst.msk [vmem:[%s1516_s2] sm:$0xff] %vm293_vm0, %v277_v56  ;;  %734 = vmatmul.msk.f32.vlgmr.msra.gmra.mxu0 %vm293_vm0, %v277_v56  ;;  %v691_v40 = vld [vmem:[%s1515_s0 + $0x328] sm:$0xff]  ;;  %v121_v41 = vmax.f32 %v88_v29, %v647_v25  ;;  %v16_v47 = vld [vmem:[%s1515_s0 + $0x18] sm:$0xff]  ;;  %v279_v60 = vmax.f32 %v246_v49, %v720_v39 }
  0x16   :  { %v690_v53 = vld [vmem:[%s1515_s0 + $0x320] sm:$0xff]  ;;  %v153_v0 = vmax.f32 %v120_v54, %v662_v48  ;;  %v679_v45 = vld [vmem:[%s1515_s0 + $0x2c8] sm:$0xff]  ;;  %v609_v48 = vld [vmem:[%s1515_s0 + $0x98] sm:$0xff]  ;;  %v216_v55 = vmax.f32 %v183_v44, %v691_v40 }
  0x17   :  { %v678_v58 = vld [vmem:[%s1515_s0 + $0x2c0] sm:$0xff]  ;;  %v215_v4 = vmax.f32 %v182_v57, %v690_v53  ;;  %v707_v50 = vld [vmem:[%s1515_s0 + $0x3a8] sm:$0xff]  ;;  %v154_v51 = vmax.f32 %v121_v41, %v663_v35  ;;  %v49_v53 = vmax.f32 %v16_v47, %v609_v48  ;;  %v625_v54 = vld [vmem:[%s1515_s0 + $0x118] sm:$0xff]  ;;  %296 = vst.msk [vmem:[%s1516_s2 + $0x10] sm:$0xff] %vm293_vm0, %v279_v60 }
  0x18   :  { %v706_v63 = vld [vmem:[%s1515_s0 + $0x3a0] sm:$0xff]  ;;  %v186_v10 = vmax.f32 %v153_v0, %v678_v58  ;;  %v723_v56 = vld [vmem:[%s1515_s0 + $0x428] sm:$0xff]  ;;  %v19_v0 = vld [vmem:[%s1515_s0 + $0x30] sm:$0xff]  ;;  %v249_v2 = vmax.f32 %v216_v55, %v707_v50 }
  0x19   :  { %v722_v5 = vld [vmem:[%s1515_s0 + $0x420] sm:$0xff]  ;;  %v248_v15 = vmax.f32 %v215_v4, %v706_v63  ;;  %v695_v57 = vld [vmem:[%s1515_s0 + $0x348] sm:$0xff]  ;;  %v187_v61 = vmax.f32 %v154_v51, %v679_v45  ;;  %v82_v63 = vmax.f32 %v49_v53, %v625_v54  ;;  %v632_v24 = vld [vmem:[%s1515_s0 + $0x150] sm:$0xff] }
  0x1a   :  { %v694_v6 = vld [vmem:[%s1515_s0 + $0x340] sm:$0xff]  ;;  %v711_v3 = vld [vmem:[%s1515_s0 + $0x3c8] sm:$0xff]  ;;  %v282_v13 = vmax.f32 %v249_v2, %v723_v56  ;;  %v648_v29 = vld [vmem:[%s1515_s0 + $0x1d0] sm:$0xff]  ;;  %v89_v33 = vmax.f32 %v56_v23, %v632_v24 }
  0x1b   :  { %v710_v16 = vld [vmem:[%s1515_s0 + $0x3c0] sm:$0xff]  ;;  %v219_v21 = vmax.f32 %v186_v10, %v694_v6  ;;  %v281_v26 = vmax.f32 %v248_v15, %v722_v5  ;;  %v657_v5 = vld [vmem:[%s1515_s0 + $0x218] sm:$0xff]  ;;  %v52_v6 = vmax.f32 %v19_v0, %v612_v1  ;;  %v220_v8 = vmax.f32 %v187_v61, %v695_v57  ;;  %v26_v34 = vld [vmem:[%s1515_s0 + $0x68] sm:$0xff] }
  0x1c   :  { %v726_v22 = vld [vmem:[%s1515_s0 + $0x440] sm:$0xff]  ;;  %v115_v11 = vmax.f32 %v82_v63, %v641_v59  ;;  %v673_v15 = vld [vmem:[%s1515_s0 + $0x298] sm:$0xff]  ;;  %299 = vst.msk [vmem:[%s1516_s2 + $0x28] sm:$0xff] %vm293_vm0, %v282_v13  ;;  %v619_v35 = vld [vmem:[%s1515_s0 + $0xe8] sm:$0xff]  ;;  %v122_v45 = vmax.f32 %v89_v33, %v648_v29 }
  0x1d   :  { %v25_v30 = vld [vmem:[%s1515_s0 + $0x60] sm:$0xff]  ;;  %v252_v32 = vmax.f32 %v219_v21, %v710_v16  ;;  %298 = vst.msk [vmem:[%s1516_s2 + $0x20] sm:$0xff] %vm293_vm0, %v281_v26  ;;  %738 = vmatmul.msk.f32.vlgmr.msra.gmra.mxu1 %vm293_vm0, %v281_v26  ;;  %735 = vmatmul.msk.f32.gmra.mxu0 %vm293_vm0, %v278_v9  ;;  %v727_v9 = vld [vmem:[%s1515_s0 + $0x448] sm:$0xff]  ;;  %v85_v16 = vmax.f32 %v52_v6, %v628_v7  ;;  %v664_v39 = vld [vmem:[%s1515_s0 + $0x250] sm:$0xff] }
  0x1e   :  { %v618_v31 = vld [vmem:[%s1515_s0 + $0xe0] sm:$0xff]  ;;  %v253_v19 = vmax.f32 %v220_v8, %v711_v3  ;;  %v148_v21 = vmax.f32 %v115_v11, %v657_v5  ;;  %v59_v40 = vmax.f32 %v26_v34, %v619_v35  ;;  %v635_v41 = vld [vmem:[%s1515_s0 + $0x168] sm:$0xff]  ;;  %v692_v44 = vld [vmem:[%s1515_s0 + $0x330] sm:$0xff]  ;;  %v155_v55 = vmax.f32 %v122_v45, %v664_v39 }
  0x1f   :  { %v58_v36 = vmax.f32 %v25_v30, %v618_v31  ;;  %v634_v37 = vld [vmem:[%s1515_s0 + $0x160] sm:$0xff]  ;;  %v285_v43 = vmax.f32 %v252_v32, %v726_v22  ;;  %v660_v22 = vld [vmem:[%s1515_s0 + $0x230] sm:$0xff]  ;;  %v118_v28 = vmax.f32 %v85_v16, %v644_v12  ;;  %v20_v51 = vld [vmem:[%s1515_s0 + $0x38] sm:$0xff] }
  0x20   :  { %v650_v42 = vld [vmem:[%s1515_s0 + $0x1e0] sm:$0xff]  ;;  %v286_v30 = vmax.f32 %v253_v19, %v727_v9  ;;  %v181_v31 = vmax.f32 %v148_v21, %v673_v15  ;;  %v676_v32 = vld [vmem:[%s1515_s0 + $0x2b0] sm:$0xff]  ;;  %v92_v50 = vmax.f32 %v59_v40, %v635_v41  ;;  %v667_v56 = vld [vmem:[%s1515_s0 + $0x268] sm:$0xff] }
  0x21   :  { %v91_v46 = vmax.f32 %v58_v36, %v634_v37  ;;  %v666_v52 = vld [vmem:[%s1515_s0 + $0x260] sm:$0xff]  ;;  %302 = vst.msk [vmem:[%s1516_s2 + $0x40] sm:$0xff] %vm293_vm0, %v285_v43  ;;  %742 = vmatmul.msk.f32.vlgmr.msra.gmra.mxu2 %vm293_vm0, %v285_v43  ;;  %v705_v37 = vld [vmem:[%s1515_s0 + $0x398] sm:$0xff]  ;;  %v151_v38 = vmax.f32 %v118_v28, %v660_v22  ;;  %v680_v49 = vld [vmem:[%s1515_s0 + $0x2d0] sm:$0xff] }
  0x22   :  { %v682_v62 = vld [vmem:[%s1515_s0 + $0x2e0] sm:$0xff]  ;;  %303 = vst.msk [vmem:[%s1516_s2 + $0x48] sm:$0xff] %vm293_vm0, %v286_v30  ;;  %v721_v43 = vld [vmem:[%s1515_s0 + $0x418] sm:$0xff]  ;;  %v708_v54 = vld [vmem:[%s1515_s0 + $0x3b0] sm:$0xff]  ;;  %v188_v1 = vmax.f32 %v155_v55, %v680_v49 }
  0x23   :  { %v124_v58 = vmax.f32 %v91_v46, %v650_v42  ;;  %v698_v10 = vld [vmem:[%s1515_s0 + $0x360] sm:$0xff]  ;;  %v214_v42 = vmax.f32 %v181_v31, %v689_v27  ;;  %v651_v46 = vld [vmem:[%s1515_s0 + $0x1e8] sm:$0xff]  ;;  %v184_v48 = vmax.f32 %v151_v38, %v676_v32  ;;  %v696_v61 = vld [vmem:[%s1515_s0 + $0x350] sm:$0xff] }
  0x24   :  { %v714_v20 = vld [vmem:[%s1515_s0 + $0x3e0] sm:$0xff]  ;;  %v645_v63 = vld [vmem:[%s1515_s0 + $0x1b8] sm:$0xff]  ;;  %v683_v2 = vld [vmem:[%s1515_s0 + $0x2e8] sm:$0xff]  ;;  %v221_v12 = vmax.f32 %v188_v1, %v696_v61 }
  0x25   :  { %v157_v4 = vmax.f32 %v124_v58, %v666_v52  ;;  %739 = vmatmul.msk.f32.gmra.mxu1 %vm293_vm0, %v282_v13  ;;  %v730_v26 = vld [vmem:[%s1515_s0 + $0x460] sm:$0xff]  ;;  %736 = vmatmul.msk.f32.gmra.mxu0 %vm293_vm0, %v279_v60  ;;  %v613_v52 = vld [vmem:[%s1515_s0 + $0xb8] sm:$0xff]  ;;  %v247_v53 = vmax.f32 %v214_v42, %v705_v37  ;;  %v217_v59 = vmax.f32 %v184_v48, %v692_v44  ;;  %v724_v60 = vld [vmem:[%s1515_s0 + $0x430] sm:$0xff] }
  0x26   :  { %v53_v57 = vmax.f32 %v20_v51, %v613_v52  ;;  %v629_v58 = vld [vmem:[%s1515_s0 + $0x138] sm:$0xff]  ;;  %v712_v7 = vld [vmem:[%s1515_s0 + $0x3d0] sm:$0xff]  ;;  %v715_v24 = vld [vmem:[%s1515_s0 + $0x3e8] sm:$0xff] }
  0x27   :  { %v190_v14 = vmax.f32 %v157_v4, %v682_v62  ;;  %v125_v62 = vmax.f32 %v92_v50, %v651_v46  ;;  %v280_v0 = vmax.f32 %v247_v53, %v721_v43  ;;  %v24_v4 = vld [vmem:[%s1515_s0 + $0x58] sm:$0xff]  ;;  %v250_v6 = vmax.f32 %v217_v59, %v708_v54  ;;  %v728_v13 = vld [vmem:[%s1515_s0 + $0x450] sm:$0xff] }
  0x28   :  { %v86_v3 = vmax.f32 %v53_v57, %v629_v58  ;;  %v617_v5 = vld [vmem:[%s1515_s0 + $0xd8] sm:$0xff]  ;;  %v27_v21 = vld [vmem:[%s1515_s0 + $0x70] sm:$0xff]  ;;  %v254_v23 = vmax.f32 %v221_v12, %v712_v7 }
  0x29   :  { %v223_v25 = vmax.f32 %v190_v14, %v698_v10  ;;  %743 = vmatmul.msk.f32.gmra.mxu2 %vm293_vm0, %v286_v30  ;;  %v158_v8 = vmax.f32 %v125_v62, %v667_v56  ;;  %v661_v9 = vld [vmem:[%s1515_s0 + $0x238] sm:$0xff]  ;;  %v57_v10 = vmax.f32 %v24_v4, %v617_v5  ;;  %297 = vst.msk [vmem:[%s1516_s2 + $0x18] sm:$0xff] %vm293_vm0, %v280_v0  ;;  %v699_v14 = vld [vmem:[%s1515_s0 + $0x368] sm:$0xff]  ;;  %v620_v22 = vld [vmem:[%s1515_s0 + $0xf0] sm:$0xff] }
  0x2a   :  { %v633_v11 = vld [vmem:[%s1515_s0 + $0x158] sm:$0xff]  ;;  %v119_v15 = vmax.f32 %v86_v3, %v645_v63  ;;  %v283_v17 = vmax.f32 %v250_v6, %v724_v60  ;;  %v60_v27 = vmax.f32 %v27_v21, %v620_v22  ;;  %v636_v28 = vld [vmem:[%s1515_s0 + $0x170] sm:$0xff]  ;;  %v731_v30 = vld [vmem:[%s1515_s0 + $0x468] sm:$0xff]  ;;  %v287_v34 = vmax.f32 %v254_v23, %v728_v13 }
  0x2b   :  { %v256_v36 = vmax.f32 %v223_v25, %v714_v20  ;;  %v649_v16 = vld [vmem:[%s1515_s0 + $0x1d8] sm:$0xff]  ;;  %v191_v18 = vmax.f32 %v158_v8, %v683_v2  ;;  %v90_v20 = vmax.f32 %v57_v10, %v633_v11  ;;  %v652_v33 = vld [vmem:[%s1515_s0 + $0x1f0] sm:$0xff] }
  0x2c   :  { %v677_v19 = vld [vmem:[%s1515_s0 + $0x2b8] sm:$0xff]  ;;  %v152_v25 = vmax.f32 %v119_v15, %v661_v9  ;;  %300 = vst.msk [vmem:[%s1516_s2 + $0x30] sm:$0xff] %vm293_vm0, %v283_v17  ;;  %v93_v37 = vmax.f32 %v60_v27, %v636_v28  ;;  %v668_v43 = vld [vmem:[%s1515_s0 + $0x270] sm:$0xff] }
  0x2d   :  { %v289_v47 = vmax.f32 %v256_v36, %v730_v26  ;;  %737 = vmatmul.msk.f32.gmra.mxu0 %vm293_vm0, %v280_v0  ;;  %v665_v26 = vld [vmem:[%s1515_s0 + $0x258] sm:$0xff]  ;;  %740 = vmatmul.msk.f32.gmra.mxu1 %vm293_vm0, %v283_v17  ;;  %v224_v29 = vmax.f32 %v191_v18, %v699_v14  ;;  %v123_v32 = vmax.f32 %v90_v20, %v649_v16  ;;  %v684_v53 = vld [vmem:[%s1515_s0 + $0x2f0] sm:$0xff] }
  0x2e   :  { %v693_v31 = vld [vmem:[%s1515_s0 + $0x338] sm:$0xff]  ;;  %v185_v35 = vmax.f32 %v152_v25, %v677_v19  ;;  %304 = vst.msk [vmem:[%s1516_s2 + $0x50] sm:$0xff] %vm293_vm0, %v287_v34  ;;  %v126_v48 = vmax.f32 %v93_v37, %v652_v33  ;;  %v700_v60 = vld [vmem:[%s1515_s0 + $0x370] sm:$0xff] }
  0x2f   :  { %306 = vst.msk [vmem:[%s1516_s2 + $0x60] sm:$0xff] %vm293_vm0, %v289_v47  ;;  %746 = vmatmul.msk.f32.vlgmr.msra.gmra.mxu3 %vm293_vm0, %v289_v47  ;;  %v681_v36 = vld [vmem:[%s1515_s0 + $0x2d8] sm:$0xff]  ;;  %v257_v40 = vmax.f32 %v224_v29, %v715_v24  ;;  %v156_v42 = vmax.f32 %v123_v32, %v665_v26  ;;  %v716_v3 = vld [vmem:[%s1515_s0 + $0x3f0] sm:$0xff] }
  0x30   :  { %v28_v38 = vld [vmem:[%s1515_s0 + $0x78] sm:$0xff]  ;;  %v218_v46 = vmax.f32 %v185_v35, %v693_v31  ;;  %v159_v57 = vmax.f32 %v126_v48, %v668_v43  ;;  %v732_v8 = vld [vmem:[%s1515_s0 + $0x470] sm:$0xff] }
  0x31   :  { %v621_v39 = vld [vmem:[%s1515_s0 + $0xf8] sm:$0xff]  ;;  %744 = vmatmul.msk.f32.gmra.mxu2 %vm293_vm0, %v287_v34  ;;  %v290_v50 = vmax.f32 %v257_v40, %v731_v30  ;;  %v189_v52 = vmax.f32 %v156_v42, %v681_v36 }
  0x32   :  { %v709_v41 = vld [vmem:[%s1515_s0 + $0x3b8] sm:$0xff]  ;;  %v61_v44 = vmax.f32 %v28_v38, %v621_v39  ;;  %v192_v0 = vmax.f32 %v159_v57, %v684_v53 }
  0x33   :  { %v637_v45 = vld [vmem:[%s1515_s0 + $0x178] sm:$0xff]  ;;  %v251_v55 = vmax.f32 %v218_v46, %v709_v41  ;;  %307 = vst.msk [vmem:[%s1516_s2 + $0x68] sm:$0xff] %vm293_vm0, %v290_v50 }
  0x34   :  { %v697_v47 = vld [vmem:[%s1515_s0 + $0x358] sm:$0xff]  ;;  %v94_v54 = vmax.f32 %v61_v44, %v637_v45  ;;  %v225_v5 = vmax.f32 %v192_v0, %v700_v60 }
  0x35   :  { %v653_v49 = vld [vmem:[%s1515_s0 + $0x1f8] sm:$0xff]  ;;  %v222_v59 = vmax.f32 %v189_v52, %v697_v47 }
  0x36   :  { %v725_v51 = vld [vmem:[%s1515_s0 + $0x438] sm:$0xff]  ;;  %v127_v61 = vmax.f32 %v94_v54, %v653_v49  ;;  %v258_v10 = vmax.f32 %v225_v5, %v716_v3 }
  0x37   :  { %v713_v56 = vld [vmem:[%s1515_s0 + $0x3d8] sm:$0xff]  ;;  %747 = vmatmul.msk.f32.gmra.mxu3 %vm293_vm0, %v290_v50  ;;  %v284_v62 = vmax.f32 %v251_v55, %v725_v51  ;;  %v758_v51 = vmov 128.0  }
  0x38   :  { %v669_v58 = vld [vmem:[%s1515_s0 + $0x278] sm:$0xff]  ;;  %v255_v2 = vmax.f32 %v222_v59, %v713_v56  ;;  %v291_v13 = vmax.f32 %v258_v10, %v732_v8  ;;  %754 = vrcp.f32 %v758_v51 }
  0x39   :  { %v729_v63 = vld [vmem:[%s1515_s0 + $0x458] sm:$0xff]  ;;  %v160_v4 = vmax.f32 %v127_v61, %v669_v58  ;;  %301 = vst.msk [vmem:[%s1516_s2 + $0x38] sm:$0xff] %vm293_vm0, %v284_v62  ;;  %741 = vmatmul.msk.f32.gmra.mxu1 %vm293_vm0, %v284_v62 }
  0x3a   :  { %v685_v1 = vld [vmem:[%s1515_s0 + $0x2f8] sm:$0xff]  ;;  %v288_v7 = vmax.f32 %v255_v2, %v729_v63  ;;  %308 = vst.msk [vmem:[%s1516_s2 + $0x70] sm:$0xff] %vm293_vm0, %v291_v13 }
  0x3b   :  { %v701_v6 = vld [vmem:[%s1515_s0 + $0x378] sm:$0xff]  ;;  %v193_v9 = vmax.f32 %v160_v4, %v685_v1 }
  0x3c   :  { %v717_v11 = vld [vmem:[%s1515_s0 + $0x3f8] sm:$0xff]  ;;  %305 = vst.msk [vmem:[%s1516_s2 + $0x58] sm:$0xff] %vm293_vm0, %v288_v7  ;;  %745 = vmatmul.msk.f32.gmra.mxu2 %vm293_vm0, %v288_v7 }
  0x3d   :  { %v226_v12 = vmax.f32 %v193_v9, %v701_v6  ;;  %v733_v14 = vld [vmem:[%s1515_s0 + $0x478] sm:$0xff] }
  0x3e   :  { %v755_v58 = vpop.eup %754 }
  0x3f   :  { %v259_v15 = vmax.f32 %v226_v12, %v717_v11  ;;  %748 = vmatmul.msk.f32.gmra.mxu3 %vm293_vm0, %v291_v13  ;;  %v462_v62 = vmul.f32 128.0, %v755_v58  ;;  %vm466_vm1 = vweird.f32 %v755_v58 }
  0x41   :  { %v292_v16 = vmax.f32 %v259_v15, %v733_v14  ;;  %v463_v2 = vsub.f32 1.0, %v462_v62 }
  0x43   :  { %309 = vst.msk [vmem:[%s1516_s2 + $0x78] sm:$0xff] %vm293_vm0, %v292_v16  ;;  %v464_v5 = vmul.f32 %v755_v58, %v463_v2 }
  0x45   :  { %v465_v8 = vadd.f32 %v755_v58, %v464_v5 }
  0x47   :  { %749 = vmatmul.msk.f32.gmra.mxu3 %vm293_vm0, %v292_v16  ;;  %v1340_v11 = vsel %vm466_vm1, %v755_v58, %v465_v8 }
  0x92   :  { %v1294_v17 = vpop.f32.mrf.mxu0 }
  0x93   :  { %v424_v24 = vsel %vm293_vm0, %v1294_v17, 0.0 }
  0x9a   :  { %v1296_v18 = vpop.f32.mrf.mxu1  ;;  %v379_v19 = vpop.f32.mrf.mxu0 }
  0x9b   :  { %v425_v23 = vsel %vm293_vm0, %v379_v19, 0.0  ;;  %v431_v32 = vsel %vm293_vm0, %v1296_v18, 0.0 }
  0x9c   :  { %v426_v26 = vadd.f32 %v425_v23, %v424_v24 }
  0xa2   :  { %v382_v20 = vpop.f32.mrf.mxu0  ;;  %v1300_v22 = vpop.f32.mrf.mxu1 }
  0xa3   :  { %v427_v25 = vsel %vm293_vm0, %v382_v20, 0.0  ;;  %v433_v35 = vsel %vm293_vm0, %v1300_v22, 0.0 }
  0xa4   :  { %v1298_v21 = vpop.f32.mrf.mxu2  ;;  %v428_v27 = vadd.f32 %v427_v25, %v426_v26 }
  0xa5   :  { %v439_v44 = vsel %vm293_vm0, %v1298_v21, 0.0 }
  0xaa   :  { %v385_v28 = vpop.f32.mrf.mxu0  ;;  %v394_v33 = vpop.f32.mrf.mxu1 }
  0xab   :  { %v429_v29 = vsel %vm293_vm0, %v385_v28, 0.0  ;;  %v435_v38 = vsel %vm293_vm0, %v394_v33, 0.0 }
  0xac   :  { %v430_v30 = vadd.f32 %v429_v29, %v428_v27  ;;  %v1307_v31 = vpop.f32.mrf.mxu2 }
  0xad   :  { %v441_v47 = vsel %vm293_vm0, %v1307_v31, 0.0 }
  0xae   :  { %v432_v34 = vadd.f32 %v431_v32, %v430_v30 }
  0xb0   :  { %v434_v37 = vadd.f32 %v433_v35, %v432_v34 }
  0xb2   :  { %v1313_v36 = vpop.f32.mrf.mxu3  ;;  %v436_v39 = vadd.f32 %v435_v38, %v434_v37 }
  0xb3   :  { %v447_v55 = vsel %vm293_vm0, %v1313_v36, 0.0 }
  0xb4   :  { %v1316_v41 = vpop.f32.mrf.mxu2 }
  0xb5   :  { %v443_v49 = vsel %vm293_vm0, %v1316_v41, 0.0 }
  0xb6   :  { %v397_v40 = vpop.f32.mrf.mxu1 }
  0xb7   :  { %v437_v42 = vsel %vm293_vm0, %v397_v40, 0.0 }
  0xb8   :  { %v438_v43 = vadd.f32 %v437_v42, %v436_v39 }
  0xba   :  { %v1321_v45 = vpop.f32.mrf.mxu3  ;;  %v440_v46 = vadd.f32 %v439_v44, %v438_v43 }
  0xbb   :  { %v449_v59 = vsel %vm293_vm0, %v1321_v45, 0.0 }
  0xbc   :  { %v442_v48 = vadd.f32 %v441_v47, %v440_v46 }
  0xbe   :  { %v444_v50 = vadd.f32 %v443_v49, %v442_v48 }
  0xbf   :  { %v409_v52 = vpop.f32.mrf.mxu2 }
  0xc0   :  { %v445_v53 = vsel %vm293_vm0, %v409_v52, 0.0 }
  0xc1   :  { %v446_v54 = vadd.f32 %v445_v53, %v444_v50 }
  0xc2   :  { %v1330_v56 = vpop.f32.mrf.mxu3 }
  0xc3   :  { %v448_v57 = vadd.f32 %v447_v55, %v446_v54  ;;  %v451_v61 = vsel %vm293_vm0, %v1330_v56, 0.0 }
  0xc5   :  { %v450_v60 = vadd.f32 %v449_v59, %v448_v57 }
  0xc7   :  { %v452_v63 = vadd.f32 %v451_v61, %v450_v60 }
  0xca   :  { %v1336_v0 = vpop.f32.mrf.mxu3 }
  0xcb   :  { %v453_v1 = vsel %vm293_vm0, %v1336_v0, 0.0 }
  0xcc   :  { %v454_v3 = vadd.f32 %v453_v1, %v452_v63 }
  0xce   :  { %v455_v4 = vrot.slane %v454_v3, 4 }
  0xd0   :  { %v456_v6 = vadd.f32 %v455_v4, %v454_v3 }
  0xd2   :  { %v457_v7 = vrot.slane %v456_v6, 2 }
  0xd4   :  { %v458_v9 = vadd.f32 %v457_v7, %v456_v6 }
  0xd6   :  { %v459_v10 = vrot.slane %v458_v9, 1 }
  0xd8   :  { %v460_v12 = vadd.f32 %v459_v10, %v458_v9 }
  0xda   :  { %v468_v13 = vmul.f32 %v1340_v11, %v460_v12 }
  0xdc   :  { %v1344_v14 = vsub.f32 %v1294_v17, %v468_v13  ;;  %v1346_v15 = vsub.f32 %v379_v19, %v468_v13  ;;  %v1348_v16 = vsub.f32 %v382_v20, %v468_v13  ;;  %v1350_v23 = vsub.f32 %v385_v28, %v468_v13 }
  0xdd   :  { %v1357_v26 = vsub.f32 %v1296_v18, %v468_v13  ;;  %v1362_v17 = vsub.f32 %v1300_v22, %v468_v13  ;;  %v1368_v30 = vsub.f32 %v394_v33, %v468_v13  ;;  %v1373_v35 = vsub.f32 %v397_v40, %v468_v13 }
  0xde   :  { %v485_v24 = vmul.f32 %v1344_v14, %v1344_v14  ;;  %v486_v25 = vmul.f32 %v1346_v15, %v1346_v15  ;;  %v487_v27 = vmul.f32 %v1348_v16, %v1348_v16  ;;  %v488_v19 = vmul.f32 %v1350_v23, %v1350_v23 }
  0xdf   :  { %v489_v18 = vmul.f32 %v1357_v26, %v1357_v26  ;;  %v490_v22 = vmul.f32 %v1362_v17, %v1362_v17  ;;  %v1379_v39 = vsub.f32 %v1298_v21, %v468_v13  ;;  %v491_v33 = vmul.f32 %v1368_v30, %v1368_v30 }
  0xe0   :  { %v501_v20 = vsel %vm293_vm0, %v485_v24, 0.0  ;;  %v502_v28 = vsel %vm293_vm0, %v486_v25, 0.0  ;;  %v504_v32 = vsel %vm293_vm0, %v487_v27, 0.0  ;;  %v506_v37 = vsel %vm293_vm0, %v488_v19, 0.0 }
  0xe1   :  { %v503_v29 = vadd.f32 %v502_v28, %v501_v20  ;;  %v508_v42 = vsel %vm293_vm0, %v489_v18, 0.0  ;;  %v1385_v44 = vsub.f32 %v1307_v31, %v468_v13  ;;  %v492_v40 = vmul.f32 %v1373_v35, %v1373_v35 }
  0xe2   :  { %v510_v46 = vsel %vm293_vm0, %v490_v22, 0.0  ;;  %v1391_v48 = vsub.f32 %v1316_v41, %v468_v13  ;;  %v493_v21 = vmul.f32 %v1379_v39, %v1379_v39  ;;  %v512_v49 = vsel %vm293_vm0, %v491_v33, 0.0 }
  0xe3   :  { %v505_v34 = vadd.f32 %v504_v32, %v503_v29  ;;  %v1396_v51 = vsub.f32 %v409_v52, %v468_v13  ;;  %v494_v31 = vmul.f32 %v1385_v44, %v1385_v44  ;;  %v514_v53 = vsel %vm293_vm0, %v492_v40, 0.0 }
  0xe4   :  { %v1402_v55 = vsub.f32 %v1313_v36, %v468_v13  ;;  %v495_v41 = vmul.f32 %v1391_v48, %v1391_v48  ;;  %v516_v57 = vsel %vm293_vm0, %v493_v21, 0.0  ;;  %v1408_v59 = vsub.f32 %v1321_v45, %v468_v13 }
  0xe5   :  { %v507_v38 = vadd.f32 %v506_v37, %v505_v34  ;;  %v496_v52 = vmul.f32 %v1396_v51, %v1396_v51  ;;  %v518_v60 = vsel %vm293_vm0, %v494_v31, 0.0  ;;  %v1414_v62 = vsub.f32 %v1330_v56, %v468_v13 }
  0xe6   :  { %v497_v36 = vmul.f32 %v1402_v55, %v1402_v55  ;;  %v520_v63 = vsel %vm293_vm0, %v495_v41, 0.0  ;;  %v1420_v2 = vsub.f32 %v1336_v0, %v468_v13  ;;  %v498_v45 = vmul.f32 %v1408_v59, %v1408_v59 }
  0xe7   :  { %v509_v43 = vadd.f32 %v508_v42, %v507_v38  ;;  %v522_v3 = vsel %vm293_vm0, %v496_v52, 0.0  ;;  %v499_v5 = vmul.f32 %v1414_v62, %v1414_v62 }
  0xe8   :  { %v524_v56 = vsel %vm293_vm0, %v497_v36, 0.0  ;;  %v500_v7 = vmul.f32 %v1420_v2, %v1420_v2  ;;  %v526_v8 = vsel %vm293_vm0, %v498_v45, 0.0 }
  0xe9   :  { %v511_v47 = vadd.f32 %v510_v46, %v509_v43  ;;  %v528_v0 = vsel %vm293_vm0, %v499_v5, 0.0 }
  0xea   :  { %v530_v12 = vsel %vm293_vm0, %v500_v7, 0.0 }
  0xeb   :  { %v513_v50 = vadd.f32 %v512_v49, %v511_v47 }
  0xed   :  { %v515_v54 = vadd.f32 %v514_v53, %v513_v50 }
  0xef   :  { %v517_v58 = vadd.f32 %v516_v57, %v515_v54 }
  0xf1   :  { %v519_v61 = vadd.f32 %v518_v60, %v517_v58 }
  0xf3   :  { %v521_v1 = vadd.f32 %v520_v63, %v519_v61 }
  0xf5   :  { %v523_v4 = vadd.f32 %v522_v3, %v521_v1 }
  0xf7   :  { %v525_v6 = vadd.f32 %v524_v56, %v523_v4 }
  0xf9   :  { %v527_v9 = vadd.f32 %v526_v8, %v525_v6 }
  0xfb   :  { %v529_v10 = vadd.f32 %v528_v0, %v527_v9 }
  0xfd   :  { %v531_v13 = vadd.f32 %v530_v12, %v529_v10 }
  0xff   :  { %v532_v24 = vrot.slane %v531_v13, 4 }
 0x101   :  { %v533_v25 = vadd.f32 %v532_v24, %v531_v13 }
 0x103   :  { %v534_v27 = vrot.slane %v533_v25, 2 }
 0x105   :  { %v535_v19 = vadd.f32 %v534_v27, %v533_v25 }
 0x107   :  { %v536_v20 = vrot.slane %v535_v19, 1 }
 0x109   :  { %v537_v28 = vadd.f32 %v536_v20, %v535_v19 }
 0x10b   :  { %v538_v29 = vmul.f32 %v537_v28, %v1340_v11 }
 0x10d   :  { %v539_v18 = vadd.f32 1e-05, %v538_v29 }
 0x10f   :  { %756 = vrsqrt.f32 %v539_v18  ;;  %vm546_vm3 = vweird.f32 %v539_v18 }
 0x115   :  { %v757_v32 = vpop.eup %756 }
 0x116   :  { %v541_v34 = vmul.f32 %v757_v32, %v539_v18  ;;  %vm547_vm2 = vweird.f32 %v757_v32 }
 0x117   :  { %vm548_vm4 = vmor %vm546_vm3, %vm547_vm2 }
 0x118   :  { %v542_v22 = vmul.f32 %v757_v32, %v541_v34 }
 0x11a   :  { %v543_v37 = vmul.f32 0.5, %v542_v22 }
 0x11c   :  { %v544_v38 = vsub.f32 1.5, %v543_v37 }
 0x11e   :  { %v545_v33 = vmul.f32 %v757_v32, %v544_v38 }
 0x120   :  { %v549_v42 = vsel %vm548_vm4, %v757_v32, %v545_v33 }
 0x121   :  { %v550_v43 = vmul.f32 %v549_v42, %v1344_v14  ;;  %v551_v40 = vmul.f32 %v549_v42, %v1346_v15  ;;  %v552_v46 = vmul.f32 %v549_v42, %v1348_v16  ;;  %v553_v11 = vmul.f32 %v549_v42, %v1350_v23 }
 0x122   :  { %v554_v47 = vmul.f32 %v549_v42, %v1357_v26  ;;  %v555_v21 = vmul.f32 %v549_v42, %v1362_v17  ;;  %v556_v49 = vmul.f32 %v549_v42, %v1368_v30  ;;  %v557_v54 = vmul.f32 %v549_v42, %v1373_v35 }
 0x123   :  { %v566_v50 = vmax.f32 %v550_v43, 0.0  ;;  %v567_v31 = vmax.f32 %v551_v40, 0.0  ;;  %v568_v53 = vmax.f32 %v552_v46, 0.0  ;;  %v569_v41 = vmax.f32 %v553_v11, 0.0 }
 0x124   :  { %v558_v14 = vmul.f32 %v549_v42, %v1379_v39  ;;  %v570_v57 = vmax.f32 %v554_v47, 0.0  ;;  %v559_v15 = vmul.f32 %v549_v42, %v1385_v44  ;;  %v571_v16 = vmax.f32 %v555_v21, 0.0 }
 0x125   :  { %582 = vst.msk [vmem:[%s1517_s3] sm:$0xff] %vm293_vm0, %v566_v50  ;;  %v560_v23 = vmul.f32 %v549_v42, %v1391_v48  ;;  %v572_v26 = vmax.f32 %v556_v49, 0.0  ;;  %v561_v17 = vmul.f32 %v549_v42, %v1396_v51  ;;  %v573_v30 = vmax.f32 %v557_v54, 0.0 }
 0x126   :  { %583 = vst.msk [vmem:[%s1517_s3 + $0x8] sm:$0xff] %vm293_vm0, %v567_v31  ;;  %v562_v35 = vmul.f32 %v549_v42, %v1402_v55  ;;  %v574_v39 = vmax.f32 %v558_v14, 0.0  ;;  %v563_v44 = vmul.f32 %v549_v42, %v1408_v59  ;;  %v575_v48 = vmax.f32 %v559_v15, 0.0 }
 0x127   :  { %584 = vst.msk [vmem:[%s1517_s3 + $0x10] sm:$0xff] %vm293_vm0, %v568_v53  ;;  %v564_v51 = vmul.f32 %v549_v42, %v1414_v62  ;;  %v576_v58 = vmax.f32 %v560_v23, 0.0  ;;  %v565_v55 = vmul.f32 %v549_v42, %v1420_v2  ;;  %v577_v52 = vmax.f32 %v561_v17, 0.0 }
 0x128   :  { %585 = vst.msk [vmem:[%s1517_s3 + $0x18] sm:$0xff] %vm293_vm0, %v569_v41  ;;  %v578_v59 = vmax.f32 %v562_v35, 0.0  ;;  %v579_v60 = vmax.f32 %v563_v44, 0.0 }
 0x129   :  { %586 = vst.msk [vmem:[%s1517_s3 + $0x20] sm:$0xff] %vm293_vm0, %v570_v57  ;;  %v580_v61 = vmax.f32 %v564_v51, 0.0  ;;  %v581_v62 = vmax.f32 %v565_v55, 0.0 }
 0x12a   :  { %587 = vst.msk [vmem:[%s1517_s3 + $0x28] sm:$0xff] %vm293_vm0, %v571_v16 }
 0x12b   :  { %588 = vst.msk [vmem:[%s1517_s3 + $0x30] sm:$0xff] %vm293_vm0, %v572_v26 }
 0x12c   :  { %589 = vst.msk [vmem:[%s1517_s3 + $0x38] sm:$0xff] %vm293_vm0, %v573_v30 }
 0x12d   :  { %590 = vst.msk [vmem:[%s1517_s3 + $0x40] sm:$0xff] %vm293_vm0, %v574_v39 }
 0x12e   :  { %591 = vst.msk [vmem:[%s1517_s3 + $0x48] sm:$0xff] %vm293_vm0, %v575_v48 }
 0x12f   :  { %592 = vst.msk [vmem:[%s1517_s3 + $0x50] sm:$0xff] %vm293_vm0, %v576_v58 }
 0x130   :  { %593 = vst.msk [vmem:[%s1517_s3 + $0x58] sm:$0xff] %vm293_vm0, %v577_v52 }
 0x131   :  { %594 = vst.msk [vmem:[%s1517_s3 + $0x60] sm:$0xff] %vm293_vm0, %v578_v59 }
 0x132   :  { %595 = vst.msk [vmem:[%s1517_s3 + $0x68] sm:$0xff] %vm293_vm0, %v579_v60 }
 0x133   :  { %596 = vst.msk [vmem:[%s1517_s3 + $0x70] sm:$0xff] %vm293_vm0, %v580_v61 }
 0x134   :  { %597 = vst.msk [vmem:[%s1517_s3 + $0x78] sm:$0xff] %vm293_vm0, %v581_v62 }

// kernel: strider_forward.6
= control target key start
LH: loop header
LB: loop body
LE: loop exit
PB: predicated region body
PF: predicated region fallthrough
CT: control target
= control target key end

     0   :  { %vm50_vm0 = vcmask 588800   ;;  %vm164_vm1 = vcmask 64512   ;;  %vm437_vm3 = vcmask 130048   ;;  %s2331_s1 = inlined_call_operand.vmem [shape: f32[72,8], index: 1, kind: input, shape index: {}]   ;;  %s2332_s0 = inlined_call_operand.vmem [shape: f32[128,72], index: 0, kind: input, shape index: {}]   ;;  %s2333_s4 = inlined_call_operand.vmem [shape: f32[8,16], index: 4, kind: input, shape index: {}]   ;;  %s2334_s3 = inlined_call_operand.vmem [shape: f32[128,8], index: 3, kind: input, shape index: {}]   ;;  %s2335_s2 = inlined_call_operand.vmem [shape: f32[8,16], index: 2, kind: input, shape index: {}]   ;;  %s2336_s5 = inlined_call_operand.vmem [shape: f32[16,8], index: 5, kind: input, shape index: {}]   ;;  %s2337_s6 = inlined_call_operand.vmem [shape: f32[128,16], index: 6, kind: output, shape index: {0}]   ;;  %s2338_s7 = inlined_call_operand.vmem [shape: f32[128,8], index: 7, kind: output, shape index: {1}]  }
   0x1   :  { %v49_v0 = vld [vmem:[%s2331_s1 + $0x40] sm:$0xff]  ;;  %v48_v1 = vld [vmem:[%s2331_s1 + $0x38] sm:$0xff]  ;;  %v47_v2 = vld [vmem:[%s2331_s1 + $0x30] sm:$0xff] }
   0x2   :  { %106 = vmatpush.msra.mxu0 %v49_v0  ;;  %v46_v3 = vld [vmem:[%s2331_s1 + $0x28] sm:$0xff]  ;;  %v45_v4 = vld [vmem:[%s2331_s1 + $0x20] sm:$0xff]  ;;  %v44_v5 = vld [vmem:[%s2331_s1 + $0x18] sm:$0xff] }
   0x3   :  { %v43_v6 = vld [vmem:[%s2331_s1 + $0x10] sm:$0xff]  ;;  %v42_v7 = vld [vmem:[%s2331_s1 + $0x8] sm:$0xff]  ;;  %v41_v8 = vld [vmem:[%s2331_s1] sm:$0xff] }
   0x4   :  { %107 = vmatpush.msra.mxu0 %v48_v1  ;;  %v25_v9 = vld [vmem:[%s2332_s0] sm:$0xff]  ;;  %v26_v10 = vld [vmem:[%s2332_s0 + $0x8] sm:$0xff]  ;;  %v27_v11 = vld [vmem:[%s2332_s0 + $0x10] sm:$0xff] }
   0x5   :  { %v28_v12 = vld [vmem:[%s2332_s0 + $0x18] sm:$0xff]  ;;  %v29_v13 = vld [vmem:[%s2332_s0 + $0x20] sm:$0xff]  ;;  %v30_v14 = vld [vmem:[%s2332_s0 + $0x28] sm:$0xff] }
   0x6   :  { %108 = vmatpush.msra.mxu0 %v47_v2  ;;  %v31_v15 = vld [vmem:[%s2332_s0 + $0x30] sm:$0xff]  ;;  %v32_v16 = vld [vmem:[%s2332_s0 + $0x38] sm:$0xff]  ;;  %v33_v17 = vld [vmem:[%s2332_s0 + $0x40] sm:$0xff] }
   0x7   :  { %v34_v18 = vld [vmem:[%s2332_s0 + $0x48] sm:$0xff]  ;;  %v35_v19 = vld [vmem:[%s2332_s0 + $0x50] sm:$0xff]  ;;  %v36_v20 = vld [vmem:[%s2332_s0 + $0x58] sm:$0xff] }
   0x8   :  { %109 = vmatpush.msra.mxu0 %v46_v3  ;;  %v589_v21 = vld [vmem:[%s2333_s4] sm:$0xff]  ;;  %v38_v24 = vld [vmem:[%s2332_s0 + $0x68] sm:$0xff]  ;;  %v39_v26 = vld [vmem:[%s2332_s0 + $0x70] sm:$0xff] }
   0x9   :  { %v37_v22 = vld [vmem:[%s2332_s0 + $0x60] sm:$0xff]  ;;  %653 = vmatpush.msra.mxu2 %v589_v21  ;;  %v574_v25 = vld [vmem:[%s2334_s3 + $0x8] sm:$0xff]  ;;  %v575_v27 = vld [vmem:[%s2334_s3 + $0x10] sm:$0xff] }
   0xa   :  { %110 = vmatpush.msra.mxu0 %v45_v4  ;;  %v573_v23 = vld [vmem:[%s2334_s3] sm:$0xff]  ;;  %v40_v28 = vld [vmem:[%s2332_s0 + $0x78] sm:$0xff]  ;;  %v578_v33 = vld [vmem:[%s2334_s3 + $0x28] sm:$0xff] }
   0xb   :  { %1208 = vmatmul.msk.f32.vlgmr.msra.gmra.mxu2 %vm164_vm1, %v573_v23  ;;  %v576_v29 = vld [vmem:[%s2334_s3 + $0x18] sm:$0xff]  ;;  %v577_v31 = vld [vmem:[%s2334_s3 + $0x20] sm:$0xff]  ;;  %v579_v35 = vld [vmem:[%s2334_s3 + $0x30] sm:$0xff] }
   0xc   :  { %111 = vmatpush.msra.mxu0 %v44_v5  ;;  %v580_v37 = vld [vmem:[%s2334_s3 + $0x38] sm:$0xff]  ;;  %v581_v39 = vld [vmem:[%s2334_s3 + $0x40] sm:$0xff]  ;;  %v582_v41 = vld [vmem:[%s2334_s3 + $0x48] sm:$0xff] }
   0xd   :  { %v583_v43 = vld [vmem:[%s2334_s3 + $0x50] sm:$0xff]  ;;  %v584_v45 = vld [vmem:[%s2334_s3 + $0x58] sm:$0xff]  ;;  %v585_v47 = vld [vmem:[%s2334_s3 + $0x60] sm:$0xff] }
   0xe   :  { %112 = vmatpush.msra.mxu0 %v43_v6  ;;  %v586_v49 = vld [vmem:[%s2334_s3 + $0x68] sm:$0xff]  ;;  %v587_v51 = vld [vmem:[%s2334_s3 + $0x70] sm:$0xff]  ;;  %v588_v60 = vld [vmem:[%s2334_s3 + $0x78] sm:$0xff] }
  0x10   :  { %113 = vmatpush.msra.mxu0 %v42_v7 }
  0x12   :  { %114 = vmatpush.msra.mxu0 %v41_v8 }
  0x13   :  { %1176 = vmatmul.msk.f32.vlgmr.msra.gmra.mxu0 %vm50_vm0, %v25_v9  ;;  %1209 = vmatmul.msk.f32.gmra.mxu2 %vm164_vm1, %v574_v25 }
  0x1b   :  { %1177 = vmatmul.msk.f32.gmra.mxu0 %vm50_vm0, %v26_v10  ;;  %1210 = vmatmul.msk.f32.gmra.mxu2 %vm164_vm1, %v575_v27  ;;  %v1251_v10 = vmov 128.0  }
  0x1c   :  { %1241 = vrcp.f32 %v1251_v10 }
  0x23   :  { %1178 = vmatmul.msk.f32.gmra.mxu0 %vm50_vm0, %v27_v11  ;;  %1211 = vmatmul.msk.f32.gmra.mxu2 %vm164_vm1, %v576_v29 }
  0x2b   :  { %1179 = vmatmul.msk.f32.gmra.mxu0 %vm50_vm0, %v28_v12  ;;  %1212 = vmatmul.msk.f32.gmra.mxu2 %vm164_vm1, %v577_v31 }
  0x33   :  { %1180 = vmatmul.msk.f32.gmra.mxu0 %vm50_vm0, %v29_v13  ;;  %1213 = vmatmul.msk.f32.gmra.mxu2 %vm164_vm1, %v578_v33 }
  0x3b   :  { %1181 = vmatmul.msk.f32.gmra.mxu0 %vm50_vm0, %v30_v14  ;;  %1214 = vmatmul.msk.f32.gmra.mxu2 %vm164_vm1, %v579_v35 }
  0x43   :  { %1182 = vmatmul.msk.f32.gmra.mxu0 %vm50_vm0, %v31_v15  ;;  %1215 = vmatmul.msk.f32.gmra.mxu2 %vm164_vm1, %v580_v37 }
  0x4b   :  { %1183 = vmatmul.msk.f32.gmra.mxu0 %vm50_vm0, %v32_v16  ;;  %1216 = vmatmul.msk.f32.gmra.mxu2 %vm164_vm1, %v581_v39 }
  0x53   :  { %1184 = vmatmul.msk.f32.gmra.mxu0 %vm50_vm0, %v33_v17  ;;  %1217 = vmatmul.msk.f32.gmra.mxu2 %vm164_vm1, %v582_v41 }
  0x5b   :  { %1185 = vmatmul.msk.f32.gmra.mxu0 %vm50_vm0, %v34_v18  ;;  %1218 = vmatmul.msk.f32.gmra.mxu2 %vm164_vm1, %v583_v43  ;;  %v1242_v18 = vpop.eup %1241 }
  0x5c   :  { %vm207_vm2 = vweird.f32 %v1242_v18 }
  0x63   :  { %1186 = vmatmul.msk.f32.gmra.mxu0 %vm50_vm0, %v35_v19  ;;  %1219 = vmatmul.msk.f32.gmra.mxu2 %vm164_vm1, %v584_v45 }
  0x6b   :  { %1187 = vmatmul.msk.f32.gmra.mxu0 %vm50_vm0, %v36_v20  ;;  %1220 = vmatmul.msk.f32.gmra.mxu2 %vm164_vm1, %v585_v47 }
  0x73   :  { %1188 = vmatmul.msk.f32.gmra.mxu0 %vm50_vm0, %v37_v22  ;;  %1221 = vmatmul.msk.f32.gmra.mxu2 %vm164_vm1, %v586_v49 }
  0x7b   :  { %1189 = vmatmul.msk.f32.gmra.mxu0 %vm50_vm0, %v38_v24  ;;  %1222 = vmatmul.msk.f32.gmra.mxu2 %vm164_vm1, %v587_v51  ;;  %v203_v24 = vmul.f32 128.0, %v1242_v18 }
  0x7d   :  { %v204_v29 = vsub.f32 1.0, %v203_v24 }
  0x7f   :  { %v205_v37 = vmul.f32 %v1242_v18, %v204_v29 }
  0x81   :  { %v206_v43 = vadd.f32 %v1242_v18, %v205_v37 }
  0x83   :  { %1190 = vmatmul.msk.f32.gmra.mxu0 %vm50_vm0, %v39_v26  ;;  %1223 = vmatmul.msk.f32.gmra.mxu2 %vm164_vm1, %v588_v60  ;;  %v1522_v51 = vsel %vm207_vm2, %v1242_v18, %v206_v43 }
  0x8b   :  { %1191 = vmatmul.msk.f32.gmra.mxu0 %vm50_vm0, %v40_v28 }
  0x8e   :  { %v1498_v11 = vpop.f32.mrf.mxu2 }
  0x90   :  { %v1402_v30 = vpop.f32.mrf.mxu0 }
  0x91   :  { %v165_v54 = vsel %vm164_vm1, %v1402_v30, 0.0 }
  0x96   :  { %v1510_v22 = vpop.f32.mrf.mxu2 }
  0x98   :  { %v1408_v32 = vpop.f32.mrf.mxu0 }
  0x99   :  { %v166_v53 = vsel %vm164_vm1, %v1408_v32, 0.0 }
  0x9a   :  { %v167_v56 = vadd.f32 %v166_v53, %v165_v54 }
  0x9e   :  { %v1518_v35 = vpop.f32.mrf.mxu2 }
  0xa0   :  { %v1414_v34 = vpop.f32.mrf.mxu0 }
  0xa1   :  { %v168_v55 = vsel %vm164_vm1, %v1414_v34, 0.0 }
  0xa2   :  { %v169_v58 = vadd.f32 %v168_v55, %v167_v56 }
  0xa6   :  { %v1520_v49 = vpop.f32.mrf.mxu2 }
  0xa8   :  { %v1420_v36 = vpop.f32.mrf.mxu0 }
  0xa9   :  { %v170_v57 = vsel %vm164_vm1, %v1420_v36, 0.0 }
  0xaa   :  { %v171_v62 = vadd.f32 %v170_v57, %v169_v58 }
  0xae   :  { %v1534_v58 = vpop.f32.mrf.mxu2 }
  0xb0   :  { %v1426_v38 = vpop.f32.mrf.mxu0 }
  0xb1   :  { %v172_v61 = vsel %vm164_vm1, %v1426_v38, 0.0 }
  0xb2   :  { %v173_v0 = vadd.f32 %v172_v61, %v171_v62 }
  0xb8   :  { %v1432_v40 = vpop.f32.mrf.mxu0 }
  0xb9   :  { %v174_v63 = vsel %vm164_vm1, %v1432_v40, 0.0 }
  0xba   :  { %v175_v2 = vadd.f32 %v174_v63, %v173_v0 }
  0xc0   :  { %v1438_v42 = vpop.f32.mrf.mxu0 }
  0xc1   :  { %v176_v1 = vsel %vm164_vm1, %v1438_v42, 0.0 }
  0xc2   :  { %v177_v4 = vadd.f32 %v176_v1, %v175_v2 }
  0xc8   :  { %v1444_v44 = vpop.f32.mrf.mxu0 }
  0xc9   :  { %v178_v3 = vsel %vm164_vm1, %v1444_v44, 0.0 }
  0xca   :  { %v179_v7 = vadd.f32 %v178_v3, %v177_v4  ;;  %v1561_v4 = vpop.f32.mrf.mxu2 }
  0xd0   :  { %v1450_v46 = vpop.f32.mrf.mxu0 }
  0xd1   :  { %v180_v6 = vsel %vm164_vm1, %v1450_v46, 0.0 }
  0xd2   :  { %v181_v9 = vadd.f32 %v180_v6, %v179_v7 }
  0xd8   :  { %v1456_v48 = vpop.f32.mrf.mxu0 }
  0xd9   :  { %v182_v8 = vsel %vm164_vm1, %v1456_v48, 0.0 }
  0xda   :  { %v183_v13 = vadd.f32 %v182_v8, %v181_v9 }
  0xe0   :  { %v1462_v50 = vpop.f32.mrf.mxu0 }
  0xe1   :  { %v184_v12 = vsel %vm164_vm1, %v1462_v50, 0.0 }
  0xe2   :  { %v185_v15 = vadd.f32 %v184_v12, %v183_v13 }
  0xe8   :  { %v1468_v52 = vpop.f32.mrf.mxu0 }
  0xe9   :  { %v186_v14 = vsel %vm164_vm1, %v1468_v52, 0.0 }
  0xea   :  { %v187_v19 = vadd.f32 %v186_v14, %v185_v15 }
  0xf0   :  { %v1478_v59 = vpop.f32.mrf.mxu0 }
  0xf1   :  { %v188_v17 = vsel %vm164_vm1, %v1478_v59, 0.0 }
  0xf2   :  { %v189_v21 = vadd.f32 %v188_v17, %v187_v19 }
  0xf8   :  { %v1492_v5 = vpop.f32.mrf.mxu0 }
  0xf9   :  { %v190_v20 = vsel %vm164_vm1, %v1492_v5, 0.0 }
  0xfa   :  { %v191_v25 = vadd.f32 %v190_v20, %v189_v21  ;;  %v1587_v20 = vpop.f32.mrf.mxu2 }
 0x100   :  { %v1504_v16 = vpop.f32.mrf.mxu0 }
 0x101   :  { %v192_v23 = vsel %vm164_vm1, %v1504_v16, 0.0 }
 0x102   :  { %v193_v26 = vadd.f32 %v192_v23, %v191_v25  ;;  %v1613_v43 = vpop.f32.mrf.mxu2 }
 0x108   :  { %v1514_v27 = vpop.f32.mrf.mxu0 }
 0x109   :  { %v194_v28 = vsel %vm164_vm1, %v1514_v27, 0.0 }
 0x10a   :  { %v195_v31 = vadd.f32 %v194_v28, %v193_v26 }
 0x10c   :  { %v196_v33 = vrot.slane %v195_v31, 4 }
 0x10e   :  { %v197_v39 = vadd.f32 %v196_v33, %v195_v31 }
 0x110   :  { %v198_v41 = vrot.slane %v197_v39, 2 }
 0x112   :  { %v199_v45 = vadd.f32 %v198_v41, %v197_v39 }
 0x114   :  { %v200_v47 = vrot.slane %v199_v45, 1 }
 0x116   :  { %v201_v53 = vadd.f32 %v200_v47, %v199_v45 }
 0x118   :  { %v209_v54 = vmul.f32 %v1522_v51, %v201_v53 }
 0x11a   :  { %v1526_v55 = vsub.f32 %v1402_v30, %v209_v54  ;;  %v1529_v56 = vsub.f32 %v1408_v32, %v209_v54  ;;  %v1532_v57 = vsub.f32 %v1414_v34, %v209_v54  ;;  %v1537_v60 = vsub.f32 %v1420_v36, %v209_v54 }
 0x11b   :  { %v1544_v30 = vsub.f32 %v1426_v38, %v209_v54  ;;  %v1549_v34 = vsub.f32 %v1432_v40, %v209_v54  ;;  %v1556_v2 = vsub.f32 %v1438_v42, %v209_v54  ;;  %v1564_v6 = vsub.f32 %v1444_v44, %v209_v54 }
 0x11c   :  { %v226_v61 = vmul.f32 %v1526_v55, %v1526_v55  ;;  %v227_v62 = vmul.f32 %v1529_v56, %v1529_v56  ;;  %v228_v32 = vmul.f32 %v1532_v57, %v1532_v57  ;;  %v229_v63 = vmul.f32 %v1537_v60, %v1537_v60 }
 0x11d   :  { %v230_v38 = vmul.f32 %v1544_v30, %v1544_v30  ;;  %v231_v7 = vmul.f32 %v1549_v34, %v1549_v34  ;;  %v1570_v42 = vsub.f32 %v1450_v46, %v209_v54  ;;  %v232_v10 = vmul.f32 %v1556_v2, %v1556_v2 }
 0x11e   :  { %v242_v36 = vsel %vm164_vm1, %v226_v61, 0.0  ;;  %v243_v0 = vsel %vm164_vm1, %v227_v62, 0.0  ;;  %v245_v3 = vsel %vm164_vm1, %v228_v32, 0.0  ;;  %v247_v8 = vsel %vm164_vm1, %v229_v63, 0.0 }
 0x11f   :  { %v244_v1 = vadd.f32 %v243_v0, %v242_v36  ;;  %v249_v12 = vsel %vm164_vm1, %v230_v38, 0.0  ;;  %v1576_v14 = vsub.f32 %v1456_v48, %v209_v54  ;;  %v233_v44 = vmul.f32 %v1564_v6, %v1564_v6 }
 0x120   :  { %v251_v15 = vsel %vm164_vm1, %v231_v7, 0.0  ;;  %v1582_v18 = vsub.f32 %v1462_v50, %v209_v54  ;;  %v234_v46 = vmul.f32 %v1570_v42, %v1570_v42  ;;  %v253_v19 = vsel %vm164_vm1, %v232_v10, 0.0  ;;  %v323_v10 = vld [vmem:[%s2335_s2] sm:$0xff] }
 0x121   :  { %v246_v40 = vadd.f32 %v245_v3, %v244_v1  ;;  %v1590_v48 = vsub.f32 %v1468_v52, %v209_v54  ;;  %v235_v23 = vmul.f32 %v1576_v14, %v1576_v14  ;;  %v255_v24 = vsel %vm164_vm1, %v233_v44, 0.0  ;;  %387 = vmatpush.msra.mxu1 %v323_v10 }
 0x122   :  { %v1596_v50 = vsub.f32 %v1478_v59, %v209_v54  ;;  %v236_v26 = vmul.f32 %v1582_v18, %v1582_v18  ;;  %v257_v28 = vsel %vm164_vm1, %v234_v46, 0.0  ;;  %v1602_v31 = vsub.f32 %v1492_v5, %v209_v54 }
 0x123   :  { %v248_v9 = vadd.f32 %v247_v8, %v246_v40  ;;  %v237_v52 = vmul.f32 %v1590_v48, %v1590_v48  ;;  %v259_v33 = vsel %vm164_vm1, %v235_v23, 0.0  ;;  %v1608_v39 = vsub.f32 %v1504_v16, %v209_v54 }
 0x124   :  { %v238_v59 = vmul.f32 %v1596_v50, %v1596_v50  ;;  %v261_v41 = vsel %vm164_vm1, %v236_v26, 0.0  ;;  %v1616_v5 = vsub.f32 %v1514_v27, %v209_v54  ;;  %v239_v47 = vmul.f32 %v1602_v31, %v1602_v31  ;;  %v1628_v54 = vpop.f32.mrf.mxu2 }
 0x125   :  { %v250_v13 = vadd.f32 %v249_v12, %v248_v9  ;;  %v263_v53 = vsel %vm164_vm1, %v237_v52, 0.0  ;;  %v240_v16 = vmul.f32 %v1608_v39, %v1608_v39  ;;  %v703_v12 = vsel %vm437_vm3, %v1498_v11, 0.0 }
 0x126   :  { %v265_v62 = vsel %vm164_vm1, %v238_v59, 0.0  ;;  %v241_v63 = vmul.f32 %v1616_v5, %v1616_v5  ;;  %v267_v36 = vsel %vm164_vm1, %v239_v47, 0.0  ;;  %v706_v44 = vsel %vm437_vm3, %v1518_v35, 0.0 }
 0x127   :  { %v252_v17 = vadd.f32 %v251_v15, %v250_v13  ;;  %v269_v27 = vsel %vm164_vm1, %v240_v16, 0.0  ;;  %v704_v13 = vsel %vm437_vm3, %v1510_v22, 0.0  ;;  %v708_v46 = vsel %vm437_vm3, %v1520_v49, 0.0 }
 0x128   :  { %v271_v38 = vsel %vm164_vm1, %v241_v63, 0.0  ;;  %v710_v23 = vsel %vm437_vm3, %v1534_v58, 0.0  ;;  %v712_v26 = vsel %vm437_vm3, %v1561_v4, 0.0  ;;  %v714_v59 = vsel %vm437_vm3, %v1587_v20, 0.0 }
 0x129   :  { %v254_v21 = vadd.f32 %v253_v19, %v252_v17  ;;  %v705_v17 = vadd.f32 %v704_v13, %v703_v12  ;;  %v718_v16 = vsel %vm437_vm3, %v1628_v54, 0.0 }
 0x12b   :  { %v256_v25 = vadd.f32 %v255_v24, %v254_v21  ;;  %v707_v21 = vadd.f32 %v706_v44, %v705_v17 }
 0x12c   :  { %v1631_v8 = vpop.f32.mrf.mxu2 }
 0x12d   :  { %v258_v29 = vadd.f32 %v257_v28, %v256_v25  ;;  %v709_v25 = vadd.f32 %v708_v46, %v707_v21 }
 0x12f   :  { %v260_v37 = vadd.f32 %v259_v33, %v258_v29  ;;  %v711_v52 = vadd.f32 %v710_v23, %v709_v25 }
 0x131   :  { %v262_v45 = vadd.f32 %v261_v41, %v260_v37  ;;  %v713_v37 = vadd.f32 %v712_v26, %v711_v52 }
 0x133   :  { %v264_v61 = vadd.f32 %v263_v53, %v262_v45  ;;  %v715_v41 = vadd.f32 %v714_v59, %v713_v37  ;;  %v716_v45 = vsel %vm437_vm3, %v1613_v43, 0.0 }
 0x134   :  { %v1648_v28 = vpop.f32.mrf.mxu2 }
 0x135   :  { %v266_v32 = vadd.f32 %v265_v62, %v264_v61  ;;  %v717_v53 = vadd.f32 %v716_v45, %v715_v41 }
 0x137   :  { %v268_v0 = vadd.f32 %v267_v36, %v266_v32  ;;  %v719_v63 = vadd.f32 %v718_v16, %v717_v53  ;;  %v720_v36 = vsel %vm437_vm3, %v1631_v8, 0.0 }
 0x139   :  { %v270_v1 = vadd.f32 %v269_v27, %v268_v0 }
 0x13b   :  { %v272_v3 = vadd.f32 %v271_v38, %v270_v1  ;;  %v721_v38 = vadd.f32 %v720_v36, %v719_v63 }
 0x13c   :  { %v1655_v47 = vpop.f32.mrf.mxu2 }
 0x13d   :  { %v273_v40 = vrot.slane %v272_v3, 4  ;;  %v724_v12 = vsel %vm437_vm3, %v1655_v47, 0.0 }
 0x13f   :  { %v274_v7 = vadd.f32 %v273_v40, %v272_v3  ;;  %v722_v3 = vsel %vm437_vm3, %v1648_v28, 0.0 }
 0x141   :  { %v275_v9 = vrot.slane %v274_v7, 2 }
 0x143   :  { %v276_v15 = vadd.f32 %v275_v9, %v274_v7  ;;  %v723_v9 = vadd.f32 %v722_v3, %v721_v38 }
 0x144   :  { %v1661_v27 = vpop.f32.mrf.mxu2 }
 0x145   :  { %v277_v19 = vrot.slane %v276_v15, 1  ;;  %v726_v17 = vsel %vm437_vm3, %v1661_v27, 0.0 }
 0x147   :  { %v278_v24 = vadd.f32 %v277_v19, %v276_v15  ;;  %v725_v15 = vadd.f32 %v724_v12, %v723_v9 }
 0x149   :  { %v279_v29 = vmul.f32 %v278_v24, %v1522_v51  ;;  %v727_v19 = vadd.f32 %v726_v17, %v725_v15 }
 0x14b   :  { %v280_v33 = vadd.f32 1e-05, %v279_v29 }
 0x14c   :  { %v1671_v13 = vpop.f32.mrf.mxu2 }
 0x14d   :  { %1243 = vrsqrt.f32 %v280_v33  ;;  %vm287_vm5 = vweird.f32 %v280_v33  ;;  %v728_v21 = vsel %vm437_vm3, %v1671_v13, 0.0 }
 0x14e   :  { %v729_v24 = vadd.f32 %v728_v21, %v727_v19 }
 0x153   :  { %v1244_v61 = vpop.eup %1243 }
 0x154   :  { %v282_v62 = vmul.f32 %v1244_v61, %v280_v33  ;;  %vm288_vm4 = vweird.f32 %v1244_v61 }
 0x155   :  { %vm289_vm6 = vmor %vm287_vm5, %vm288_vm4 }
 0x156   :  { %v283_v32 = vmul.f32 %v1244_v61, %v282_v62 }
 0x158   :  { %v284_v0 = vmul.f32 0.5, %v283_v32 }
 0x15a   :  { %v285_v1 = vsub.f32 1.5, %v284_v0 }
 0x15c   :  { %v286_v40 = vmul.f32 %v1244_v61, %v285_v1 }
 0x15e   :  { %v1665_v7 = vsel %vm289_vm6, %v1244_v61, %v286_v40 }
 0x15f   :  { %v291_v10 = vmul.f32 %v1665_v7, %v1526_v55  ;;  %v292_v46 = vmul.f32 %v1665_v7, %v1529_v56  ;;  %v1680_v55 = vpop.f32.mrf.mxu2  ;;  %v293_v26 = vmul.f32 %v1665_v7, %v1532_v57  ;;  %v294_v41 = vmul.f32 %v1665_v7, %v1537_v60 }
 0x160   :  { %v730_v25 = vsel %vm437_vm3, %v1680_v55, 0.0  ;;  %v295_v62 = vmul.f32 %v1665_v7, %v1544_v30  ;;  %v296_v38 = vmul.f32 %v1665_v7, %v1549_v34  ;;  %v297_v19 = vmul.f32 %v1665_v7, %v1556_v2 }
 0x161   :  { %v307_v44 = vmax.f32 %v291_v10, 0.0  ;;  %v308_v23 = vmax.f32 %v292_v46, 0.0  ;;  %v731_v29 = vadd.f32 %v730_v25, %v729_v24  ;;  %v309_v56 = vmax.f32 %v293_v26, 0.0 }
 0x162   :  { %v310_v61 = vmax.f32 %v294_v41, 0.0  ;;  %v311_v36 = vmax.f32 %v295_v62, 0.0  ;;  %v312_v40 = vmax.f32 %v296_v38, 0.0 }
 0x163   :  { %1192 = vmatmul.msk.f32.vlgmr.msra.gmra.mxu1 %vm164_vm1, %v307_v44 }
 0x167   :  { %v1687_v52 = vpop.f32.mrf.mxu2 }
 0x168   :  { %v732_v33 = vsel %vm437_vm3, %v1687_v52, 0.0 }
 0x169   :  { %v733_v37 = vadd.f32 %v732_v33, %v731_v29 }
 0x16b   :  { %1193 = vmatmul.msk.f32.gmra.mxu1 %vm164_vm1, %v308_v23  ;;  %v734_v59 = vrot.slane %v733_v37, 4 }
 0x16d   :  { %v735_v45 = vadd.f32 %v734_v59, %v733_v37 }
 0x16f   :  { %v736_v53 = vrot.slane %v735_v45, 2 }
 0x171   :  { %v737_v16 = vadd.f32 %v736_v53, %v735_v45 }
 0x173   :  { %1194 = vmatmul.msk.f32.gmra.mxu1 %vm164_vm1, %v309_v56  ;;  %v738_v57 = vrot.slane %v737_v16, 1  ;;  %v313_v56 = vmax.f32 %v297_v19, 0.0 }
 0x175   :  { %v739_v32 = vadd.f32 %v738_v57, %v737_v16 }
 0x177   :  { %v1698_v63 = vmul.f32 %v739_v32, %v1522_v51 }
 0x179   :  { %v1702_v0 = vsub.f32 %v1498_v11, %v1698_v63  ;;  %v1706_v60 = vsub.f32 %v1510_v22, %v1698_v63  ;;  %v1710_v1 = vsub.f32 %v1518_v35, %v1698_v63  ;;  %v1715_v30 = vsub.f32 %v1520_v49, %v1698_v63 }
 0x17a   :  { %v1721_v11 = vsub.f32 %v1534_v58, %v1698_v63  ;;  %v1731_v49 = vsub.f32 %v1561_v4, %v1698_v63  ;;  %v1737_v58 = vsub.f32 %v1587_v20, %v1698_v63  ;;  %v1747_v15 = vsub.f32 %v1613_v43, %v1698_v63 }
 0x17b   :  { %1195 = vmatmul.msk.f32.gmra.mxu1 %vm164_vm1, %v310_v61  ;;  %v757_v22 = vmul.f32 %v1702_v0, %v1702_v0  ;;  %v758_v35 = vmul.f32 %v1706_v60, %v1706_v60  ;;  %v759_v3 = vmul.f32 %v1710_v1, %v1710_v1  ;;  %v760_v34 = vmul.f32 %v1715_v30, %v1715_v30 }
 0x17c   :  { %v761_v9 = vmul.f32 %v1721_v11, %v1721_v11  ;;  %v762_v20 = vmul.f32 %v1731_v49, %v1731_v49  ;;  %v1756_v21 = vsub.f32 %v1628_v54, %v1698_v63  ;;  %v763_v23 = vmul.f32 %v1737_v58, %v1737_v58 }
 0x17d   :  { %v773_v10 = vsel %vm437_vm3, %v757_v22, 0.0  ;;  %v774_v12 = vsel %vm437_vm3, %v758_v35, 0.0  ;;  %v776_v44 = vsel %vm437_vm3, %v759_v3, 0.0  ;;  %v778_v17 = vsel %vm437_vm3, %v760_v34, 0.0 }
 0x17e   :  { %v775_v4 = vadd.f32 %v774_v12, %v773_v10  ;;  %v780_v24 = vsel %vm437_vm3, %v761_v9, 0.0  ;;  %v1763_v25 = vsub.f32 %v1631_v8, %v1698_v63  ;;  %v764_v26 = vmul.f32 %v1747_v15, %v1747_v15 }
 0x17f   :  { %v782_v29 = vsel %vm437_vm3, %v762_v20, 0.0  ;;  %v1770_v54 = vsub.f32 %v1648_v28, %v1698_v63  ;;  %v765_v33 = vmul.f32 %v1756_v21, %v1756_v21  ;;  %v784_v37 = vsel %vm437_vm3, %v763_v23, 0.0 }
 0x180   :  { %v777_v46 = vadd.f32 %v776_v44, %v775_v4  ;;  %v1778_v8 = vsub.f32 %v1655_v47, %v1698_v63  ;;  %v766_v41 = vmul.f32 %v1763_v25, %v1763_v25  ;;  %v786_v45 = vsel %vm437_vm3, %v764_v26, 0.0 }
 0x181   :  { %v298_v28 = vmul.f32 %v1665_v7, %v1564_v6  ;;  %v767_v61 = vmul.f32 %v1770_v54, %v1770_v54  ;;  %v788_v16 = vsel %vm437_vm3, %v765_v33, 0.0  ;;  %v1793_v32 = vsub.f32 %v1661_v27, %v1698_v63 }
 0x182   :  { %v779_v43 = vadd.f32 %v778_v17, %v777_v46  ;;  %v768_v62 = vmul.f32 %v1778_v8, %v1778_v8  ;;  %v790_v47 = vsel %vm437_vm3, %v766_v41, 0.0  ;;  %v1800_v3 = vsub.f32 %v1671_v13, %v1698_v63 }
 0x183   :  { %1196 = vmatmul.msk.f32.gmra.mxu1 %vm164_vm1, %v311_v36  ;;  %v314_v38 = vmax.f32 %v298_v28, 0.0  ;;  %v792_v22 = vsel %vm437_vm3, %v767_v61, 0.0  ;;  %v769_v34 = vmul.f32 %v1793_v32, %v1793_v32  ;;  %v299_v27 = vmul.f32 %v1665_v7, %v1570_v42 }
 0x184   :  { %v781_v2 = vadd.f32 %v780_v24, %v779_v43  ;;  %v794_v35 = vsel %vm437_vm3, %v768_v62, 0.0  ;;  %v1808_v10 = vsub.f32 %v1680_v55, %v1698_v63  ;;  %v770_v12 = vmul.f32 %v1800_v3, %v1800_v3 }
 0x185   :  { %v796_v44 = vsel %vm437_vm3, %v769_v34, 0.0  ;;  %v315_v4 = vmax.f32 %v299_v27, 0.0  ;;  %v1816_v20 = vsub.f32 %v1687_v52, %v1698_v63  ;;  %v300_v55 = vmul.f32 %v1665_v7, %v1576_v14 }
 0x186   :  { %v783_v59 = vadd.f32 %v782_v29, %v781_v2  ;;  %v771_v42 = vmul.f32 %v1808_v10, %v1808_v10  ;;  %v798_v17 = vsel %vm437_vm3, %v770_v12, 0.0  ;;  %v301_v63 = vmul.f32 %v1665_v7, %v1582_v18 }
 0x187   :  { %v772_v19 = vmul.f32 %v1816_v20, %v1816_v20  ;;  %v316_v24 = vmax.f32 %v300_v55, 0.0  ;;  %v302_v2 = vmul.f32 %v1665_v7, %v1590_v48 }
 0x188   :  { %v785_v53 = vadd.f32 %v784_v37, %v783_v59  ;;  %v800_v23 = vsel %vm437_vm3, %v771_v42, 0.0  ;;  %v317_v29 = vmax.f32 %v301_v63, 0.0  ;;  %v303_v59 = vmul.f32 %v1665_v7, %v1596_v50 }
 0x189   :  { %v802_v52 = vsel %vm437_vm3, %v772_v19, 0.0  ;;  %v318_v33 = vmax.f32 %v302_v2, 0.0  ;;  %v306_v50 = vmul.f32 %v1665_v7, %v1616_v5 }
 0x18a   :  { %v787_v57 = vadd.f32 %v786_v45, %v785_v53  ;;  %v319_v45 = vmax.f32 %v303_v59, 0.0  ;;  %v304_v53 = vmul.f32 %v1665_v7, %v1602_v31 }
 0x18b   :  { %1197 = vmatmul.msk.f32.gmra.mxu1 %vm164_vm1, %v312_v40 }
 0x18c   :  { %v789_v36 = vadd.f32 %v788_v16, %v787_v57  ;;  %v320_v61 = vmax.f32 %v304_v53, 0.0  ;;  %v305_v16 = vmul.f32 %v1665_v7, %v1608_v39 }
 0x18e   :  { %v791_v6 = vadd.f32 %v790_v47, %v789_v36  ;;  %v321_v62 = vmax.f32 %v305_v16, 0.0  ;;  %v322_v47 = vmax.f32 %v306_v50, 0.0 }
 0x190   :  { %v793_v40 = vadd.f32 %v792_v22, %v791_v6 }
 0x192   :  { %v795_v9 = vadd.f32 %v794_v35, %v793_v40 }
 0x193   :  { %1198 = vmatmul.msk.f32.gmra.mxu1 %vm164_vm1, %v313_v56 }
 0x194   :  { %v797_v13 = vadd.f32 %v796_v44, %v795_v9 }
 0x196   :  { %v799_v46 = vadd.f32 %v798_v17, %v797_v13 }
 0x198   :  { %v801_v43 = vadd.f32 %v800_v23, %v799_v46 }
 0x19a   :  { %v803_v26 = vadd.f32 %v802_v52, %v801_v43 }
 0x19b   :  { %1199 = vmatmul.msk.f32.gmra.mxu1 %vm164_vm1, %v314_v38 }
 0x19c   :  { %v804_v14 = vrot.slane %v803_v26, 4 }
 0x19e   :  { %v805_v56 = vadd.f32 %v804_v14, %v803_v26 }
 0x1a0   :  { %v806_v37 = vrot.slane %v805_v56, 2 }
 0x1a2   :  { %v807_v41 = vadd.f32 %v806_v37, %v805_v56 }
 0x1a3   :  { %1200 = vmatmul.msk.f32.gmra.mxu1 %vm164_vm1, %v315_v4 }
 0x1a4   :  { %v808_v18 = vrot.slane %v807_v41, 1 }
 0x1a6   :  { %v809_v28 = vadd.f32 %v808_v18, %v807_v41 }
 0x1a8   :  { %v810_v48 = vmul.f32 %v809_v28, %v1522_v51 }
 0x1aa   :  { %v811_v57 = vadd.f32 1e-05, %v810_v48 }
 0x1ab   :  { %1201 = vmatmul.msk.f32.gmra.mxu1 %vm164_vm1, %v316_v24 }
 0x1ac   :  { %1245 = vrsqrt.f32 %v811_v57  ;;  %vm818_vm7 = vweird.f32 %v811_v57 }
 0x1b2   :  { %v1246_v36 = vpop.eup %1245 }
 0x1b3   :  { %1202 = vmatmul.msk.f32.gmra.mxu1 %vm164_vm1, %v317_v29  ;;  %v813_v31 = vmul.f32 %v1246_v36, %v811_v57  ;;  %vm819_vm8 = vweird.f32 %v1246_v36 }
 0x1b4   :  { %vm820_vm9 = vmor %vm818_vm7, %vm819_vm8 }
 0x1b5   :  { %v814_v22 = vmul.f32 %v1246_v36, %v813_v31 }
 0x1b7   :  { %v815_v6 = vmul.f32 0.5, %v814_v22 }
 0x1b9   :  { %v816_v39 = vsub.f32 1.5, %v815_v6 }
 0x1bb   :  { %1203 = vmatmul.msk.f32.gmra.mxu1 %vm164_vm1, %v318_v33  ;;  %v817_v34 = vmul.f32 %v1246_v36, %v816_v39 }
 0x1bd   :  { %v1851_v27 = vsel %vm820_vm9, %v1246_v36, %v817_v34 }
 0x1be   :  { %v1855_v5 = vmul.f32 %v1851_v27, %v1731_v49  ;;  %v1859_v7 = vmul.f32 %v1851_v27, %v1737_v58  ;;  %v1863_v9 = vmul.f32 %v1851_v27, %v1763_v25  ;;  %v1867_v12 = vmul.f32 %v1851_v27, %v1770_v54 }
 0x1bf   :  { %v1871_v4 = vmul.f32 %v1851_v27, %v1778_v8 }
 0x1c3   :  { %1204 = vmatmul.msk.f32.gmra.mxu1 %vm164_vm1, %v319_v45 }
 0x1cb   :  { %1205 = vmatmul.msk.f32.gmra.mxu1 %vm164_vm1, %v320_v61 }
 0x1d3   :  { %1206 = vmatmul.msk.f32.gmra.mxu1 %vm164_vm1, %v321_v62 }
 0x1db   :  { %1207 = vmatmul.msk.f32.gmra.mxu1 %vm164_vm1, %v322_v47 }
 0x1e0   :  { %v1847_v38 = vpop.f32.mrf.mxu1 }
 0x1e1   :  { %v438_v8 = vsel %vm437_vm3, %v1847_v38, 0.0 }
 0x1e8   :  { %v1849_v35 = vpop.f32.mrf.mxu1 }
 0x1e9   :  { %v439_v54 = vsel %vm437_vm3, %v1849_v35, 0.0 }
 0x1ea   :  { %v440_v23 = vadd.f32 %v439_v54, %v438_v8 }
 0x1f0   :  { %v395_v40 = vpop.f32.mrf.mxu1 }
 0x1f1   :  { %v441_v19 = vsel %vm437_vm3, %v395_v40, 0.0 }
 0x1f2   :  { %v442_v43 = vadd.f32 %v441_v19, %v440_v23 }
 0x1f8   :  { %v398_v44 = vpop.f32.mrf.mxu1 }
 0x1f9   :  { %v443_v24 = vsel %vm437_vm3, %v398_v44, 0.0 }
 0x1fa   :  { %v444_v26 = vadd.f32 %v443_v24, %v442_v43 }
 0x200   :  { %v401_v13 = vpop.f32.mrf.mxu1 }
 0x201   :  { %v445_v63 = vsel %vm437_vm3, %v401_v13, 0.0 }
 0x202   :  { %v446_v14 = vadd.f32 %v445_v63, %v444_v26 }
 0x208   :  { %v404_v49 = vpop.f32.mrf.mxu1 }
 0x209   :  { %v447_v29 = vsel %vm437_vm3, %v404_v49, 0.0 }
 0x20a   :  { %v448_v56 = vadd.f32 %v447_v29, %v446_v14 }
 0x210   :  { %v407_v42 = vpop.f32.mrf.mxu1 }
 0x211   :  { %v449_v2 = vsel %vm437_vm3, %v407_v42, 0.0 }
 0x212   :  { %v450_v37 = vadd.f32 %v449_v2, %v448_v56 }
 0x218   :  { %v1873_v17 = vpop.f32.mrf.mxu1 }
 0x219   :  { %v451_v33 = vsel %vm437_vm3, %v1873_v17, 0.0 }
 0x21a   :  { %v452_v45 = vadd.f32 %v451_v33, %v450_v37 }
 0x220   :  { %v1875_v58 = vpop.f32.mrf.mxu1 }
 0x221   :  { %v453_v41 = vsel %vm437_vm3, %v1875_v58, 0.0 }
 0x222   :  { %v454_v53 = vadd.f32 %v453_v41, %v452_v45 }
 0x228   :  { %v1877_v55 = vpop.f32.mrf.mxu1 }
 0x229   :  { %v455_v18 = vsel %vm437_vm3, %v1877_v55, 0.0 }
 0x22a   :  { %v456_v61 = vadd.f32 %v455_v18, %v454_v53 }
 0x230   :  { %v1879_v25 = vpop.f32.mrf.mxu1 }
 0x231   :  { %v457_v28 = vsel %vm437_vm3, %v1879_v25, 0.0 }
 0x232   :  { %v458_v16 = vadd.f32 %v457_v28, %v456_v61 }
 0x238   :  { %v1881_v46 = vpop.f32.mrf.mxu1 }
 0x239   :  { %v459_v48 = vsel %vm437_vm3, %v1881_v46, 0.0 }
 0x23a   :  { %v460_v50 = vadd.f32 %v459_v48, %v458_v16 }
 0x240   :  { %v1889_v52 = vpop.f32.mrf.mxu1 }
 0x241   :  { %v461_v62 = vsel %vm437_vm3, %v1889_v52, 0.0 }
 0x242   :  { %v462_v36 = vadd.f32 %v461_v62, %v460_v50 }
 0x248   :  { %v1896_v59 = vpop.f32.mrf.mxu1 }
 0x249   :  { %v463_v47 = vsel %vm437_vm3, %v1896_v59, 0.0 }
 0x24a   :  { %v464_v22 = vadd.f32 %v463_v47, %v462_v36 }
 0x250   :  { %v1906_v57 = vpop.f32.mrf.mxu1 }
 0x251   :  { %v465_v31 = vsel %vm437_vm3, %v1906_v57, 0.0 }
 0x252   :  { %v466_v6 = vadd.f32 %v465_v31, %v464_v22 }
 0x258   :  { %v434_v39 = vpop.f32.mrf.mxu1 }
 0x259   :  { %v467_v34 = vsel %vm437_vm3, %v434_v39, 0.0 }
 0x25a   :  { %v468_v54 = vadd.f32 %v467_v34, %v466_v6 }
 0x25c   :  { %v469_v8 = vrot.slane %v468_v54, 4 }
 0x25e   :  { %v470_v19 = vadd.f32 %v469_v8, %v468_v54 }
 0x260   :  { %v471_v23 = vrot.slane %v470_v19, 2 }
 0x262   :  { %v472_v24 = vadd.f32 %v471_v23, %v470_v19 }
 0x264   :  { %v473_v43 = vrot.slane %v472_v24, 1 }
 0x266   :  { %v474_v63 = vadd.f32 %v473_v43, %v472_v24 }
 0x268   :  { %v475_v26 = vmul.f32 %v474_v63, %v1522_v51 }
 0x26a   :  { %v1917_v29 = vsub.f32 %v1847_v38, %v475_v26  ;;  %v1920_v14 = vsub.f32 %v1849_v35, %v475_v26  ;;  %v1922_v2 = vsub.f32 %v395_v40, %v475_v26  ;;  %v1924_v56 = vsub.f32 %v398_v44, %v475_v26 }
 0x26b   :  { %v1930_v41 = vsub.f32 %v401_v13, %v475_v26  ;;  %v1934_v38 = vsub.f32 %v404_v49, %v475_v26  ;;  %v1940_v53 = vsub.f32 %v407_v42, %v475_v26  ;;  %v1946_v48 = vsub.f32 %v1873_v17, %v475_v26 }
 0x26c   :  { %v492_v33 = vmul.f32 %v1917_v29, %v1917_v29  ;;  %v493_v37 = vmul.f32 %v1920_v14, %v1920_v14  ;;  %v494_v45 = vmul.f32 %v1922_v2, %v1922_v2  ;;  %v495_v35 = vmul.f32 %v1924_v56, %v1924_v56 }
 0x26d   :  { %v496_v28 = vmul.f32 %v1930_v41, %v1930_v41  ;;  %v497_v49 = vmul.f32 %v1934_v38, %v1934_v38  ;;  %v1952_v50 = vsub.f32 %v1875_v58, %v475_v26  ;;  %v498_v42 = vmul.f32 %v1940_v53, %v1940_v53 }
 0x26e   :  { %v508_v40 = vsel %vm437_vm3, %v492_v33, 0.0  ;;  %v509_v44 = vsel %vm437_vm3, %v493_v37, 0.0  ;;  %v511_v13 = vsel %vm437_vm3, %v494_v45, 0.0  ;;  %v513_v16 = vsel %vm437_vm3, %v495_v35, 0.0 }
 0x26f   :  { %v510_v18 = vadd.f32 %v509_v44, %v508_v40  ;;  %v515_v47 = vsel %vm437_vm3, %v496_v28, 0.0  ;;  %v1958_v31 = vsub.f32 %v1877_v55, %v475_v26  ;;  %v499_v17 = vmul.f32 %v1946_v48, %v1946_v48 }
 0x270   :  { %v517_v22 = vsel %vm437_vm3, %v497_v49, 0.0  ;;  %v1964_v34 = vsub.f32 %v1879_v25, %v475_v26  ;;  %v500_v58 = vmul.f32 %v1952_v50, %v1952_v50  ;;  %v519_v54 = vsel %vm437_vm3, %v498_v42, 0.0 }
 0x271   :  { %v512_v61 = vadd.f32 %v511_v13, %v510_v18  ;;  %v1970_v19 = vsub.f32 %v1881_v46, %v475_v26  ;;  %v501_v55 = vmul.f32 %v1958_v31, %v1958_v31  ;;  %v521_v23 = vsel %vm437_vm3, %v499_v17, 0.0 }
 0x272   :  { %v1976_v43 = vsub.f32 %v1889_v52, %v475_v26  ;;  %v502_v25 = vmul.f32 %v1964_v34, %v1964_v34  ;;  %v523_v63 = vsel %vm437_vm3, %v500_v58, 0.0  ;;  %v1982_v37 = vsub.f32 %v1896_v59, %v475_v26  ;;  %v887_v58 = vld [vmem:[%s2336_s5 + $0x8] sm:$0xff] }
 0x273   :  { %v514_v62 = vadd.f32 %v513_v16, %v512_v61  ;;  %v503_v46 = vmul.f32 %v1970_v19, %v1970_v19  ;;  %v525_v45 = vsel %vm437_vm3, %v501_v55, 0.0  ;;  %v1988_v40 = vsub.f32 %v1906_v57, %v475_v26  ;;  %950 = vmatpush.msra.mxu3 %v887_v58 }
 0x274   :  { %v504_v52 = vmul.f32 %v1976_v43, %v1976_v43  ;;  %v527_v44 = vsel %vm437_vm3, %v502_v25, 0.0  ;;  %v491_v28 = vsub.f32 %v434_v39, %v475_v26  ;;  %v505_v59 = vmul.f32 %v1982_v37, %v1982_v37 }
 0x275   :  { %v516_v36 = vadd.f32 %v515_v47, %v514_v62  ;;  %v529_v13 = vsel %vm437_vm3, %v503_v46, 0.0  ;;  %v506_v49 = vmul.f32 %v1988_v40, %v1988_v40 }
 0x276   :  { %v531_v16 = vsel %vm437_vm3, %v504_v52, 0.0  ;;  %v507_v62 = vmul.f32 %v491_v28, %v491_v28  ;;  %v533_v42 = vsel %vm437_vm3, %v505_v59, 0.0 }
 0x277   :  { %v518_v6 = vadd.f32 %v517_v22, %v516_v36  ;;  %v535_v36 = vsel %vm437_vm3, %v506_v49, 0.0  ;;  %v825_v49 = vmul.f32 %v1851_v27, %v1715_v30 }
 0x278   :  { %v537_v39 = vsel %vm437_vm3, %v507_v62, 0.0  ;;  %v836_v62 = vmul.f32 %v1851_v27, %v1808_v10 }
 0x279   :  { %v520_v8 = vadd.f32 %v519_v54, %v518_v6  ;;  %v886_v54 = vld [vmem:[%s2336_s5] sm:$0xff] }
 0x27a   :  { %951 = vmatpush.msra.mxu3 %v886_v54 }
 0x27b   :  { %v522_v24 = vadd.f32 %v521_v23, %v520_v8 }
 0x27d   :  { %v524_v33 = vadd.f32 %v523_v63, %v522_v24 }
 0x27f   :  { %v526_v35 = vadd.f32 %v525_v45, %v524_v33 }
 0x281   :  { %v528_v18 = vadd.f32 %v527_v44, %v526_v35  ;;  %v837_v44 = vmul.f32 %v1851_v27, %v1816_v20  ;;  %v829_v20 = vmul.f32 %v1851_v27, %v1747_v15 }
 0x283   :  { %v530_v61 = vadd.f32 %v529_v13, %v528_v18  ;;  %v822_v18 = vmul.f32 %v1851_v27, %v1702_v0  ;;  %v823_v13 = vmul.f32 %v1851_v27, %v1706_v60  ;;  %v830_v0 = vmul.f32 %v1851_v27, %v1756_v21 }
 0x284   :  { %v834_v60 = vmul.f32 %v1851_v27, %v1793_v32 }
 0x285   :  { %v532_v57 = vadd.f32 %v531_v16, %v530_v61  ;;  %v824_v61 = vmul.f32 %v1851_v27, %v1710_v1  ;;  %v826_v16 = vmul.f32 %v1851_v27, %v1721_v11  ;;  %v835_v1 = vmul.f32 %v1851_v27, %v1800_v3 }
 0x287   :  { %v534_v47 = vadd.f32 %v533_v42, %v532_v57 }
 0x289   :  { %v536_v17 = vadd.f32 %v535_v36, %v534_v47 }
 0x28b   :  { %v538_v26 = vadd.f32 %v537_v39, %v536_v17 }
 0x28d   :  { %v539_v22 = vrot.slane %v538_v26, 4 }
 0x28f   :  { %v540_v6 = vadd.f32 %v539_v22, %v538_v26 }
 0x291   :  { %v541_v8 = vrot.slane %v540_v6, 2 }
 0x293   :  { %v542_v55 = vadd.f32 %v541_v8, %v540_v6 }
 0x295   :  { %v543_v23 = vrot.slane %v542_v55, 1 }
 0x297   :  { %v544_v24 = vadd.f32 %v543_v23, %v542_v55 }
 0x299   :  { %v545_v25 = vmul.f32 %v544_v24, %v1522_v51 }
 0x29b   :  { %v546_v63 = vadd.f32 1e-05, %v545_v25 }
 0x29d   :  { %1247 = vrsqrt.f32 %v546_v63  ;;  %vm553_vm11 = vweird.f32 %v546_v63 }
 0x2a3   :  { %v1248_v33 = vpop.eup %1247 }
 0x2a4   :  { %v548_v46 = vmul.f32 %v1248_v33, %v546_v63  ;;  %vm554_vm10 = vweird.f32 %v1248_v33 }
 0x2a5   :  { %vm555_vm12 = vmor %vm553_vm11, %vm554_vm10 }
 0x2a6   :  { %v549_v45 = vmul.f32 %v1248_v33, %v548_v46 }
 0x2a8   :  { %v550_v35 = vmul.f32 0.5, %v549_v45 }
 0x2aa   :  { %v551_v52 = vsub.f32 1.5, %v550_v35 }
 0x2ac   :  { %v552_v59 = vmul.f32 %v1248_v33, %v551_v52 }
 0x2ae   :  { %v556_v57 = vsel %vm555_vm12, %v1248_v33, %v552_v59 }
 0x2af   :  { %v572_v30 = vmul.f32 %v556_v57, %v491_v28  ;;  %v557_v42 = vmul.f32 %v556_v57, %v1917_v29  ;;  %v558_v11 = vmul.f32 %v556_v57, %v1920_v14  ;;  %v559_v15 = vmul.f32 %v556_v57, %v1922_v2 }
 0x2b0   :  { %v560_v47 = vmul.f32 %v556_v57, %v1924_v56  ;;  %v561_v21 = vmul.f32 %v556_v57, %v1930_v41  ;;  %v562_v36 = vmul.f32 %v556_v57, %v1934_v38  ;;  %v563_v32 = vmul.f32 %v556_v57, %v1940_v53 }
 0x2b1   :  { %v838_v17 = vadd.f32 %v822_v18, %v557_v42  ;;  %v839_v3 = vadd.f32 %v823_v13, %v558_v11  ;;  %v840_v39 = vadd.f32 %v824_v61, %v559_v15  ;;  %v564_v10 = vmul.f32 %v556_v57, %v1946_v48 }
 0x2b2   :  { %v841_v27 = vadd.f32 %v825_v49, %v560_v47  ;;  %v842_v28 = vadd.f32 %v826_v16, %v561_v21  ;;  %v843_v29 = vadd.f32 %v1855_v5, %v562_v36  ;;  %v844_v14 = vadd.f32 %v1859_v7, %v563_v32 }
 0x2b3   :  { %v854_v2 = vmax.f32 %v838_v17, 0.0  ;;  %v855_v26 = vmax.f32 %v839_v3, 0.0  ;;  %v856_v56 = vmax.f32 %v840_v39, 0.0  ;;  %v845_v22 = vadd.f32 %v829_v20, %v564_v10 }
 0x2b4   :  { %v857_v41 = vmax.f32 %v841_v27, 0.0  ;;  %v858_v6 = vmax.f32 %v842_v28, 0.0  ;;  %v859_v38 = vmax.f32 %v843_v29, 0.0  ;;  %v860_v58 = vmax.f32 %v844_v14, 0.0 }
 0x2b5   :  { %870 = vst.msk [vmem:[%s2337_s6] sm:$0xff] %vm437_vm3, %v854_v2  ;;  %1224 = vmatmul.msk.f32.vlgmr.msra.gmra.mxu3 %vm437_vm3, %v854_v2  ;;  %v861_v53 = vmax.f32 %v845_v22, 0.0  ;;  %v565_v5 = vmul.f32 %v556_v57, %v1952_v50  ;;  %v566_v7 = vmul.f32 %v556_v57, %v1958_v31  ;;  %v567_v48 = vmul.f32 %v556_v57, %v1964_v34 }
 0x2b6   :  { %871 = vst.msk [vmem:[%s2337_s6 + $0x8] sm:$0xff] %vm437_vm3, %v855_v26  ;;  %v568_v54 = vmul.f32 %v556_v57, %v1970_v19  ;;  %v569_v8 = vmul.f32 %v556_v57, %v1976_v43  ;;  %v570_v55 = vmul.f32 %v556_v57, %v1982_v37  ;;  %v571_v23 = vmul.f32 %v556_v57, %v1988_v40 }
 0x2b7   :  { %872 = vst.msk [vmem:[%s2337_s6 + $0x10] sm:$0xff] %vm437_vm3, %v856_v56  ;;  %v846_v50 = vadd.f32 %v830_v0, %v565_v5  ;;  %v847_v31 = vadd.f32 %v1863_v9, %v566_v7  ;;  %v848_v34 = vadd.f32 %v1867_v12, %v567_v48  ;;  %v853_v24 = vadd.f32 %v837_v44, %v572_v30 }
 0x2b8   :  { %873 = vst.msk [vmem:[%s2337_s6 + $0x18] sm:$0xff] %vm437_vm3, %v857_v41  ;;  %v849_v19 = vadd.f32 %v1871_v4, %v568_v54  ;;  %v850_v43 = vadd.f32 %v834_v60, %v569_v8  ;;  %v851_v37 = vadd.f32 %v835_v1, %v570_v55  ;;  %v852_v40 = vadd.f32 %v836_v62, %v571_v23 }
 0x2b9   :  { %874 = vst.msk [vmem:[%s2337_s6 + $0x20] sm:$0xff] %vm437_vm3, %v858_v6  ;;  %v862_v25 = vmax.f32 %v846_v50, 0.0  ;;  %v863_v9 = vmax.f32 %v847_v31, 0.0  ;;  %v864_v12 = vmax.f32 %v848_v34, 0.0  ;;  %v869_v45 = vmax.f32 %v853_v24, 0.0 }
 0x2ba   :  { %875 = vst.msk [vmem:[%s2337_s6 + $0x28] sm:$0xff] %vm437_vm3, %v859_v38  ;;  %v865_v4 = vmax.f32 %v849_v19, 0.0  ;;  %v866_v63 = vmax.f32 %v850_v43, 0.0  ;;  %v867_v33 = vmax.f32 %v851_v37, 0.0  ;;  %v868_v46 = vmax.f32 %v852_v40, 0.0 }
 0x2bb   :  { %876 = vst.msk [vmem:[%s2337_s6 + $0x30] sm:$0xff] %vm437_vm3, %v860_v58 }
 0x2bc   :  { %877 = vst.msk [vmem:[%s2337_s6 + $0x38] sm:$0xff] %vm437_vm3, %v861_v53 }
 0x2bd   :  { %1225 = vmatmul.msk.f32.gmra.mxu3 %vm437_vm3, %v855_v26  ;;  %878 = vst.msk [vmem:[%s2337_s6 + $0x40] sm:$0xff] %vm437_vm3, %v862_v25 }
 0x2be   :  { %879 = vst.msk [vmem:[%s2337_s6 + $0x48] sm:$0xff] %vm437_vm3, %v863_v9 }
 0x2bf   :  { %880 = vst.msk [vmem:[%s2337_s6 + $0x50] sm:$0xff] %vm437_vm3, %v864_v12 }
 0x2c0   :  { %881 = vst.msk [vmem:[%s2337_s6 + $0x58] sm:$0xff] %vm437_vm3, %v865_v4 }
 0x2c1   :  { %882 = vst.msk [vmem:[%s2337_s6 + $0x60] sm:$0xff] %vm437_vm3, %v866_v63 }
 0x2c2   :  { %883 = vst.msk [vmem:[%s2337_s6 + $0x68] sm:$0xff] %vm437_vm3, %v867_v33 }
 0x2c3   :  { %884 = vst.msk [vmem:[%s2337_s6 + $0x70] sm:$0xff] %vm437_vm3, %v868_v46 }
 0x2c4   :  { %885 = vst.msk [vmem:[%s2337_s6 + $0x78] sm:$0xff] %vm437_vm3, %v869_v45 }
 0x2c5   :  { %1226 = vmatmul.msk.f32.gmra.mxu3 %vm437_vm3, %v856_v56 }
 0x2cd   :  { %1227 = vmatmul.msk.f32.gmra.mxu3 %vm437_vm3, %v857_v41 }
 0x2d5   :  { %1228 = vmatmul.msk.f32.gmra.mxu3 %vm437_vm3, %v858_v6 }
 0x2dd   :  { %1229 = vmatmul.msk.f32.gmra.mxu3 %vm437_vm3, %v859_v38 }
 0x2e5   :  { %1230 = vmatmul.msk.f32.gmra.mxu3 %vm437_vm3, %v860_v58 }
 0x2ed   :  { %1231 = vmatmul.msk.f32.gmra.mxu3 %vm437_vm3, %v861_v53 }
 0x2f5   :  { %1232 = vmatmul.msk.f32.gmra.mxu3 %vm437_vm3, %v862_v25 }
 0x2fd   :  { %1233 = vmatmul.msk.f32.gmra.mxu3 %vm437_vm3, %v863_v9 }
 0x305   :  { %1234 = vmatmul.msk.f32.gmra.mxu3 %vm437_vm3, %v864_v12 }
 0x30d   :  { %1235 = vmatmul.msk.f32.gmra.mxu3 %vm437_vm3, %v865_v4 }
 0x315   :  { %1236 = vmatmul.msk.f32.gmra.mxu3 %vm437_vm3, %v866_v63 }
 0x31d   :  { %1237 = vmatmul.msk.f32.gmra.mxu3 %vm437_vm3, %v867_v33 }
 0x325   :  { %1238 = vmatmul.msk.f32.gmra.mxu3 %vm437_vm3, %v868_v46 }
 0x32d   :  { %1239 = vmatmul.msk.f32.gmra.mxu3 %vm437_vm3, %v869_v45 }
 0x338   :  { %v953_v35 = vpop.f32.mrf.mxu3 }
 0x339   :  { %v1001_v1 = vsel %vm164_vm1, %v953_v35, 0.0 }
 0x340   :  { %v956_v52 = vpop.f32.mrf.mxu3 }
 0x341   :  { %v1002_v60 = vsel %vm164_vm1, %v956_v52, 0.0 }
 0x342   :  { %v1003_v30 = vadd.f32 %v1002_v60, %v1001_v1 }
 0x348   :  { %v959_v44 = vpop.f32.mrf.mxu3 }
 0x349   :  { %v1004_v62 = vsel %vm164_vm1, %v959_v44, 0.0 }
 0x34a   :  { %v1005_v11 = vadd.f32 %v1004_v62, %v1003_v30 }
 0x350   :  { %v962_v18 = vpop.f32.mrf.mxu3 }
 0x351   :  { %v1006_v42 = vsel %vm164_vm1, %v962_v18, 0.0 }
 0x352   :  { %v1007_v21 = vadd.f32 %v1006_v42, %v1005_v11 }
 0x358   :  { %v965_v59 = vpop.f32.mrf.mxu3 }
 0x359   :  { %v1008_v47 = vsel %vm164_vm1, %v965_v59, 0.0 }
 0x35a   :  { %v1009_v32 = vadd.f32 %v1008_v47, %v1007_v21 }
 0x360   :  { %v968_v13 = vpop.f32.mrf.mxu3 }
 0x361   :  { %v1010_v36 = vsel %vm164_vm1, %v968_v13, 0.0 }
 0x362   :  { %v1011_v3 = vadd.f32 %v1010_v36, %v1009_v32 }
 0x368   :  { %v971_v61 = vpop.f32.mrf.mxu3 }
 0x369   :  { %v1012_v17 = vsel %vm164_vm1, %v971_v61, 0.0 }
 0x36a   :  { %v1013_v10 = vadd.f32 %v1012_v17, %v1011_v3 }
 0x370   :  { %v2131_v49 = vpop.f32.mrf.mxu3 }
 0x371   :  { %v1014_v39 = vsel %vm164_vm1, %v2131_v49, 0.0 }
 0x372   :  { %v1015_v29 = vadd.f32 %v1014_v39, %v1013_v10 }
 0x378   :  { %v2133_v16 = vpop.f32.mrf.mxu3 }
 0x379   :  { %v1016_v28 = vsel %vm164_vm1, %v2133_v16, 0.0 }
 0x37a   :  { %v1017_v2 = vadd.f32 %v1016_v28, %v1015_v29 }
 0x380   :  { %v2135_v20 = vpop.f32.mrf.mxu3 }
 0x381   :  { %v1018_v14 = vsel %vm164_vm1, %v2135_v20, 0.0 }
 0x382   :  { %v1019_v56 = vadd.f32 %v1018_v14, %v1017_v2 }
 0x388   :  { %v2137_v0 = vpop.f32.mrf.mxu3 }
 0x389   :  { %v1020_v26 = vsel %vm164_vm1, %v2137_v0, 0.0 }
 0x38a   :  { %v1021_v41 = vadd.f32 %v1020_v26, %v1019_v56 }
 0x390   :  { %v2139_v57 = vpop.f32.mrf.mxu3 }
 0x391   :  { %v1022_v22 = vsel %vm164_vm1, %v2139_v57, 0.0 }
 0x392   :  { %v1023_v58 = vadd.f32 %v1022_v22, %v1021_v41 }
 0x398   :  { %v2145_v15 = vpop.f32.mrf.mxu3 }
 0x399   :  { %v1024_v38 = vsel %vm164_vm1, %v2145_v15, 0.0 }
 0x39a   :  { %v1025_v5 = vadd.f32 %v1024_v38, %v1023_v58 }
 0x3a0   :  { %v2152_v27 = vpop.f32.mrf.mxu3 }
 0x3a1   :  { %v1026_v53 = vsel %vm164_vm1, %v2152_v27, 0.0 }
 0x3a2   :  { %v1027_v48 = vadd.f32 %v1026_v53, %v1025_v5 }
 0x3a8   :  { %v2162_v6 = vpop.f32.mrf.mxu3 }
 0x3a9   :  { %v1028_v7 = vsel %vm164_vm1, %v2162_v6, 0.0 }
 0x3aa   :  { %v1029_v54 = vadd.f32 %v1028_v7, %v1027_v48 }
 0x3b0   :  { %v998_v8 = vpop.f32.mrf.mxu3 }
 0x3b1   :  { %v1030_v55 = vsel %vm164_vm1, %v998_v8, 0.0 }
 0x3b2   :  { %v1031_v23 = vadd.f32 %v1030_v55, %v1029_v54 }
 0x3b4   :  { %v1032_v50 = vrot.slane %v1031_v23, 4 }
 0x3b6   :  { %v1033_v31 = vadd.f32 %v1032_v50, %v1031_v23 }
 0x3b8   :  { %v1034_v34 = vrot.slane %v1033_v31, 2 }
 0x3ba   :  { %v1035_v24 = vadd.f32 %v1034_v34, %v1033_v31 }
 0x3bc   :  { %v1036_v19 = vrot.slane %v1035_v24, 1 }
 0x3be   :  { %v1037_v43 = vadd.f32 %v1036_v19, %v1035_v24 }
 0x3c0   :  { %v1038_v37 = vmul.f32 %v1037_v43, %v1522_v51 }
 0x3c2   :  { %v2172_v40 = vsub.f32 %v953_v35, %v1038_v37  ;;  %v2174_v25 = vsub.f32 %v956_v52, %v1038_v37  ;;  %v2176_v9 = vsub.f32 %v959_v44, %v1038_v37  ;;  %v2178_v12 = vsub.f32 %v962_v18, %v1038_v37 }
 0x3c3   :  { %v2184_v33 = vsub.f32 %v965_v59, %v1038_v37  ;;  %v2188_v45 = vsub.f32 %v968_v13, %v1038_v37  ;;  %v2194_v60 = vsub.f32 %v971_v61, %v1038_v37  ;;  %v2200_v30 = vsub.f32 %v2131_v49, %v1038_v37 }
 0x3c4   :  { %v1055_v4 = vmul.f32 %v2172_v40, %v2172_v40  ;;  %v1056_v63 = vmul.f32 %v2174_v25, %v2174_v25  ;;  %v1057_v46 = vmul.f32 %v2176_v9, %v2176_v9  ;;  %v1058_v35 = vmul.f32 %v2178_v12, %v2178_v12 }
 0x3c5   :  { %v1059_v1 = vmul.f32 %v2184_v33, %v2184_v33  ;;  %v1060_v13 = vmul.f32 %v2188_v45, %v2188_v45  ;;  %v2206_v47 = vsub.f32 %v2133_v16, %v1038_v37  ;;  %v1061_v61 = vmul.f32 %v2194_v60, %v2194_v60 }
 0x3c6   :  { %v1071_v52 = vsel %vm164_vm1, %v1055_v4, 0.0  ;;  %v1072_v44 = vsel %vm164_vm1, %v1056_v63, 0.0  ;;  %v1074_v59 = vsel %vm164_vm1, %v1057_v46, 0.0  ;;  %v1076_v42 = vsel %vm164_vm1, %v1058_v35, 0.0 }
 0x3c7   :  { %v1073_v18 = vadd.f32 %v1072_v44, %v1071_v52  ;;  %v1078_v21 = vsel %vm164_vm1, %v1059_v1, 0.0  ;;  %v2212_v32 = vsub.f32 %v2135_v20, %v1038_v37  ;;  %v1062_v49 = vmul.f32 %v2200_v30, %v2200_v30 }
 0x3c8   :  { %v1080_v17 = vsel %vm164_vm1, %v1060_v13, 0.0  ;;  %v1049_v39 = vsub.f32 %v2137_v0, %v1038_v37  ;;  %v1063_v16 = vmul.f32 %v2206_v47, %v2206_v47  ;;  %v1082_v10 = vsel %vm164_vm1, %v1061_v61, 0.0 }
 0x3c9   :  { %v1075_v62 = vadd.f32 %v1074_v59, %v1073_v18  ;;  %v1050_v29 = vsub.f32 %v2139_v57, %v1038_v37  ;;  %v1064_v20 = vmul.f32 %v2212_v32, %v2212_v32  ;;  %v1084_v14 = vsel %vm164_vm1, %v1062_v49, 0.0 }
 0x3ca   :  { %v2226_v26 = vsub.f32 %v2145_v15, %v1038_v37  ;;  %v1065_v56 = vmul.f32 %v1049_v39, %v1049_v39  ;;  %v1086_v0 = vsel %vm164_vm1, %v1063_v16, 0.0  ;;  %v2230_v41 = vsub.f32 %v2152_v27, %v1038_v37 }
 0x3cb   :  { %v1077_v11 = vadd.f32 %v1076_v42, %v1075_v62  ;;  %v1066_v38 = vmul.f32 %v1050_v29, %v1050_v29  ;;  %v1088_v58 = vsel %vm164_vm1, %v1064_v20, 0.0  ;;  %v2234_v53 = vsub.f32 %v2162_v6, %v1038_v37 }
 0x3cc   :  { %v1067_v5 = vmul.f32 %v2226_v26, %v2226_v26  ;;  %v1090_v15 = vsel %vm164_vm1, %v1065_v56, 0.0  ;;  %v2239_v48 = vsub.f32 %v998_v8, %v1038_v37  ;;  %v1068_v54 = vmul.f32 %v2230_v41, %v2230_v41 }
 0x3cd   :  { %v1079_v36 = vadd.f32 %v1078_v21, %v1077_v11  ;;  %v1092_v27 = vsel %vm164_vm1, %v1066_v38, 0.0  ;;  %v1069_v23 = vmul.f32 %v2234_v53, %v2234_v53 }
 0x3ce   :  { %v1094_v6 = vsel %vm164_vm1, %v1067_v5, 0.0  ;;  %v1070_v31 = vmul.f32 %v2239_v48, %v2239_v48  ;;  %v1096_v34 = vsel %vm164_vm1, %v1068_v54, 0.0 }
 0x3cf   :  { %v1081_v3 = vadd.f32 %v1080_v17, %v1079_v36  ;;  %v1098_v8 = vsel %vm164_vm1, %v1069_v23, 0.0 }
 0x3d0   :  { %v1100_v43 = vsel %vm164_vm1, %v1070_v31, 0.0 }
 0x3d1   :  { %v1083_v28 = vadd.f32 %v1082_v10, %v1081_v3 }
 0x3d3   :  { %v1085_v2 = vadd.f32 %v1084_v14, %v1083_v28 }
 0x3d5   :  { %v1087_v22 = vadd.f32 %v1086_v0, %v1085_v2 }
 0x3d7   :  { %v1089_v57 = vadd.f32 %v1088_v58, %v1087_v22 }
 0x3d9   :  { %v1091_v7 = vadd.f32 %v1090_v15, %v1089_v57 }
 0x3db   :  { %v1093_v55 = vadd.f32 %v1092_v27, %v1091_v7 }
 0x3dd   :  { %v1095_v50 = vadd.f32 %v1094_v6, %v1093_v55 }
 0x3df   :  { %v1097_v24 = vadd.f32 %v1096_v34, %v1095_v50 }
 0x3e1   :  { %v1099_v19 = vadd.f32 %v1098_v8, %v1097_v24 }
 0x3e3   :  { %v1101_v37 = vadd.f32 %v1100_v43, %v1099_v19 }
 0x3e5   :  { %v1102_v4 = vrot.slane %v1101_v37, 4 }
 0x3e7   :  { %v1103_v63 = vadd.f32 %v1102_v4, %v1101_v37 }
 0x3e9   :  { %v1104_v46 = vrot.slane %v1103_v63, 2 }
 0x3eb   :  { %v1105_v35 = vadd.f32 %v1104_v46, %v1103_v63 }
 0x3ed   :  { %v1106_v52 = vrot.slane %v1105_v35, 1 }
 0x3ef   :  { %v1107_v44 = vadd.f32 %v1106_v52, %v1105_v35 }
 0x3f1   :  { %v1108_v18 = vmul.f32 %v1107_v44, %v1522_v51 }
 0x3f3   :  { %v1109_v1 = vadd.f32 1e-05, %v1108_v18 }
 0x3f5   :  { %1249 = vrsqrt.f32 %v1109_v1  ;;  %vm1116_vm14 = vweird.f32 %v1109_v1 }
 0x3fb   :  { %v1250_v59 = vpop.eup %1249 }
 0x3fc   :  { %v1111_v62 = vmul.f32 %v1250_v59, %v1109_v1  ;;  %vm1117_vm13 = vweird.f32 %v1250_v59 }
 0x3fd   :  { %vm1118_vm15 = vmor %vm1116_vm14, %vm1117_vm13 }
 0x3fe   :  { %v1112_v13 = vmul.f32 %v1250_v59, %v1111_v62 }
 0x400   :  { %v1113_v42 = vmul.f32 0.5, %v1112_v13 }
 0x402   :  { %v1114_v11 = vsub.f32 1.5, %v1113_v42 }
 0x404   :  { %v1115_v61 = vmul.f32 %v1250_v59, %v1114_v11 }
 0x406   :  { %v1119_v21 = vsel %vm1118_vm15, %v1250_v59, %v1115_v61 }
 0x407   :  { %v1120_v36 = vmul.f32 %v1119_v21, %v2172_v40  ;;  %v1121_v49 = vmul.f32 %v1119_v21, %v2174_v25  ;;  %v1122_v17 = vmul.f32 %v1119_v21, %v2176_v9  ;;  %v1123_v51 = vmul.f32 %v1119_v21, %v2178_v12 }
 0x408   :  { %v1125_v3 = vmul.f32 %v1119_v21, %v2188_v45  ;;  %v1126_v16 = vmul.f32 %v1119_v21, %v2194_v60  ;;  %v1124_v10 = vmul.f32 %v1119_v21, %v2184_v33  ;;  %v1130_v28 = vmul.f32 %v1119_v21, %v1049_v39 }
 0x409   :  { %v1131_v20 = vmul.f32 %v1119_v21, %v1050_v29  ;;  %v1136_v14 = vmax.f32 %v1120_v36, 0.0  ;;  %v1137_v2 = vmax.f32 %v1121_v49, 0.0  ;;  %v1138_v56 = vmax.f32 %v1122_v17, 0.0 }
 0x40a   :  { %v1127_v0 = vmul.f32 %v1119_v21, %v2200_v30  ;;  %v1139_v40 = vmax.f32 %v1123_v51, 0.0  ;;  %v1128_v25 = vmul.f32 %v1119_v21, %v2206_v47  ;;  %v1140_v22 = vmax.f32 %v1124_v10, 0.0 }
 0x40b   :  { %1152 = vst.msk [vmem:[%s2338_s7] sm:$0xff] %vm164_vm1, %v1136_v14  ;;  %v1129_v9 = vmul.f32 %v1119_v21, %v2212_v32  ;;  %v1141_v12 = vmax.f32 %v1125_v3, 0.0  ;;  %v1142_v33 = vmax.f32 %v1126_v16, 0.0  ;;  %v1132_v60 = vmul.f32 %v1119_v21, %v2226_v26 }
 0x40c   :  { %1153 = vst.msk [vmem:[%s2338_s7 + $0x8] sm:$0xff] %vm164_vm1, %v1137_v2  ;;  %v1143_v45 = vmax.f32 %v1127_v0, 0.0  ;;  %v1144_v30 = vmax.f32 %v1128_v25, 0.0  ;;  %v1133_v47 = vmul.f32 %v1119_v21, %v2230_v41  ;;  %v1134_v39 = vmul.f32 %v1119_v21, %v2234_v53 }
 0x40d   :  { %1154 = vst.msk [vmem:[%s2338_s7 + $0x10] sm:$0xff] %vm164_vm1, %v1138_v56  ;;  %v1145_v32 = vmax.f32 %v1129_v9, 0.0  ;;  %v1146_v29 = vmax.f32 %v1130_v28, 0.0  ;;  %v1135_v26 = vmul.f32 %v1119_v21, %v2239_v48  ;;  %v1147_v38 = vmax.f32 %v1131_v20, 0.0 }
 0x40e   :  { %1155 = vst.msk [vmem:[%s2338_s7 + $0x18] sm:$0xff] %vm164_vm1, %v1139_v40  ;;  %v1148_v41 = vmax.f32 %v1132_v60, 0.0  ;;  %v1149_v58 = vmax.f32 %v1133_v47, 0.0  ;;  %v1150_v57 = vmax.f32 %v1134_v39, 0.0 }
 0x40f   :  { %1156 = vst.msk [vmem:[%s2338_s7 + $0x20] sm:$0xff] %vm164_vm1, %v1140_v22  ;;  %v1151_v53 = vmax.f32 %v1135_v26, 0.0 }
 0x410   :  { %1157 = vst.msk [vmem:[%s2338_s7 + $0x28] sm:$0xff] %vm164_vm1, %v1141_v12 }
 0x411   :  { %1158 = vst.msk [vmem:[%s2338_s7 + $0x30] sm:$0xff] %vm164_vm1, %v1142_v33 }
 0x412   :  { %1159 = vst.msk [vmem:[%s2338_s7 + $0x38] sm:$0xff] %vm164_vm1, %v1143_v45 }
 0x413   :  { %1160 = vst.msk [vmem:[%s2338_s7 + $0x40] sm:$0xff] %vm164_vm1, %v1144_v30 }
 0x414   :  { %1161 = vst.msk [vmem:[%s2338_s7 + $0x48] sm:$0xff] %vm164_vm1, %v1145_v32 }
 0x415   :  { %1162 = vst.msk [vmem:[%s2338_s7 + $0x50] sm:$0xff] %vm164_vm1, %v1146_v29 }
 0x416   :  { %1163 = vst.msk [vmem:[%s2338_s7 + $0x58] sm:$0xff] %vm164_vm1, %v1147_v38 }
 0x417   :  { %1164 = vst.msk [vmem:[%s2338_s7 + $0x60] sm:$0xff] %vm164_vm1, %v1148_v41 }
 0x418   :  { %1165 = vst.msk [vmem:[%s2338_s7 + $0x68] sm:$0xff] %vm164_vm1, %v1149_v58 }
 0x419   :  { %1166 = vst.msk [vmem:[%s2338_s7 + $0x70] sm:$0xff] %vm164_vm1, %v1150_v57 }
 0x41a   :  { %1167 = vst.msk [vmem:[%s2338_s7 + $0x78] sm:$0xff] %vm164_vm1, %v1151_v53 }

// kernel: strider_forward.7
= control target key start
LH: loop header
LB: loop body
LE: loop exit
PB: predicated region body
PF: predicated region fallthrough
CT: control target
= control target key end

     0   :  { %s2416_s0 = inlined_call_operand.vmem [shape: f32[128,72], index: 0, kind: input, shape index: {}]   ;;  %s2417_s1 = inlined_call_operand.vmem [shape: f32[72,4], index: 1, kind: input, shape index: {}]   ;;  %s2418_s2 = inlined_call_operand.vmem [shape: f32[32,72], index: 2, kind: input, shape index: {}]   ;;  %s2419_s3 = inlined_call_operand.vmem [shape: f32[72,4], index: 3, kind: input, shape index: {}]   ;;  %s2420_s4 = inlined_call_operand.vmem [shape: f32[128,32], index: 4, kind: input, shape index: {}]   ;;  %s2421_s5 = inlined_call_operand.vmem [shape: f32[4,8], index: 5, kind: input, shape index: {}]   ;;  %s2422_s6 = inlined_call_operand.vmem [shape: f32[4,8], index: 6, kind: input, shape index: {}]   ;;  %s2423_s7 = inlined_call_operand.vmem [shape: f32[8,16], index: 7, kind: input, shape index: {}]   ;;  %s2424_s8 = inlined_call_operand.vmem [shape: f32[128,16], index: 8, kind: input, shape index: {}]   ;;  %s2425_s9 = inlined_call_operand.hbm [shape: f32[128,16], index: 9, kind: output, shape index: {}]  }
   0x1   :  { %v57_v0 = vld [vmem:[%s2417_s1 + $0x40] sm:$0xff]  ;;  %v56_v2 = vld [vmem:[%s2417_s1 + $0x38] sm:$0xff]  ;;  %v55_v4 = vld [vmem:[%s2417_s1 + $0x30] sm:$0xff] }
   0x2   :  { %v343_v1 = vld [vmem:[%s2419_s3 + $0x40] sm:$0xff]  ;;  %114 = vmatpush.msra.mxu0 %v57_v0  ;;  %v342_v3 = vld [vmem:[%s2419_s3 + $0x38] sm:$0xff]  ;;  %v341_v5 = vld [vmem:[%s2419_s3 + $0x30] sm:$0xff] }
   0x3   :  { %363 = vmatpush.msra.mxu1 %v343_v1  ;;  %v54_v6 = vld [vmem:[%s2417_s1 + $0x28] sm:$0xff]  ;;  %v53_v8 = vld [vmem:[%s2417_s1 + $0x20] sm:$0xff]  ;;  %v52_v10 = vld [vmem:[%s2417_s1 + $0x18] sm:$0xff] }
   0x4   :  { %115 = vmatpush.msra.mxu0 %v56_v2  ;;  %v340_v7 = vld [vmem:[%s2419_s3 + $0x28] sm:$0xff]  ;;  %v339_v9 = vld [vmem:[%s2419_s3 + $0x20] sm:$0xff]  ;;  %v338_v11 = vld [vmem:[%s2419_s3 + $0x18] sm:$0xff] }
   0x5   :  { %364 = vmatpush.msra.mxu1 %v342_v3 }
   0x6   :  { %116 = vmatpush.msra.mxu0 %v55_v4 }
   0x7   :  { %365 = vmatpush.msra.mxu1 %v341_v5 }
   0x8   :  { %117 = vmatpush.msra.mxu0 %v54_v6 }
   0x9   :  { %366 = vmatpush.msra.mxu1 %v340_v7 }
   0xa   :  { %14 = vsyncpa [#allocation3], 0  ;;  %118 = vmatpush.msra.mxu0 %v53_v8  ;;  %v51_v12 = vld [vmem:[%s2417_s1 + $0x10] sm:$0xff]  ;;  %v50_v14 = vld [vmem:[%s2417_s1 + $0x8] sm:$0xff]  ;;  %vm58_vm0 = vcmask 588800   ;;  %v1448_v42 = vmov 32.0  }
   0xb   :  { %367 = vmatpush.msra.mxu1 %v339_v9  ;;  %v337_v13 = vld [vmem:[%s2419_s3 + $0x10] sm:$0xff]  ;;  %v336_v15 = vld [vmem:[%s2419_s3 + $0x8] sm:$0xff]  ;;  %v49_v16 = vld [vmem:[%s2417_s1] sm:$0xff]  ;;  %1408 = vrcp.f32 %v1448_v42  ;;  %vm172_vm1 = vcmask 31744   ;;  %vm496_vm3 = vcmask 1043456   ;;  %vm565_vm11 = vcmask 64512  }
   0xc   :  { %119 = vmatpush.msra.mxu0 %v52_v10  ;;  %v335_v17 = vld [vmem:[%s2419_s3] sm:$0xff]  ;;  %v34_v20 = vld [vmem:[%s2416_s0 + $0x8] sm:$0xff]  ;;  %v35_v22 = vld [vmem:[%s2416_s0 + $0x10] sm:$0xff]  ;;  %vm833_vm15 = vcmask 261120   ;;  %s1315_s1 = sshll.u32 %s2425_s9, 4  ;;  %s1451_s28 = smov 128   ;;  %s1316_s1 = int_to_ptr.hbm [resolvable:$true] %s1315_s1 }
   0xd   :  { %368 = vmatpush.msra.mxu1 %v338_v11  ;;  %v33_v18 = vld [vmem:[%s2416_s0] sm:$0xff]  ;;  %v332_v21 = vld [vmem:[%s2418_s2 + $0x8] sm:$0xff]  ;;  %v333_v23 = vld [vmem:[%s2418_s2 + $0x10] sm:$0xff]  ;;  %s1452_s3 = smov 8  }
   0xe   :  { %120 = vmatpush.msra.mxu0 %v51_v12  ;;  %v331_v19 = vld [vmem:[%s2418_s2] sm:$0xff]  ;;  %v36_v24 = vld [vmem:[%s2416_s0 + $0x18] sm:$0xff]  ;;  %v38_v27 = vld [vmem:[%s2416_s0 + $0x28] sm:$0xff] }
   0xf   :  { %369 = vmatpush.msra.mxu1 %v337_v13  ;;  %v334_v25 = vld [vmem:[%s2418_s2 + $0x18] sm:$0xff]  ;;  %v37_v26 = vld [vmem:[%s2416_s0 + $0x20] sm:$0xff]  ;;  %v39_v28 = vld [vmem:[%s2416_s0 + $0x30] sm:$0xff] }
  0x10   :  { %121 = vmatpush.msra.mxu0 %v50_v14  ;;  %v40_v29 = vld [vmem:[%s2416_s0 + $0x38] sm:$0xff]  ;;  %v41_v30 = vld [vmem:[%s2416_s0 + $0x40] sm:$0xff]  ;;  %v42_v31 = vld [vmem:[%s2416_s0 + $0x48] sm:$0xff] }
  0x11   :  { %370 = vmatpush.msra.mxu1 %v336_v15  ;;  %v43_v32 = vld [vmem:[%s2416_s0 + $0x50] sm:$0xff]  ;;  %v44_v33 = vld [vmem:[%s2416_s0 + $0x58] sm:$0xff]  ;;  %v45_v34 = vld [vmem:[%s2416_s0 + $0x60] sm:$0xff]  ;;  %v1409_v47 = vpop.eup %1408 }
  0x12   :  { %122 = vmatpush.msra.mxu0 %v49_v16  ;;  %v46_v35 = vld [vmem:[%s2416_s0 + $0x68] sm:$0xff]  ;;  %v47_v36 = vld [vmem:[%s2416_s0 + $0x70] sm:$0xff]  ;;  %v48_v37 = vld [vmem:[%s2416_s0 + $0x78] sm:$0xff]  ;;  %v399_v50 = vmul.f32 32.0, %v1409_v47  ;;  %vm403_vm2 = vweird.f32 %v1409_v47 }
  0x13   :  { %371 = vmatpush.msra.mxu1 %v335_v17  ;;  %1327 = vmatmul.msk.f32.vlgmr.msra.gmra.mxu0 %vm58_vm0, %v33_v18 }
  0x14   :  { %1343 = vmatmul.msk.f32.vlgmr.msra.gmra.mxu1 %vm58_vm0, %v331_v19  ;;  %v400_v55 = vsub.f32 1.0, %v399_v50 }
  0x16   :  { %v401_v58 = vmul.f32 %v1409_v47, %v400_v55 }
  0x18   :  { %v402_v62 = vadd.f32 %v1409_v47, %v401_v58 }
  0x1a   :  { %v1651_v1 = vsel %vm403_vm2, %v1409_v47, %v402_v62 }
  0x1b   :  { %1328 = vmatmul.msk.f32.gmra.mxu0 %vm58_vm0, %v34_v20 }
  0x1c   :  { %1344 = vmatmul.msk.f32.gmra.mxu1 %vm58_vm0, %v332_v21 }
  0x23   :  { %1329 = vmatmul.msk.f32.gmra.mxu0 %vm58_vm0, %v35_v22 }
  0x24   :  { %1345 = vmatmul.msk.f32.gmra.mxu1 %vm58_vm0, %v333_v23  ;;  %v717_v23 = vld [vmem:[%s2422_s6] sm:$0xf] }
  0x25   :  { %1364 = vmatpush.msk.msrb.mxu0 %vm496_vm3, %v717_v23  ;;  %1401 = vmatpush.msk.msra.mxu3 %vm496_vm3, %v717_v23 }
  0x2b   :  { %1330 = vmatmul.msk.f32.gmra.mxu0 %vm58_vm0, %v36_v24 }
  0x2c   :  { %1346 = vmatmul.msk.f32.gmra.mxu1 %vm58_vm0, %v334_v25 }
  0x33   :  { %1331 = vmatmul.msk.f32.gmra.mxu0 %vm58_vm0, %v37_v26 }
  0x3b   :  { %1332 = vmatmul.msk.f32.gmra.mxu0 %vm58_vm0, %v38_v27 }
  0x43   :  { %1333 = vmatmul.msk.f32.gmra.mxu0 %vm58_vm0, %v39_v28 }
  0x4b   :  { %1334 = vmatmul.msk.f32.gmra.mxu0 %vm58_vm0, %v40_v29 }
  0x53   :  { %1335 = vmatmul.msk.f32.gmra.mxu0 %vm58_vm0, %v41_v30 }
  0x5b   :  { %1336 = vmatmul.msk.f32.gmra.mxu0 %vm58_vm0, %v42_v31 }
  0x63   :  { %1337 = vmatmul.msk.f32.gmra.mxu0 %vm58_vm0, %v43_v32 }
  0x6b   :  { %1338 = vmatmul.msk.f32.gmra.mxu0 %vm58_vm0, %v44_v33 }
  0x73   :  { %1339 = vmatmul.msk.f32.gmra.mxu0 %vm58_vm0, %v45_v34 }
  0x7b   :  { %1340 = vmatmul.msk.f32.gmra.mxu0 %vm58_vm0, %v46_v35 }
  0x83   :  { %1341 = vmatmul.msk.f32.gmra.mxu0 %vm58_vm0, %v47_v36 }
  0x8b   :  { %1342 = vmatmul.msk.f32.gmra.mxu0 %vm58_vm0, %v48_v37 }
  0x90   :  { %v1637_v38 = vpop.f32.mrf.mxu0 }
  0x91   :  { %v373_v39 = vpop.f32.mrf.mxu1 }
  0x92   :  { %v385_v43 = vsel %vm172_vm1, %v373_v39, 0.0 }
  0x98   :  { %v1639_v40 = vpop.f32.mrf.mxu0 }
  0x99   :  { %v376_v41 = vpop.f32.mrf.mxu1 }
  0x9a   :  { %v386_v44 = vsel %vm172_vm1, %v376_v41, 0.0 }
  0x9b   :  { %v387_v48 = vadd.f32 %v386_v44, %v385_v43 }
  0xa0   :  { %v1643_v45 = vpop.f32.mrf.mxu0 }
  0xa1   :  { %v379_v46 = vpop.f32.mrf.mxu1 }
  0xa2   :  { %v388_v49 = vsel %vm172_vm1, %v379_v46, 0.0 }
  0xa3   :  { %v389_v51 = vadd.f32 %v388_v49, %v387_v48  ;;  %v174_v49 = vsel %vm172_vm1, %v1639_v40, 0.0 }
  0xa8   :  { %v1646_v52 = vpop.f32.mrf.mxu0 }
  0xa9   :  { %v382_v53 = vpop.f32.mrf.mxu1  ;;  %v178_v55 = vsel %vm172_vm1, %v1646_v52, 0.0 }
  0xaa   :  { %v390_v54 = vsel %vm172_vm1, %v382_v53, 0.0 }
  0xab   :  { %v391_v56 = vadd.f32 %v390_v54, %v389_v51  ;;  %v173_v51 = vsel %vm172_vm1, %v1637_v38, 0.0 }
  0xac   :  { %v175_v54 = vadd.f32 %v174_v49, %v173_v51 }
  0xad   :  { %v392_v57 = vrot.slane %v391_v56, 4 }
  0xaf   :  { %v393_v59 = vadd.f32 %v392_v57, %v391_v56 }
  0xb0   :  { %v1649_v61 = vpop.f32.mrf.mxu0 }
  0xb1   :  { %v394_v60 = vrot.slane %v393_v59, 2 }
  0xb3   :  { %v395_v63 = vadd.f32 %v394_v60, %v393_v59  ;;  %v180_v59 = vsel %vm172_vm1, %v1649_v61, 0.0 }
  0xb5   :  { %v396_v0 = vrot.slane %v395_v63, 1 }
  0xb7   :  { %v397_v2 = vadd.f32 %v396_v0, %v395_v63 }
  0xb8   :  { %v1654_v4 = vpop.f32.mrf.mxu0 }
  0xb9   :  { %v405_v3 = vmul.f32 %v1651_v1, %v397_v2  ;;  %v182_v63 = vsel %vm172_vm1, %v1654_v4, 0.0 }
  0xbb   :  { %v406_v5 = vsub.f32 %v373_v39, %v405_v3  ;;  %v407_v6 = vsub.f32 %v376_v41, %v405_v3  ;;  %v408_v7 = vsub.f32 %v379_v46, %v405_v3  ;;  %v409_v8 = vsub.f32 %v382_v53, %v405_v3 }
  0xbc   :  { %v176_v53 = vsel %vm172_vm1, %v1643_v45, 0.0 }
  0xbd   :  { %v410_v9 = vmul.f32 %v406_v5, %v406_v5  ;;  %v411_v10 = vmul.f32 %v407_v6, %v407_v6  ;;  %v412_v11 = vmul.f32 %v408_v7, %v408_v7  ;;  %v413_v12 = vmul.f32 %v409_v8, %v409_v8 }
  0xbe   :  { %v177_v57 = vadd.f32 %v176_v53, %v175_v54 }
  0xbf   :  { %v414_v13 = vsel %vm172_vm1, %v410_v9, 0.0  ;;  %v415_v14 = vsel %vm172_vm1, %v411_v10, 0.0  ;;  %v417_v15 = vsel %vm172_vm1, %v412_v11, 0.0  ;;  %v419_v17 = vsel %vm172_vm1, %v413_v12, 0.0 }
  0xc0   :  { %v416_v16 = vadd.f32 %v415_v14, %v414_v13  ;;  %v1660_v18 = vpop.f32.mrf.mxu0  ;;  %v179_v60 = vadd.f32 %v178_v55, %v177_v57  ;;  %v1449_v13 = vmov 128.0  }
  0xc1   :  { %v184_v2 = vsel %vm172_vm1, %v1660_v18, 0.0 }
  0xc2   :  { %v418_v19 = vadd.f32 %v417_v15, %v416_v16  ;;  %v181_v0 = vadd.f32 %v180_v59, %v179_v60 }
  0xc4   :  { %v420_v20 = vadd.f32 %v419_v17, %v418_v19  ;;  %v183_v3 = vadd.f32 %v182_v63, %v181_v0 }
  0xc6   :  { %v421_v21 = vrot.slane %v420_v20, 4 }
  0xc8   :  { %v422_v22 = vadd.f32 %v421_v21, %v420_v20  ;;  %v1665_v24 = vpop.f32.mrf.mxu0 }
  0xca   :  { %v423_v25 = vrot.slane %v422_v22, 2 }
  0xcc   :  { %v424_v26 = vadd.f32 %v423_v25, %v422_v22 }
  0xce   :  { %v425_v27 = vrot.slane %v424_v26, 1 }
  0xd0   :  { %v426_v28 = vadd.f32 %v425_v27, %v424_v26  ;;  %v1669_v29 = vpop.f32.mrf.mxu0 }
  0xd2   :  { %v427_v30 = vmul.f32 %v426_v28, %v1651_v1 }
  0xd4   :  { %v428_v31 = vadd.f32 1e-05, %v427_v30 }
  0xd6   :  { %1410 = vrsqrt.f32 %v428_v31  ;;  %vm435_vm4 = vweird.f32 %v428_v31 }
  0xd7   :  { %1412 = vrcp.f32 %v1449_v13 }
  0xd8   :  { %v1672_v32 = vpop.f32.mrf.mxu0 }
  0xd9   :  { %v190_v11 = vsel %vm172_vm1, %v1672_v32, 0.0 }
  0xdc   :  { %v1411_v33 = vpop.eup %1410 }
  0xdd   :  { %v430_v34 = vmul.f32 %v1411_v33, %v428_v31  ;;  %vm436_vm5 = vweird.f32 %v1411_v33  ;;  %v1413_v21 = vpop.eup %1412 }
  0xde   :  { %vm437_vm6 = vmor %vm435_vm4, %vm436_vm5  ;;  %v211_v27 = vmul.f32 128.0, %v1413_v21  ;;  %vm215_vm7 = vweird.f32 %v1413_v21 }
  0xdf   :  { %v431_v35 = vmul.f32 %v1411_v33, %v430_v34 }
  0xe0   :  { %v1674_v37 = vpop.f32.mrf.mxu0  ;;  %v212_v34 = vsub.f32 1.0, %v211_v27 }
  0xe1   :  { %v432_v36 = vmul.f32 0.5, %v431_v35  ;;  %v192_v14 = vsel %vm172_vm1, %v1674_v37, 0.0 }
  0xe3   :  { %v433_v39 = vsub.f32 1.5, %v432_v36 }
  0xe5   :  { %v434_v41 = vmul.f32 %v1411_v33, %v433_v39  ;;  %v213_v39 = vmul.f32 %v1413_v21, %v212_v34 }
  0xe7   :  { %v438_v42 = vsel %vm437_vm6, %v1411_v33, %v434_v41 }
  0xe8   :  { %v439_v43 = vmul.f32 %v438_v42, %v406_v5  ;;  %v440_v44 = vmul.f32 %v438_v42, %v407_v6  ;;  %v1676_v46 = vpop.f32.mrf.mxu0  ;;  %v441_v50 = vmul.f32 %v438_v42, %v408_v7  ;;  %v442_v62 = vmul.f32 %v438_v42, %v409_v8 }
  0xe9   :  { %v186_v5 = vsel %vm172_vm1, %v1665_v24, 0.0  ;;  %v185_v7 = vadd.f32 %v184_v2, %v183_v3  ;;  %v188_v8 = vsel %vm172_vm1, %v1669_v29, 0.0  ;;  %v194_v16 = vsel %vm172_vm1, %v1676_v46, 0.0 }
  0xea   :  { %v443_v47 = vmax.f32 %v439_v43, 0.0  ;;  %v444_v48 = vmax.f32 %v440_v44, 0.0  ;;  %v445_v56 = vmax.f32 %v441_v50, 0.0  ;;  %v446_v6 = vmax.f32 %v442_v62, 0.0 }
  0xeb   :  { %v187_v10 = vadd.f32 %v186_v5, %v185_v7  ;;  %v214_v43 = vadd.f32 %v1413_v21, %v213_v39 }
  0xec   :  { %1365 = vmatmul.msk.f32.vlgmr.msrb.gmra.mxu0 %vm172_vm1, %v443_v47  ;;  %1366 = vmatmul.msk.f32.vlgmr.msra.gmra.mxu3 %vm172_vm1, %v444_v48 }
  0xed   :  { %v189_v12 = vadd.f32 %v188_v8, %v187_v10  ;;  %v1722_v48 = vsel %vm215_vm7, %v1413_v21, %v214_v43 }
  0xef   :  { %v191_v15 = vadd.f32 %v190_v11, %v189_v12 }
  0xf0   :  { %v1688_v58 = vpop.f32.mrf.mxu0 }
  0xf1   :  { %v193_v17 = vadd.f32 %v192_v14, %v191_v15  ;;  %v196_v20 = vsel %vm172_vm1, %v1688_v58, 0.0 }
  0xf3   :  { %v195_v22 = vadd.f32 %v194_v16, %v193_v17 }
  0xf4   :  { %1367 = vmatmul.msk.f32.gmra.mxu3 %vm172_vm1, %v445_v56 }
  0xf5   :  { %v197_v25 = vadd.f32 %v196_v20, %v195_v22 }
  0xf8   :  { %v1699_v9 = vpop.f32.mrf.mxu0 }
  0xf9   :  { %v198_v23 = vsel %vm172_vm1, %v1699_v9, 0.0 }
  0xfa   :  { %v199_v28 = vadd.f32 %v198_v23, %v197_v25 }
  0xfc   :  { %1368 = vmatmul.msk.f32.gmra.mxu3 %vm172_vm1, %v446_v6 }
 0x100   :  { %v1710_v19 = vpop.f32.mrf.mxu0 }
 0x101   :  { %v200_v26 = vsel %vm172_vm1, %v1710_v19, 0.0 }
 0x102   :  { %v201_v30 = vadd.f32 %v200_v26, %v199_v28 }
 0x108   :  { %v1718_v31 = vpop.f32.mrf.mxu0 }
 0x109   :  { %v202_v33 = vsel %vm172_vm1, %v1718_v31, 0.0 }
 0x10a   :  { %v203_v35 = vadd.f32 %v202_v33, %v201_v30 }
 0x10c   :  { %v204_v36 = vrot.slane %v203_v35, 4 }
 0x10e   :  { %v205_v41 = vadd.f32 %v204_v36, %v203_v35 }
 0x110   :  { %v206_v42 = vrot.slane %v205_v41, 2 }
 0x112   :  { %v207_v44 = vadd.f32 %v206_v42, %v205_v41 }
 0x114   :  { %v208_v47 = vrot.slane %v207_v44, 1 }
 0x116   :  { %v209_v49 = vadd.f32 %v208_v47, %v207_v44 }
 0x118   :  { %v217_v50 = vmul.f32 %v1722_v48, %v209_v49 }
 0x11a   :  { %v1726_v51 = vsub.f32 %v1637_v38, %v217_v50  ;;  %v1729_v53 = vsub.f32 %v1639_v40, %v217_v50  ;;  %v1732_v54 = vsub.f32 %v1643_v45, %v217_v50  ;;  %v1735_v55 = vsub.f32 %v1646_v52, %v217_v50 }
 0x11b   :  { %v1742_v59 = vsub.f32 %v1649_v61, %v217_v50  ;;  %v1747_v40 = vsub.f32 %v1654_v4, %v217_v50  ;;  %v1754_v63 = vsub.f32 %v1660_v18, %v217_v50  ;;  %v1760_v4 = vsub.f32 %v1665_v24, %v217_v50 }
 0x11c   :  { %v234_v56 = vmul.f32 %v1726_v51, %v1726_v51  ;;  %v235_v57 = vmul.f32 %v1729_v53, %v1729_v53  ;;  %v236_v38 = vmul.f32 %v1732_v54, %v1732_v54  ;;  %v237_v45 = vmul.f32 %v1735_v55, %v1735_v55 }
 0x11d   :  { %v238_v61 = vmul.f32 %v1742_v59, %v1742_v59  ;;  %v239_v3 = vmul.f32 %v1747_v40, %v1747_v40  ;;  %v1766_v7 = vsub.f32 %v1669_v29, %v217_v50  ;;  %v240_v18 = vmul.f32 %v1754_v63, %v1754_v63 }
 0x11e   :  { %v250_v52 = vsel %vm172_vm1, %v234_v56, 0.0  ;;  %v251_v60 = vsel %vm172_vm1, %v235_v57, 0.0  ;;  %v253_v0 = vsel %vm172_vm1, %v236_v38, 0.0  ;;  %v255_v5 = vsel %vm172_vm1, %v237_v45, 0.0  ;;  %v447_v45 = vld [vmem:[%s2421_s5] sm:$0xf] }
 0x11f   :  { %v252_v62 = vadd.f32 %v251_v60, %v250_v52  ;;  %v257_v8 = vsel %vm172_vm1, %v238_v61, 0.0  ;;  %v1772_v11 = vsub.f32 %v1672_v32, %v217_v50  ;;  %v241_v24 = vmul.f32 %v1760_v4, %v1760_v4  ;;  %1347 = vmatpush.msk.msra.mxu2 %vm496_vm3, %v447_v45 }
 0x120   :  { %v259_v12 = vsel %vm172_vm1, %v239_v3, 0.0  ;;  %v1778_v14 = vsub.f32 %v1674_v37, %v217_v50  ;;  %v242_v29 = vmul.f32 %v1766_v7, %v1766_v7  ;;  %v261_v15 = vsel %vm172_vm1, %v240_v18, 0.0 }
 0x121   :  { %v254_v2 = vadd.f32 %v253_v0, %v252_v62  ;;  %v1784_v17 = vsub.f32 %v1676_v46, %v217_v50  ;;  %v243_v32 = vmul.f32 %v1772_v11, %v1772_v11  ;;  %v263_v20 = vsel %vm172_vm1, %v241_v24, 0.0 }
 0x122   :  { %v1790_v22 = vsub.f32 %v1688_v58, %v217_v50  ;;  %v244_v37 = vmul.f32 %v1778_v14, %v1778_v14  ;;  %v265_v23 = vsel %vm172_vm1, %v242_v29, 0.0  ;;  %v1796_v26 = vsub.f32 %v1699_v9, %v217_v50 }
 0x123   :  { %v256_v6 = vadd.f32 %v255_v5, %v254_v2  ;;  %v245_v46 = vmul.f32 %v1784_v17, %v1784_v17  ;;  %v267_v27 = vsel %vm172_vm1, %v243_v32, 0.0  ;;  %v1802_v30 = vsub.f32 %v1710_v19, %v217_v50 }
 0x124   :  { %v246_v58 = vmul.f32 %v1790_v22, %v1790_v22  ;;  %v269_v33 = vsel %vm172_vm1, %v244_v37, 0.0  ;;  %v1808_v35 = vsub.f32 %v1718_v31, %v217_v50  ;;  %v247_v9 = vmul.f32 %v1796_v26, %v1796_v26 }
 0x125   :  { %v258_v10 = vadd.f32 %v257_v8, %v256_v6  ;;  %v271_v36 = vsel %vm172_vm1, %v245_v46, 0.0  ;;  %v248_v41 = vmul.f32 %v1802_v30, %v1802_v30  ;;  %vm1093_vm3 = vcmask 130048  }
 0x126   :  { %v273_v19 = vsel %vm172_vm1, %v246_v58, 0.0  ;;  %v249_v43 = vmul.f32 %v1808_v35, %v1808_v35  ;;  %v275_v44 = vsel %vm172_vm1, %v247_v9, 0.0 }
 0x127   :  { %v260_v13 = vadd.f32 %v259_v12, %v258_v10  ;;  %v277_v31 = vsel %vm172_vm1, %v248_v41, 0.0 }
 0x128   :  { %v279_v50 = vsel %vm172_vm1, %v249_v43, 0.0 }
 0x129   :  { %v262_v16 = vadd.f32 %v261_v15, %v260_v13 }
 0x12b   :  { %v264_v21 = vadd.f32 %v263_v20, %v262_v16 }
 0x12d   :  { %v266_v25 = vadd.f32 %v265_v23, %v264_v21 }
 0x12f   :  { %v268_v28 = vadd.f32 %v267_v27, %v266_v25 }
 0x131   :  { %v270_v34 = vadd.f32 %v269_v33, %v268_v28 }
 0x133   :  { %v272_v39 = vadd.f32 %v271_v36, %v270_v34 }
 0x135   :  { %v274_v42 = vadd.f32 %v273_v19, %v272_v39 }
 0x137   :  { %v276_v47 = vadd.f32 %v275_v44, %v274_v42 }
 0x139   :  { %v278_v49 = vadd.f32 %v277_v31, %v276_v47 }
 0x13b   :  { %v280_v56 = vadd.f32 %v279_v50, %v278_v49 }
 0x13d   :  { %v281_v57 = vrot.slane %v280_v56, 4 }
 0x13f   :  { %v282_v38 = vadd.f32 %v281_v57, %v280_v56 }
 0x141   :  { %v283_v52 = vrot.slane %v282_v38, 2 }
 0x143   :  { %v284_v60 = vadd.f32 %v283_v52, %v282_v38 }
 0x145   :  { %v285_v62 = vrot.slane %v284_v60, 1 }
 0x147   :  { %v286_v61 = vadd.f32 %v285_v62, %v284_v60 }
 0x149   :  { %v287_v0 = vmul.f32 %v286_v61, %v1722_v48 }
 0x14b   :  { %v288_v2 = vadd.f32 1e-05, %v287_v0 }
 0x14d   :  { %1414 = vrsqrt.f32 %v288_v2  ;;  %vm295_vm9 = vweird.f32 %v288_v2 }
 0x153   :  { %v1415_v3 = vpop.eup %1414 }
 0x154   :  { %v290_v5 = vmul.f32 %v1415_v3, %v288_v2  ;;  %vm296_vm8 = vweird.f32 %v1415_v3 }
 0x155   :  { %vm297_vm10 = vmor %vm295_vm9, %vm296_vm8 }
 0x156   :  { %v291_v6 = vmul.f32 %v1415_v3, %v290_v5 }
 0x158   :  { %v292_v18 = vmul.f32 0.5, %v291_v6 }
 0x15a   :  { %v293_v8 = vsub.f32 1.5, %v292_v18 }
 0x15c   :  { %v294_v10 = vmul.f32 %v1415_v3, %v293_v8 }
 0x15e   :  { %v1826_v24 = vsel %vm297_vm10, %v1415_v3, %v294_v10 }
 0x15f   :  { %v299_v12 = vmul.f32 %v1826_v24, %v1726_v51  ;;  %v300_v29 = vmul.f32 %v1826_v24, %v1729_v53  ;;  %v301_v32 = vmul.f32 %v1826_v24, %v1732_v54  ;;  %v302_v23 = vmul.f32 %v1826_v24, %v1735_v55 }
 0x160   :  { %v303_v34 = vmul.f32 %v1826_v24, %v1742_v59  ;;  %v304_v19 = vmul.f32 %v1826_v24, %v1747_v40  ;;  %v305_v56 = vmul.f32 %v1826_v24, %v1754_v63  ;;  %v306_v63 = vmul.f32 %v1826_v24, %v1760_v4 }
 0x161   :  { %v315_v13 = vmax.f32 %v299_v12, 0.0  ;;  %v316_v15 = vmax.f32 %v300_v29, 0.0  ;;  %v317_v20 = vmax.f32 %v301_v32, 0.0  ;;  %v318_v27 = vmax.f32 %v302_v23, 0.0 }
 0x162   :  { %v319_v39 = vmax.f32 %v303_v34, 0.0  ;;  %v320_v44 = vmax.f32 %v304_v19, 0.0  ;;  %v321_v61 = vmax.f32 %v305_v56, 0.0  ;;  %v322_v8 = vmax.f32 %v306_v63, 0.0  ;;  %v830_v63 = vld [vmem:[%s2420_s4 + $0x68] sm:$0xff] }
 0x163   :  { %1348 = vmatmul.msk.f32.vlgmr.msra.gmra.mxu2 %vm172_vm1, %v315_v13  ;;  %v307_v13 = vmul.f32 %v1826_v24, %v1766_v7  ;;  %v308_v4 = vmul.f32 %v1826_v24, %v1772_v11  ;;  %v311_v34 = vmul.f32 %v1826_v24, %v1790_v22  ;;  %v312_v22 = vmul.f32 %v1826_v24, %v1796_v26 }
 0x164   :  { %v314_v26 = vmul.f32 %v1826_v24, %v1808_v35  ;;  %v822_v35 = vld [vmem:[%s2420_s4 + $0x28] sm:$0xff] }
 0x165   :  { %v328_v19 = vmax.f32 %v312_v22, 0.0 }
 0x169   :  { %v750_v37 = vpop.f32.mrf.mxu0 }
 0x16a   :  { %v762_v53 = vsel %vm565_vm11, %v750_v37, 0.0 }
 0x16b   :  { %1349 = vmatmul.msk.f32.gmra.mxu2 %vm172_vm1, %v316_v15 }
 0x16f   :  { %v753_v16 = vpop.f32.mrf.mxu3 }
 0x170   :  { %v763_v51 = vsel %vm565_vm11, %v753_v16, 0.0 }
 0x171   :  { %v764_v46 = vadd.f32 %v763_v51, %v762_v53  ;;  %v309_v51 = vmul.f32 %v1826_v24, %v1778_v14 }
 0x173   :  { %1350 = vmatmul.msk.f32.gmra.mxu2 %vm172_vm1, %v317_v20  ;;  %v325_v53 = vmax.f32 %v309_v51, 0.0 }
 0x177   :  { %v756_v21 = vpop.f32.mrf.mxu3 }
 0x178   :  { %v765_v25 = vsel %vm565_vm11, %v756_v21, 0.0 }
 0x179   :  { %v766_v28 = vadd.f32 %v765_v25, %v764_v46 }
 0x17b   :  { %1351 = vmatmul.msk.f32.gmra.mxu2 %vm172_vm1, %v318_v27 }
 0x17f   :  { %v759_v58 = vpop.f32.mrf.mxu3 }
 0x180   :  { %v767_v54 = vsel %vm565_vm11, %v759_v58, 0.0 }
 0x181   :  { %v768_v33 = vadd.f32 %v767_v54, %v766_v28 }
 0x183   :  { %v769_v9 = vrot.slane %v768_v33, 4  ;;  %1352 = vmatmul.msk.f32.gmra.mxu2 %vm172_vm1, %v319_v39 }
 0x185   :  { %v770_v36 = vadd.f32 %v769_v9, %v768_v33 }
 0x187   :  { %v771_v55 = vrot.slane %v770_v36, 2 }
 0x189   :  { %v772_v41 = vadd.f32 %v771_v55, %v770_v36 }
 0x18b   :  { %v773_v42 = vrot.slane %v772_v41, 1  ;;  %1353 = vmatmul.msk.f32.gmra.mxu2 %vm172_vm1, %v320_v44 }
 0x18d   :  { %v774_v43 = vadd.f32 %v773_v42, %v772_v41  ;;  %v817_v41 = vld [vmem:[%s2420_s4] sm:$0xff]  ;;  %v818_v42 = vld [vmem:[%s2420_s4 + $0x8] sm:$0xff] }
 0x18f   :  { %v775_v47 = vmul.f32 %v774_v43, %v1651_v1  ;;  %v313_v43 = vmul.f32 %v1826_v24, %v1802_v30  ;;  %v821_v30 = vld [vmem:[%s2420_s4 + $0x20] sm:$0xff] }
 0x191   :  { %v776_v31 = vsub.f32 %v750_v37, %v775_v47  ;;  %v777_v49 = vsub.f32 %v753_v16, %v775_v47  ;;  %v778_v59 = vsub.f32 %v756_v21, %v775_v47  ;;  %v779_v50 = vsub.f32 %v759_v58, %v775_v47  ;;  %v819_v47 = vld [vmem:[%s2420_s4 + $0x10] sm:$0xff] }
 0x192   :  { %v323_v16 = vmax.f32 %v307_v13, 0.0  ;;  %v324_v21 = vmax.f32 %v308_v4, 0.0  ;;  %v329_v44 = vmax.f32 %v313_v43, 0.0 }
 0x193   :  { %v780_v57 = vmul.f32 %v776_v31, %v776_v31  ;;  %v781_v38 = vmul.f32 %v777_v49, %v777_v49  ;;  %v782_v45 = vmul.f32 %v778_v59, %v778_v59  ;;  %v783_v52 = vmul.f32 %v779_v50, %v779_v50  ;;  %1354 = vmatmul.msk.f32.gmra.mxu2 %vm172_vm1, %v321_v61 }
 0x195   :  { %v784_v40 = vsel %vm565_vm11, %v780_v57, 0.0  ;;  %v785_v60 = vsel %vm565_vm11, %v781_v38, 0.0  ;;  %v787_v0 = vsel %vm565_vm11, %v782_v45, 0.0  ;;  %v789_v3 = vsel %vm565_vm11, %v783_v52, 0.0  ;;  %v824_v57 = vld [vmem:[%s2420_s4 + $0x38] sm:$0xff]  ;;  %v825_v45 = vld [vmem:[%s2420_s4 + $0x40] sm:$0xff] }
 0x196   :  { %v786_v62 = vadd.f32 %v785_v60, %v784_v40  ;;  %v826_v40 = vld [vmem:[%s2420_s4 + $0x48] sm:$0xff] }
 0x198   :  { %v788_v2 = vadd.f32 %v787_v0, %v786_v62  ;;  %v827_v62 = vld [vmem:[%s2420_s4 + $0x50] sm:$0xff]  ;;  %v828_v0 = vld [vmem:[%s2420_s4 + $0x58] sm:$0xff] }
 0x19a   :  { %v790_v5 = vadd.f32 %v789_v3, %v788_v2  ;;  %v829_v3 = vld [vmem:[%s2420_s4 + $0x60] sm:$0xff] }
 0x19b   :  { %1355 = vmatmul.msk.f32.gmra.mxu2 %vm172_vm1, %v322_v8 }
 0x19c   :  { %v791_v6 = vrot.slane %v790_v5, 4 }
 0x19e   :  { %v792_v18 = vadd.f32 %v791_v6, %v790_v5 }
 0x1a0   :  { %v793_v10 = vrot.slane %v792_v18, 2 }
 0x1a2   :  { %v794_v12 = vadd.f32 %v793_v10, %v792_v18  ;;  %v831_v18 = vld [vmem:[%s2420_s4 + $0x70] sm:$0xff]  ;;  %v832_v10 = vld [vmem:[%s2420_s4 + $0x78] sm:$0xff] }
 0x1a3   :  { %1356 = vmatmul.msk.f32.gmra.mxu2 %vm172_vm1, %v323_v16 }
 0x1a4   :  { %v795_v29 = vrot.slane %v794_v12, 1 }
 0x1a6   :  { %v796_v15 = vadd.f32 %v795_v29, %v794_v12 }
 0x1a8   :  { %v797_v32 = vmul.f32 %v796_v15, %v1651_v1  ;;  %v310_v1 = vmul.f32 %v1826_v24, %v1784_v17  ;;  %v327_v17 = vmax.f32 %v311_v34, 0.0 }
 0x1aa   :  { %v798_v20 = vadd.f32 1e-05, %v797_v32  ;;  %v326_v28 = vmax.f32 %v310_v1, 0.0 }
 0x1ab   :  { %1357 = vmatmul.msk.f32.gmra.mxu2 %vm172_vm1, %v324_v21 }
 0x1ac   :  { %1416 = vrsqrt.f32 %v798_v20  ;;  %vm805_vm13 = vweird.f32 %v798_v20 }
 0x1b2   :  { %v1417_v37 = vpop.eup %1416 }
 0x1b3   :  { %v800_v7 = vmul.f32 %v1417_v37, %v798_v20  ;;  %1358 = vmatmul.msk.f32.gmra.mxu2 %vm172_vm1, %v325_v53  ;;  %vm806_vm12 = vweird.f32 %v1417_v37 }
 0x1b4   :  { %vm807_vm14 = vmor %vm805_vm13, %vm806_vm12 }
 0x1b5   :  { %v801_v23 = vmul.f32 %v1417_v37, %v800_v7 }
 0x1b7   :  { %v802_v25 = vmul.f32 0.5, %v801_v23 }
 0x1b9   :  { %v803_v46 = vsub.f32 1.5, %v802_v25 }
 0x1bb   :  { %v804_v11 = vmul.f32 %v1417_v37, %v803_v46  ;;  %1359 = vmatmul.msk.f32.gmra.mxu2 %vm172_vm1, %v326_v28 }
 0x1bd   :  { %v808_v27 = vsel %vm807_vm14, %v1417_v37, %v804_v11 }
 0x1be   :  { %v812_v58 = vmul.f32 %v808_v27, %v779_v50  ;;  %v811_v54 = vmul.f32 %v808_v27, %v778_v59  ;;  %v810_v33 = vmul.f32 %v808_v27, %v777_v49  ;;  %v809_v36 = vmul.f32 %v808_v27, %v776_v31  ;;  %v820_v49 = vld [vmem:[%s2420_s4 + $0x18] sm:$0xff]  ;;  %v823_v50 = vld [vmem:[%s2420_s4 + $0x30] sm:$0xff] }
 0x1bf   :  { %v330_v31 = vmax.f32 %v314_v26, 0.0 }
 0x1c0   :  { %v816_v14 = vmax.f32 %v812_v58, 0.0  ;;  %v815_v9 = vmax.f32 %v811_v54, 0.0  ;;  %v814_v39 = vmax.f32 %v810_v33, 0.0  ;;  %v813_v55 = vmax.f32 %v809_v36, 0.0 }
 0x1c2   :  { %894 = vmatpush.msrb.mxu3 %v816_v14 }
 0x1c3   :  { %1360 = vmatmul.msk.f32.gmra.mxu2 %vm172_vm1, %v327_v17 }
 0x1c4   :  { %895 = vmatpush.msrb.mxu3 %v815_v9 }
 0x1c6   :  { %896 = vmatpush.msrb.mxu3 %v814_v39 }
 0x1c8   :  { %897 = vmatpush.msrb.mxu3 %v813_v55 }
 0x1c9   :  { %1369 = vmatmul.msk.f32.vlgmr.msrb.gmra.mxu3 %vm833_vm15, %v817_v41 }
 0x1cb   :  { %1361 = vmatmul.msk.f32.gmra.mxu2 %vm172_vm1, %v328_v19 }
 0x1d1   :  { %1370 = vmatmul.msk.f32.gmra.mxu3 %vm833_vm15, %v818_v42 }
 0x1d3   :  { %1362 = vmatmul.msk.f32.gmra.mxu2 %vm172_vm1, %v329_v44 }
 0x1d9   :  { %1371 = vmatmul.msk.f32.gmra.mxu3 %vm833_vm15, %v819_v47 }
 0x1db   :  { %1363 = vmatmul.msk.f32.gmra.mxu2 %vm172_vm1, %v330_v31 }
 0x1e1   :  { %1372 = vmatmul.msk.f32.gmra.mxu3 %vm833_vm15, %v820_v49 }
 0x1e6   :  { %v1906_v59 = vpop.f32.mrf.mxu2 }
 0x1e7   :  { %v566_v29 = vsel %vm565_vm11, %v1906_v59, 0.0 }
 0x1e9   :  { %1373 = vmatmul.msk.f32.gmra.mxu3 %vm833_vm15, %v821_v30 }
 0x1ee   :  { %v1912_v24 = vpop.f32.mrf.mxu2 }
 0x1ef   :  { %v567_v13 = vsel %vm565_vm11, %v1912_v24, 0.0 }
 0x1f0   :  { %v568_v16 = vadd.f32 %v567_v13, %v566_v29 }
 0x1f1   :  { %1374 = vmatmul.msk.f32.gmra.mxu3 %vm833_vm15, %v822_v35 }
 0x1f6   :  { %v1918_v56 = vpop.f32.mrf.mxu2 }
 0x1f7   :  { %v569_v15 = vsel %vm565_vm11, %v1918_v56, 0.0 }
 0x1f8   :  { %v570_v4 = vadd.f32 %v569_v15, %v568_v16 }
 0x1f9   :  { %1375 = vmatmul.msk.f32.gmra.mxu3 %vm833_vm15, %v823_v50 }
 0x1fe   :  { %v1924_v38 = vpop.f32.mrf.mxu2 }
 0x1ff   :  { %v571_v32 = vsel %vm565_vm11, %v1924_v38, 0.0 }
 0x200   :  { %v572_v51 = vadd.f32 %v571_v32, %v570_v4 }
 0x201   :  { %1376 = vmatmul.msk.f32.gmra.mxu3 %vm833_vm15, %v824_v57 }
 0x206   :  { %v1930_v52 = vpop.f32.mrf.mxu2 }
 0x207   :  { %v573_v21 = vsel %vm565_vm11, %v1930_v52, 0.0 }
 0x208   :  { %v574_v23 = vadd.f32 %v573_v21, %v572_v51 }
 0x209   :  { %1377 = vmatmul.msk.f32.gmra.mxu3 %vm833_vm15, %v825_v45 }
 0x20e   :  { %v1936_v60 = vpop.f32.mrf.mxu2 }
 0x20f   :  { %v575_v7 = vsel %vm565_vm11, %v1936_v60, 0.0 }
 0x210   :  { %v576_v25 = vadd.f32 %v575_v7, %v574_v23 }
 0x211   :  { %1378 = vmatmul.msk.f32.gmra.mxu3 %vm833_vm15, %v826_v40 }
 0x216   :  { %v1942_v61 = vpop.f32.mrf.mxu2 }
 0x217   :  { %v577_v53 = vsel %vm565_vm11, %v1942_v61, 0.0 }
 0x218   :  { %v578_v1 = vadd.f32 %v577_v53, %v576_v25 }
 0x219   :  { %1379 = vmatmul.msk.f32.gmra.mxu3 %vm833_vm15, %v827_v62 }
 0x21e   :  { %v1948_v2 = vpop.f32.mrf.mxu2 }
 0x21f   :  { %v579_v46 = vsel %vm565_vm11, %v1948_v2, 0.0 }
 0x220   :  { %v580_v58 = vadd.f32 %v579_v46, %v578_v1 }
 0x221   :  { %1380 = vmatmul.msk.f32.gmra.mxu3 %vm833_vm15, %v828_v0 }
 0x226   :  { %v1954_v5 = vpop.f32.mrf.mxu2 }
 0x227   :  { %v581_v27 = vsel %vm565_vm11, %v1954_v5, 0.0 }
 0x228   :  { %v582_v14 = vadd.f32 %v581_v27, %v580_v58 }
 0x229   :  { %1381 = vmatmul.msk.f32.gmra.mxu3 %vm833_vm15, %v829_v3 }
 0x22e   :  { %v1960_v6 = vpop.f32.mrf.mxu2 }
 0x22f   :  { %v583_v54 = vsel %vm565_vm11, %v1960_v6, 0.0 }
 0x230   :  { %v584_v34 = vadd.f32 %v583_v54, %v582_v14 }
 0x231   :  { %1382 = vmatmul.msk.f32.gmra.mxu3 %vm833_vm15, %v830_v63 }
 0x236   :  { %v1966_v8 = vpop.f32.mrf.mxu2 }
 0x237   :  { %v585_v33 = vsel %vm565_vm11, %v1966_v8, 0.0 }
 0x238   :  { %v586_v36 = vadd.f32 %v585_v33, %v584_v34 }
 0x239   :  { %1383 = vmatmul.msk.f32.gmra.mxu3 %vm833_vm15, %v831_v18 }
 0x23e   :  { %v1972_v12 = vpop.f32.mrf.mxu2 }
 0x23f   :  { %v587_v9 = vsel %vm565_vm11, %v1972_v12, 0.0 }
 0x240   :  { %v588_v41 = vadd.f32 %v587_v9, %v586_v36 }
 0x241   :  { %1384 = vmatmul.msk.f32.gmra.mxu3 %vm833_vm15, %v832_v10 }
 0x246   :  { %v1982_v20 = vpop.f32.mrf.mxu2 }
 0x247   :  { %v589_v17 = vsel %vm565_vm11, %v1982_v20, 0.0 }
 0x248   :  { %v590_v19 = vadd.f32 %v589_v17, %v588_v41 }
 0x24c   :  { %v1986_v37 = vpop.f32.mrf.mxu3 }
 0x24e   :  { %v1994_v11 = vpop.f32.mrf.mxu2 }
 0x24f   :  { %v591_v22 = vsel %vm565_vm11, %v1994_v11, 0.0 }
 0x250   :  { %v592_v43 = vadd.f32 %v591_v22, %v590_v19 }
 0x254   :  { %v1998_v28 = vpop.f32.mrf.mxu3 }
 0x256   :  { %v2006_v39 = vpop.f32.mrf.mxu2 }
 0x257   :  { %v593_v42 = vsel %vm565_vm11, %v2006_v39, 0.0 }
 0x258   :  { %v594_v44 = vadd.f32 %v593_v42, %v592_v43 }
 0x25c   :  { %v2010_v55 = vpop.f32.mrf.mxu3 }
 0x25e   :  { %v2016_v47 = vpop.f32.mrf.mxu2 }
 0x25f   :  { %v595_v26 = vsel %vm565_vm11, %v2016_v47, 0.0 }
 0x260   :  { %v596_v49 = vadd.f32 %v595_v26, %v594_v44 }
 0x262   :  { %v597_v30 = vrot.slane %v596_v49, 4 }
 0x264   :  { %v2020_v31 = vpop.f32.mrf.mxu3  ;;  %v598_v35 = vadd.f32 %v597_v30, %v596_v49 }
 0x266   :  { %v599_v50 = vrot.slane %v598_v35, 2 }
 0x268   :  { %v600_v45 = vadd.f32 %v599_v50, %v598_v35 }
 0x26a   :  { %v601_v40 = vrot.slane %v600_v45, 1 }
 0x26c   :  { %v2022_v57 = vpop.f32.mrf.mxu3  ;;  %v602_v62 = vadd.f32 %v601_v40, %v600_v45 }
 0x26e   :  { %v603_v0 = vmul.f32 %v602_v62, %v1722_v48 }
 0x270   :  { %v2028_v63 = vsub.f32 %v1906_v59, %v603_v0  ;;  %v2031_v18 = vsub.f32 %v1912_v24, %v603_v0  ;;  %v2034_v10 = vsub.f32 %v1918_v56, %v603_v0  ;;  %v2037_v13 = vsub.f32 %v1924_v38, %v603_v0 }
 0x271   :  { %v2044_v16 = vsub.f32 %v1930_v52, %v603_v0  ;;  %v2051_v56 = vsub.f32 %v1936_v60, %v603_v0  ;;  %v2058_v51 = vsub.f32 %v1942_v61, %v603_v0  ;;  %v2064_v60 = vsub.f32 %v1948_v2, %v603_v0 }
 0x272   :  { %v620_v29 = vmul.f32 %v2028_v63, %v2028_v63  ;;  %v621_v15 = vmul.f32 %v2031_v18, %v2031_v18  ;;  %v622_v59 = vmul.f32 %v2034_v10, %v2034_v10  ;;  %v623_v38 = vmul.f32 %v2037_v13, %v2037_v13 }
 0x273   :  { %v624_v52 = vmul.f32 %v2044_v16, %v2044_v16  ;;  %v625_v53 = vmul.f32 %v2051_v56, %v2051_v56  ;;  %v2070_v1 = vsub.f32 %v1954_v5, %v603_v0  ;;  %v626_v61 = vmul.f32 %v2058_v51, %v2058_v51 }
 0x274   :  { %v2025_v3 = vpop.f32.mrf.mxu3  ;;  %v636_v32 = vsel %vm565_vm11, %v620_v29, 0.0  ;;  %v637_v4 = vsel %vm565_vm11, %v621_v15, 0.0  ;;  %v639_v7 = vsel %vm565_vm11, %v622_v59, 0.0  ;;  %v641_v25 = vsel %vm565_vm11, %v623_v38, 0.0 }
 0x275   :  { %v638_v21 = vadd.f32 %v637_v4, %v636_v32  ;;  %v643_v27 = vsel %vm565_vm11, %v624_v52, 0.0  ;;  %v2076_v54 = vsub.f32 %v1960_v6, %v603_v0  ;;  %v627_v2 = vmul.f32 %v2064_v60, %v2064_v60 }
 0x276   :  { %v645_v14 = vsel %vm565_vm11, %v625_v53, 0.0  ;;  %v2084_v5 = vsub.f32 %v1966_v8, %v603_v0  ;;  %v628_v9 = vmul.f32 %v2070_v1, %v2070_v1  ;;  %v647_v36 = vsel %vm565_vm11, %v626_v61, 0.0 }
 0x277   :  { %v640_v23 = vadd.f32 %v639_v7, %v638_v21  ;;  %v2090_v6 = vsub.f32 %v1972_v12, %v603_v0  ;;  %v629_v41 = vmul.f32 %v2076_v54, %v2076_v54  ;;  %v649_v22 = vsel %vm565_vm11, %v627_v2, 0.0  ;;  %v979_v2 = vld [vmem:[%s2423_s7] sm:$0xff] }
 0x278   :  { %v2096_v42 = vsub.f32 %v1982_v20, %v603_v0  ;;  %v630_v8 = vmul.f32 %v2084_v5, %v2084_v5  ;;  %v651_v43 = vsel %vm565_vm11, %v628_v9, 0.0  ;;  %v617_v26 = vsub.f32 %v1994_v11, %v603_v0  ;;  %1402 = vmatpush.msrb.mxu2 %v979_v2  ;;  %1043 = vmatpush.msrb.mxu1 %v979_v2 }
 0x279   :  { %v642_v46 = vadd.f32 %v641_v25, %v640_v23  ;;  %v631_v12 = vmul.f32 %v2090_v6, %v2090_v6  ;;  %v653_v49 = vsel %vm565_vm11, %v629_v41, 0.0  ;;  %v2106_v35 = vsub.f32 %v2006_v39, %v603_v0 }
 0x27a   :  { %v632_v20 = vmul.f32 %v2096_v42, %v2096_v42  ;;  %v655_v50 = vsel %vm565_vm11, %v630_v8, 0.0  ;;  %v2112_v62 = vsub.f32 %v2016_v47, %v603_v0  ;;  %v633_v11 = vmul.f32 %v617_v26, %v617_v26 }
 0x27b   :  { %v644_v58 = vadd.f32 %v643_v27, %v642_v46  ;;  %v657_v29 = vsel %vm565_vm11, %v631_v12, 0.0  ;;  %v634_v59 = vmul.f32 %v2106_v35, %v2106_v35 }
 0x27c   :  { %v2048_v24 = vpop.f32.mrf.mxu3  ;;  %v659_v39 = vsel %vm565_vm11, %v632_v20, 0.0  ;;  %v635_v32 = vmul.f32 %v2112_v62, %v2112_v62  ;;  %v661_v4 = vsel %vm565_vm11, %v633_v11, 0.0 }
 0x27d   :  { %v646_v34 = vadd.f32 %v645_v14, %v644_v58  ;;  %v663_v52 = vsel %vm565_vm11, %v634_v59, 0.0 }
 0x27e   :  { %v665_v0 = vsel %vm565_vm11, %v635_v32, 0.0 }
 0x27f   :  { %v648_v17 = vadd.f32 %v647_v36, %v646_v34 }
 0x281   :  { %v650_v19 = vadd.f32 %v649_v22, %v648_v17 }
 0x283   :  { %v652_v44 = vadd.f32 %v651_v43, %v650_v19 }
 0x284   :  { %v2081_v33 = vpop.f32.mrf.mxu3 }
 0x285   :  { %v654_v30 = vadd.f32 %v653_v49, %v652_v44 }
 0x287   :  { %v656_v40 = vadd.f32 %v655_v50, %v654_v30 }
 0x289   :  { %v658_v15 = vadd.f32 %v657_v29, %v656_v40 }
 0x28b   :  { %v660_v38 = vadd.f32 %v659_v39, %v658_v15 }
 0x28c   :  { %v923_v45 = vpop.f32.mrf.mxu3 }
 0x28d   :  { %v662_v21 = vadd.f32 %v661_v4, %v660_v38 }
 0x28f   :  { %v664_v47 = vadd.f32 %v663_v52, %v662_v21 }
 0x291   :  { %v666_v23 = vadd.f32 %v665_v0, %v664_v47 }
 0x293   :  { %v667_v53 = vrot.slane %v666_v23, 4 }
 0x294   :  { %v926_v7 = vpop.f32.mrf.mxu3 }
 0x295   :  { %v668_v25 = vadd.f32 %v667_v53, %v666_v23 }
 0x297   :  { %v669_v46 = vrot.slane %v668_v25, 2 }
 0x299   :  { %v670_v61 = vadd.f32 %v669_v46, %v668_v25 }
 0x29b   :  { %v671_v58 = vrot.slane %v670_v61, 1 }
 0x29c   :  { %v929_v27 = vpop.f32.mrf.mxu3 }
 0x29d   :  { %v672_v14 = vadd.f32 %v671_v58, %v670_v61 }
 0x29f   :  { %v673_v34 = vmul.f32 %v672_v14, %v1722_v48 }
 0x2a1   :  { %v674_v9 = vadd.f32 1e-05, %v673_v34 }
 0x2a3   :  { %1418 = vrsqrt.f32 %v674_v9  ;;  %vm681_vm1 = vweird.f32 %v674_v9 }
 0x2a4   :  { %v932_v36 = vpop.f32.mrf.mxu3 }
 0x2a9   :  { %v1419_v17 = vpop.eup %1418 }
 0x2aa   :  { %v676_v41 = vmul.f32 %v1419_v17, %v674_v9  ;;  %vm682_vm0 = vweird.f32 %v1419_v17 }
 0x2ab   :  { %vm683_vm2 = vmor %vm681_vm1, %vm682_vm0 }
 0x2ac   :  { %v677_v22 = vmul.f32 %v1419_v17, %v676_v41  ;;  %v935_v8 = vpop.f32.mrf.mxu3 }
 0x2ae   :  { %v678_v19 = vmul.f32 0.5, %v677_v22 }
 0x2b0   :  { %v679_v43 = vsub.f32 1.5, %v678_v19 }
 0x2b2   :  { %v680_v44 = vmul.f32 %v1419_v17, %v679_v43 }
 0x2b4   :  { %v2127_v12 = vsel %vm683_vm2, %v1419_v17, %v680_v44  ;;  %v938_v29 = vpop.f32.mrf.mxu3 }
 0x2b5   :  { %v693_v49 = vmul.f32 %v2127_v12, %v2070_v1  ;;  %v694_v30 = vmul.f32 %v2127_v12, %v2076_v54  ;;  %v695_v20 = vmul.f32 %v2127_v12, %v2084_v5  ;;  %v696_v38 = vmul.f32 %v2127_v12, %v2090_v6 }
 0x2b6   :  { %v697_v1 = vmul.f32 %v2127_v12, %v2096_v42  ;;  %v698_v54 = vmul.f32 %v2127_v12, %v617_v26  ;;  %v685_v5 = vmul.f32 %v2127_v12, %v2028_v63  ;;  %v686_v52 = vmul.f32 %v2127_v12, %v2031_v18 }
 0x2b7   :  { %v709_v50 = vmax.f32 %v693_v49, 0.0  ;;  %v710_v40 = vmax.f32 %v694_v30, 0.0  ;;  %v711_v11 = vmax.f32 %v695_v20, 0.0  ;;  %v712_v32 = vmax.f32 %v696_v38, 0.0 }
 0x2b8   :  { %v713_v4 = vmax.f32 %v697_v1, 0.0  ;;  %v714_v21 = vmax.f32 %v698_v54, 0.0  ;;  %v699_v6 = vmul.f32 %v2127_v12, %v2106_v35  ;;  %v702_v25 = vmax.f32 %v686_v52, 0.0 }
 0x2b9   :  { %v2135_v15 = vadd.f32 %v923_v45, %v709_v50  ;;  %v2137_v59 = vadd.f32 %v926_v7, %v710_v40  ;;  %v2139_v39 = vadd.f32 %v929_v27, %v711_v11  ;;  %v701_v45 = vmax.f32 %v685_v5, 0.0 }
 0x2ba   :  { %v958_v47 = vadd.f32 %v932_v36, %v712_v32  ;;  %v959_v0 = vadd.f32 %v935_v8, %v713_v4  ;;  %v960_v7 = vadd.f32 %v938_v29, %v714_v21  ;;  %v715_v63 = vmax.f32 %v699_v6, 0.0 }
 0x2bb   :  { %v947_v42 = vadd.f32 %v1986_v37, %v701_v45  ;;  %v948_v18 = vadd.f32 %v1998_v28, %v702_v25  ;;  %v687_v61 = vmul.f32 %v2127_v12, %v2034_v10  ;;  %v700_v35 = vmul.f32 %v2127_v12, %v2112_v62 }
 0x2bc   :  { %v941_v23 = vpop.f32.mrf.mxu3  ;;  %v976_v26 = vmul.f32 0.5, %v960_v7  ;;  %v688_v9 = vmul.f32 %v2127_v12, %v2037_v13  ;;  %v689_v41 = vmul.f32 %v2127_v12, %v2044_v16 }
 0x2bd   :  { %v963_v53 = vmul.f32 0.5, %v947_v42  ;;  %v961_v46 = vadd.f32 %v941_v23, %v715_v63  ;;  %v964_v37 = vmul.f32 0.5, %v948_v18  ;;  %v703_v2 = vmax.f32 %v687_v61, 0.0 }
 0x2be   :  { %1398 = vmatmul.msk.f32.vlgmr.msrb.gmra.mxu2 %vm565_vm11, %v976_v26  ;;  %v716_v14 = vmax.f32 %v700_v35, 0.0  ;;  %v704_v10 = vmax.f32 %v688_v9, 0.0  ;;  %v705_v19 = vmax.f32 %v689_v41, 0.0 }
 0x2bf   :  { %1385 = vmatmul.msk.f32.vlgmr.msrb.gmra.mxu1 %vm565_vm11, %v963_v53  ;;  %v977_v27 = vmul.f32 0.5, %v961_v46  ;;  %v949_v28 = vadd.f32 %v2010_v55, %v703_v2  ;;  %v690_v55 = vmul.f32 %v2127_v12, %v2051_v56 }
 0x2c0   :  { %v950_v62 = vadd.f32 %v2020_v31, %v704_v10  ;;  %v951_v13 = vadd.f32 %v2022_v57, %v705_v19  ;;  %v691_v31 = vmul.f32 %v2127_v12, %v2058_v51  ;;  %v692_v57 = vmul.f32 %v2127_v12, %v2064_v60 }
 0x2c1   :  { %v965_v17 = vmul.f32 0.5, %v949_v28  ;;  %v706_v43 = vmax.f32 %v690_v55, 0.0  ;;  %v972_v51 = vmul.f32 0.5, %v2137_v59  ;;  %v974_v60 = vmul.f32 0.5, %v958_v47 }
 0x2c2   :  { %v966_v22 = vmul.f32 0.5, %v950_v62  ;;  %v967_v8 = vmul.f32 0.5, %v951_v13  ;;  %v707_v16 = vmax.f32 %v691_v31, 0.0  ;;  %v708_v56 = vmax.f32 %v692_v57, 0.0 }
 0x2c3   :  { %v952_v44 = vadd.f32 %v2025_v3, %v706_v43  ;;  %v971_v3 = vmul.f32 0.5, %v2135_v15  ;;  %v975_v12 = vmul.f32 0.5, %v959_v0 }
 0x2c4   :  { %v944_v58 = vpop.f32.mrf.mxu3  ;;  %v953_v30 = vadd.f32 %v2048_v24, %v707_v16  ;;  %v954_v50 = vadd.f32 %v2081_v33, %v708_v56  ;;  %v973_v24 = vmul.f32 0.5, %v2139_v39 }
 0x2c5   :  { %v962_v34 = vadd.f32 %v944_v58, %v716_v14  ;;  %v968_v49 = vmul.f32 0.5, %v952_v44 }
 0x2c6   :  { %1399 = vmatmul.msk.f32.gmra.mxu2 %vm565_vm11, %v977_v27  ;;  %v969_v20 = vmul.f32 0.5, %v953_v30  ;;  %v970_v40 = vmul.f32 0.5, %v954_v50 }
 0x2c7   :  { %1386 = vmatmul.msk.f32.gmra.mxu1 %vm565_vm11, %v964_v37  ;;  %v978_v36 = vmul.f32 0.5, %v962_v34 }
 0x2ce   :  { %1400 = vmatmul.msk.f32.gmra.mxu2 %vm565_vm11, %v978_v36 }
 0x2cf   :  { %1387 = vmatmul.msk.f32.gmra.mxu1 %vm565_vm11, %v965_v17 }
 0x2d7   :  { %1388 = vmatmul.msk.f32.gmra.mxu1 %vm565_vm11, %v966_v22 }
 0x2df   :  { %1389 = vmatmul.msk.f32.gmra.mxu1 %vm565_vm11, %v967_v8 }
 0x2e7   :  { %1390 = vmatmul.msk.f32.gmra.mxu1 %vm565_vm11, %v968_v49 }
 0x2ef   :  { %1391 = vmatmul.msk.f32.gmra.mxu1 %vm565_vm11, %v969_v20 }
 0x2f7   :  { %1392 = vmatmul.msk.f32.gmra.mxu1 %vm565_vm11, %v970_v40 }
 0x2ff   :  { %1393 = vmatmul.msk.f32.gmra.mxu1 %vm565_vm11, %v971_v3 }
 0x307   :  { %1394 = vmatmul.msk.f32.gmra.mxu1 %vm565_vm11, %v972_v51 }
 0x30f   :  { %1395 = vmatmul.msk.f32.gmra.mxu1 %vm565_vm11, %v973_v24 }
 0x317   :  { %1396 = vmatmul.msk.f32.gmra.mxu1 %vm565_vm11, %v974_v60 }
 0x31f   :  { %1397 = vmatmul.msk.f32.gmra.mxu1 %vm565_vm11, %v975_v12 }
 0x33c   :  { %v1045_v33 = vpop.f32.mrf.mxu1 }
 0x33d   :  { %v1094_v4 = vsel %vm1093_vm3, %v1045_v33, 0.0 }
 0x341   :  { %v2204_v7 = vpop.f32.mrf.mxu2 }
 0x342   :  { %v1119_v62 = vsel %vm1093_vm3, %v2204_v7, 0.0 }
 0x344   :  { %v1048_v11 = vpop.f32.mrf.mxu1 }
 0x345   :  { %v1095_v32 = vsel %vm1093_vm3, %v1048_v11, 0.0 }
 0x346   :  { %v1096_v45 = vadd.f32 %v1095_v32, %v1094_v4 }
 0x349   :  { %v2216_v58 = vpop.f32.mrf.mxu2 }
 0x34a   :  { %v1121_v19 = vsel %vm1093_vm3, %v2216_v58, 0.0 }
 0x34c   :  { %v1051_v29 = vpop.f32.mrf.mxu1 }
 0x34d   :  { %v1097_v21 = vsel %vm1093_vm3, %v1051_v29, 0.0 }
 0x34e   :  { %v1098_v47 = vadd.f32 %v1097_v21, %v1096_v45 }
 0x351   :  { %v1090_v41 = vpop.f32.mrf.mxu2 }
 0x352   :  { %v1123_v55 = vsel %vm1093_vm3, %v1090_v41, 0.0 }
 0x354   :  { %v1054_v15 = vpop.f32.mrf.mxu1 }
 0x355   :  { %v1099_v52 = vsel %vm1093_vm3, %v1054_v15, 0.0 }
 0x356   :  { %v1100_v6 = vadd.f32 %v1099_v52, %v1098_v47 }
 0x35c   :  { %v1057_v38 = vpop.f32.mrf.mxu1 }
 0x35d   :  { %v1101_v0 = vsel %vm1093_vm3, %v1057_v38, 0.0 }
 0x35e   :  { %v1102_v26 = vadd.f32 %v1101_v0, %v1100_v6 }
 0x364   :  { %v1060_v1 = vpop.f32.mrf.mxu1 }
 0x365   :  { %v1103_v42 = vsel %vm1093_vm3, %v1060_v1, 0.0 }
 0x366   :  { %v1104_v25 = vadd.f32 %v1103_v42, %v1102_v26 }
 0x36c   :  { %v1063_v54 = vpop.f32.mrf.mxu1 }
 0x36d   :  { %v1105_v53 = vsel %vm1093_vm3, %v1063_v54, 0.0 }
 0x36e   :  { %v1106_v46 = vadd.f32 %v1105_v53, %v1104_v25 }
 0x374   :  { %v2193_v59 = vpop.f32.mrf.mxu1 }
 0x375   :  { %v1107_v63 = vsel %vm1093_vm3, %v2193_v59, 0.0 }
 0x376   :  { %v1108_v61 = vadd.f32 %v1107_v63, %v1106_v46 }
 0x37c   :  { %v2195_v5 = vpop.f32.mrf.mxu1 }
 0x37d   :  { %v1109_v18 = vsel %vm1093_vm3, %v2195_v5, 0.0 }
 0x37e   :  { %v1110_v37 = vadd.f32 %v1109_v18, %v1108_v61 }
 0x384   :  { %v2197_v39 = vpop.f32.mrf.mxu1 }
 0x385   :  { %v1111_v27 = vsel %vm1093_vm3, %v2197_v39, 0.0 }
 0x386   :  { %v1112_v14 = vadd.f32 %v1111_v27, %v1110_v37 }
 0x38c   :  { %v2206_v23 = vpop.f32.mrf.mxu1 }
 0x38d   :  { %v1113_v2 = vsel %vm1093_vm3, %v2206_v23, 0.0 }
 0x38e   :  { %v1114_v9 = vadd.f32 %v1113_v2, %v1112_v14 }
 0x394   :  { %v1078_v35 = vpop.f32.mrf.mxu1 }
 0x395   :  { %v1115_v34 = vsel %vm1093_vm3, %v1078_v35, 0.0 }
 0x396   :  { %v1116_v28 = vadd.f32 %v1115_v34, %v1114_v9 }
 0x39c   :  { %v1081_v36 = vpop.f32.mrf.mxu1 }
 0x39d   :  { %v1117_v10 = vsel %vm1093_vm3, %v1081_v36, 0.0 }
 0x39e   :  { %v1118_v17 = vadd.f32 %v1117_v10, %v1116_v28 }
 0x3a0   :  { %v1120_v22 = vadd.f32 %v1119_v62, %v1118_v17 }
 0x3a2   :  { %v1122_v13 = vadd.f32 %v1121_v19, %v1120_v22 }
 0x3a4   :  { %v1124_v8 = vadd.f32 %v1123_v55, %v1122_v13 }
 0x3a6   :  { %v1125_v43 = vrot.slane %v1124_v8, 4 }
 0x3a8   :  { %v1126_v44 = vadd.f32 %v1125_v43, %v1124_v8 }
 0x3aa   :  { %v1127_v31 = vrot.slane %v1126_v44, 2 }
 0x3ac   :  { %v1128_v49 = vadd.f32 %v1127_v31, %v1126_v44 }
 0x3ae   :  { %v1129_v16 = vrot.slane %v1128_v49, 1 }
 0x3b0   :  { %v1130_v30 = vadd.f32 %v1129_v16, %v1128_v49 }
 0x3b2   :  { %v1131_v57 = vmul.f32 %v1130_v30, %v1722_v48 }
 0x3b4   :  { %v2228_v20 = vsub.f32 %v1045_v33, %v1131_v57  ;;  %v2230_v56 = vsub.f32 %v1048_v11, %v1131_v57  ;;  %v2232_v50 = vsub.f32 %v1051_v29, %v1131_v57  ;;  %v2234_v40 = vsub.f32 %v1054_v15, %v1131_v57 }
 0x3b5   :  { %v2240_v24 = vsub.f32 %v1057_v38, %v1131_v57  ;;  %v2244_v12 = vsub.f32 %v1060_v1, %v1131_v57  ;;  %v2250_v32 = vsub.f32 %v1063_v54, %v1131_v57  ;;  %v2256_v45 = vsub.f32 %v2193_v59, %v1131_v57 }
 0x3b6   :  { %v1148_v3 = vmul.f32 %v2228_v20, %v2228_v20  ;;  %v1149_v51 = vmul.f32 %v2230_v56, %v2230_v56  ;;  %v1150_v60 = vmul.f32 %v2232_v50, %v2232_v50  ;;  %v1151_v33 = vmul.f32 %v2234_v40, %v2234_v40 }
 0x3b7   :  { %v1152_v4 = vmul.f32 %v2240_v24, %v2240_v24  ;;  %v1153_v1 = vmul.f32 %v2244_v12, %v2244_v12  ;;  %v2262_v0 = vsub.f32 %v2195_v5, %v1131_v57  ;;  %v1154_v54 = vmul.f32 %v2250_v32, %v2250_v32 }
 0x3b8   :  { %v1164_v11 = vsel %vm1093_vm3, %v1148_v3, 0.0  ;;  %v1165_v29 = vsel %vm1093_vm3, %v1149_v51, 0.0  ;;  %v1167_v38 = vsel %vm1093_vm3, %v1150_v60, 0.0  ;;  %v1169_v52 = vsel %vm1093_vm3, %v1151_v33, 0.0 }
 0x3b9   :  { %v1166_v15 = vadd.f32 %v1165_v29, %v1164_v11  ;;  %v1171_v6 = vsel %vm1093_vm3, %v1152_v4, 0.0  ;;  %v2268_v26 = vsub.f32 %v2197_v39, %v1131_v57  ;;  %v1155_v59 = vmul.f32 %v2256_v45, %v2256_v45 }
 0x3ba   :  { %v1173_v53 = vsel %vm1093_vm3, %v1153_v1, 0.0  ;;  %v2274_v63 = vsub.f32 %v2206_v23, %v1131_v57  ;;  %v1156_v5 = vmul.f32 %v2262_v0, %v2262_v0  ;;  %v1175_v46 = vsel %vm1093_vm3, %v1154_v54, 0.0  ;;  %v1229_v54 = vld [vmem:[%s2424_s8] sm:$0xff] }
 0x3bb   :  { %v1168_v21 = vadd.f32 %v1167_v38, %v1166_v15  ;;  %v2279_v61 = vsub.f32 %v1078_v35, %v1131_v57  ;;  %v1157_v39 = vmul.f32 %v2268_v26, %v2268_v26  ;;  %v1177_v27 = vsel %vm1093_vm3, %v1155_v59, 0.0  ;;  %v1232_v59 = vld [vmem:[%s2424_s8 + $0x18] sm:$0xff] }
 0x3bc   :  { %v2284_v2 = vsub.f32 %v1081_v36, %v1131_v57  ;;  %v1158_v23 = vmul.f32 %v2274_v63, %v2274_v63  ;;  %v1179_v14 = vsel %vm1093_vm3, %v1156_v5, 0.0  ;;  %v2290_v9 = vsub.f32 %v2204_v7, %v1131_v57 }
 0x3bd   :  { %v1170_v47 = vadd.f32 %v1169_v52, %v1168_v21  ;;  %v1159_v35 = vmul.f32 %v2279_v61, %v2279_v61  ;;  %v1181_v28 = vsel %vm1093_vm3, %v1157_v39, 0.0  ;;  %v2296_v17 = vsub.f32 %v2216_v58, %v1131_v57 }
 0x3be   :  { %v1160_v36 = vmul.f32 %v2284_v2, %v2284_v2  ;;  %v1183_v62 = vsel %vm1093_vm3, %v1158_v23, 0.0  ;;  %v2301_v19 = vsub.f32 %v1090_v41, %v1131_v57  ;;  %v1161_v7 = vmul.f32 %v2290_v9, %v2290_v9  ;;  %v1234_v23 = vld [vmem:[%s2424_s8 + $0x28] sm:$0xff] }
 0x3bf   :  { %v1172_v42 = vadd.f32 %v1171_v6, %v1170_v47  ;;  %v1185_v13 = vsel %vm1093_vm3, %v1159_v35, 0.0  ;;  %v1162_v8 = vmul.f32 %v2296_v17, %v2296_v17  ;;  %v1230_v6 = vld [vmem:[%s2424_s8 + $0x8] sm:$0xff]  ;;  %v1245_v5 = vmul.f32 2.0, %v1229_v54 }
 0x3c0   :  { %v1187_v58 = vsel %vm1093_vm3, %v1160_v36, 0.0  ;;  %v1163_v44 = vmul.f32 %v2301_v19, %v2301_v19  ;;  %v1189_v31 = vsel %vm1093_vm3, %v1161_v7, 0.0  ;;  %v1250_v36 = vmul.f32 2.0, %v1234_v23 }
 0x3c1   :  { %v1174_v25 = vadd.f32 %v1173_v53, %v1172_v42  ;;  %v1191_v41 = vsel %vm1093_vm3, %v1162_v8, 0.0  ;;  %v1240_v8 = vld [vmem:[%s2424_s8 + $0x58] sm:$0xff] }
 0x3c2   :  { %v1193_v30 = vsel %vm1093_vm3, %v1163_v44, 0.0 }
 0x3c3   :  { %v1176_v18 = vadd.f32 %v1175_v46, %v1174_v25  ;;  %v1233_v25 = vld [vmem:[%s2424_s8 + $0x20] sm:$0xff]  ;;  %v1246_v46 = vmul.f32 2.0, %v1230_v6 }
 0x3c5   :  { %v1178_v37 = vadd.f32 %v1177_v27, %v1176_v18 }
 0x3c7   :  { %v1180_v34 = vadd.f32 %v1179_v14, %v1178_v37  ;;  %v1248_v14 = vmul.f32 2.0, %v1232_v59 }
 0x3c9   :  { %v1182_v10 = vadd.f32 %v1181_v28, %v1180_v34 }
 0x3cb   :  { %v1184_v22 = vadd.f32 %v1183_v62, %v1182_v10 }
 0x3cd   :  { %v1186_v55 = vadd.f32 %v1185_v13, %v1184_v22 }
 0x3cf   :  { %v1188_v43 = vadd.f32 %v1187_v58, %v1186_v55 }
 0x3d1   :  { %v1190_v49 = vadd.f32 %v1189_v31, %v1188_v43 }
 0x3d3   :  { %v1192_v16 = vadd.f32 %v1191_v41, %v1190_v49  ;;  %v1241_v41 = vld [vmem:[%s2424_s8 + $0x60] sm:$0xff] }
 0x3d5   :  { %v1194_v57 = vadd.f32 %v1193_v30, %v1192_v16 }
 0x3d7   :  { %v1195_v3 = vrot.slane %v1194_v57, 4 }
 0x3d9   :  { %v1196_v51 = vadd.f32 %v1195_v3, %v1194_v57  ;;  %v1242_v57 = vld [vmem:[%s2424_s8 + $0x68] sm:$0xff] }
 0x3db   :  { %v1197_v60 = vrot.slane %v1196_v51, 2 }
 0x3dd   :  { %v1198_v33 = vadd.f32 %v1197_v60, %v1196_v51 }
 0x3df   :  { %v1199_v11 = vrot.slane %v1198_v33, 1 }
 0x3e1   :  { %v1200_v29 = vadd.f32 %v1199_v11, %v1198_v33  ;;  %v1256_v11 = vmul.f32 2.0, %v1240_v8 }
 0x3e3   :  { %v1201_v15 = vmul.f32 %v1200_v29, %v1722_v48  ;;  %v1231_v48 = vld [vmem:[%s2424_s8 + $0x10] sm:$0xff] }
 0x3e4   :  { %v1247_v18 = vmul.f32 2.0, %v1231_v48 }
 0x3e5   :  { %v1202_v4 = vadd.f32 1e-05, %v1201_v15 }
 0x3e7   :  { %1420 = vrsqrt.f32 %v1202_v4  ;;  %vm1209_vm5 = vweird.f32 %v1202_v4 }
 0x3ed   :  { %v1421_v38 = vpop.eup %1420 }
 0x3ee   :  { %v1204_v21 = vmul.f32 %v1421_v38, %v1202_v4  ;;  %vm1210_vm4 = vweird.f32 %v1421_v38 }
 0x3ef   :  { %vm1211_vm6 = vmor %vm1209_vm5, %vm1210_vm4 }
 0x3f0   :  { %v1205_v1 = vmul.f32 %v1421_v38, %v1204_v21  ;;  %v1257_v21 = vmul.f32 2.0, %v1241_v41 }
 0x3f2   :  { %v1206_v52 = vmul.f32 0.5, %v1205_v1 }
 0x3f4   :  { %v1207_v47 = vsub.f32 1.5, %v1206_v52 }
 0x3f6   :  { %v1208_v42 = vmul.f32 %v1421_v38, %v1207_v47  ;;  %v1258_v47 = vmul.f32 2.0, %v1242_v57 }
 0x3f8   :  { %v2327_v53 = vsel %vm1211_vm6, %v1421_v38, %v1208_v42  ;;  %v1244_v38 = vld [vmem:[%s2424_s8 + $0x78] sm:$0xff] }
 0x3f9   :  { %v1213_v39 = vmul.f32 %v2327_v53, %v2228_v20  ;;  %v1214_v27 = vmul.f32 %v2327_v53, %v2230_v56  ;;  %v1215_v37 = vmul.f32 %v2327_v53, %v2232_v50  ;;  %v1216_v34 = vmul.f32 %v2327_v53, %v2234_v40  ;;  %v1235_v50 = vld [vmem:[%s2424_s8 + $0x30] sm:$0xff]  ;;  %v1236_v40 = vld [vmem:[%s2424_s8 + $0x38] sm:$0xff] }
 0x3fa   :  { %v1218_v35 = vmul.f32 %v2327_v53, %v2244_v12  ;;  %v1219_v20 = vmul.f32 %v2327_v53, %v2250_v32  ;;  %v1220_v56 = vmul.f32 %v2327_v53, %v2256_v45  ;;  %v1217_v28 = vmul.f32 %v2327_v53, %v2240_v24  ;;  %v1237_v32 = vld [vmem:[%s2424_s8 + $0x40] sm:$0xff]  ;;  %v1238_v45 = vld [vmem:[%s2424_s8 + $0x48] sm:$0xff]  ;;  %v1239_v24 = vld [vmem:[%s2424_s8 + $0x50] sm:$0xff] }
 0x3fb   :  { %v1221_v10 = vmul.f32 %v2327_v53, %v2262_v0  ;;  %v1249_v12 = vmul.f32 2.0, %v1233_v25  ;;  %v1251_v62 = vmul.f32 2.0, %v1235_v50  ;;  %v1261_v0 = vadd.f32 %v1245_v5, %v1213_v39 }
 0x3fc   :  { %v1262_v22 = vadd.f32 %v1246_v46, %v1214_v27  ;;  %v1263_v7 = vadd.f32 %v1247_v18, %v1215_v37  ;;  %v1252_v13 = vmul.f32 2.0, %v1236_v40  ;;  %v1264_v55 = vadd.f32 %v1248_v14, %v1216_v34 }
 0x3fd   :  { %v1253_v58 = vmul.f32 2.0, %v1237_v32  ;;  %v1254_v43 = vmul.f32 2.0, %v1238_v45  ;;  %v1265_v44 = vadd.f32 %v1249_v12, %v1217_v28  ;;  %v1222_v31 = vmul.f32 %v2327_v53, %v2268_v26 }
 0x3fe   :  { %v1223_v49 = vmul.f32 %v2327_v53, %v2274_v63  ;;  %v1255_v16 = vmul.f32 2.0, %v1239_v24  ;;  %v1266_v30 = vadd.f32 %v1250_v36, %v1218_v35  ;;  %v1267_v3 = vadd.f32 %v1251_v62, %v1219_v20  ;;  %v1243_v63 = vld [vmem:[%s2424_s8 + $0x70] sm:$0xff]  ;;  %s1450_s8 = smov [#allocation2]  }
 0x3ff   :  { %v1277_v51 = vmax.f32 %v1261_v0, 0.0  ;;  %v1278_v60 = vmax.f32 %v1262_v22, 0.0  ;;  %v1279_v33 = vmax.f32 %v1263_v7, 0.0  ;;  %v1224_v26 = vmul.f32 %v2327_v53, %v2279_v61  ;;  %s1313_s25 = sshll.u32 %s1450_s8, 4  ;;  %s1314_s25 = int_to_ptr.vmem [resolvable:$true] %s1313_s25 }
 0x400   :  { %v1268_v29 = vadd.f32 %v1252_v13, %v1220_v56  ;;  %v1280_v15 = vmax.f32 %v1264_v55, 0.0  ;;  %v1225_v4 = vmul.f32 %v2327_v53, %v2284_v2  ;;  %v1269_v1 = vadd.f32 %v1253_v58, %v1221_v10 }
 0x401   :  { %v1281_v52 = vmax.f32 %v1265_v44, 0.0  ;;  %1293 = vst.msk [vmem:[#allocation2] sm:$0xff] %vm1093_vm3, %v1277_v51  ;;  %v1226_v61 = vmul.f32 %v2327_v53, %v2290_v9  ;;  %v1270_v54 = vadd.f32 %v1254_v43, %v1222_v31  ;;  %v1282_v6 = vmax.f32 %v1266_v30, 0.0 }
 0x402   :  { %1294 = vst.msk [vmem:[#allocation2 + $0x8] sm:$0xff] %vm1093_vm3, %v1278_v60  ;;  %v1227_v2 = vmul.f32 %v2327_v53, %v2296_v17  ;;  %v1259_v48 = vmul.f32 2.0, %v1243_v63  ;;  %v1271_v42 = vadd.f32 %v1255_v16, %v1223_v49  ;;  %v1283_v59 = vmax.f32 %v1267_v3, 0.0 }
 0x403   :  { %1295 = vst.msk [vmem:[#allocation2 + $0x10] sm:$0xff] %vm1093_vm3, %v1279_v33  ;;  %v1228_v25 = vmul.f32 %v2327_v53, %v2301_v19  ;;  %v1260_v5 = vmul.f32 2.0, %v1244_v38  ;;  %v1272_v46 = vadd.f32 %v1256_v11, %v1224_v26  ;;  %v1284_v18 = vmax.f32 %v1268_v29, 0.0 }
 0x404   :  { %1296 = vst.msk [vmem:[#allocation2 + $0x18] sm:$0xff] %vm1093_vm3, %v1280_v15  ;;  %v1273_v9 = vadd.f32 %v1257_v21, %v1225_v4  ;;  %v1285_v39 = vmax.f32 %v1269_v1, 0.0  ;;  %v1274_v27 = vadd.f32 %v1258_v47, %v1226_v61  ;;  %v1286_v37 = vmax.f32 %v1270_v54, 0.0 }
 0x405   :  { %1297 = vst.msk [vmem:[#allocation2 + $0x20] sm:$0xff] %vm1093_vm3, %v1281_v52  ;;  %v1275_v17 = vadd.f32 %v1259_v48, %v1227_v2  ;;  %v1287_v23 = vmax.f32 %v1271_v42, 0.0  ;;  %v1276_v14 = vadd.f32 %v1260_v5, %v1228_v25  ;;  %v1288_v34 = vmax.f32 %v1272_v46, 0.0 }
 0x406   :  { %1298 = vst.msk [vmem:[#allocation2 + $0x28] sm:$0xff] %vm1093_vm3, %v1282_v6  ;;  %v1289_v19 = vmax.f32 %v1273_v9, 0.0  ;;  %v1290_v53 = vmax.f32 %v1274_v27, 0.0 }
 0x407   :  { %1299 = vst.msk [vmem:[#allocation2 + $0x30] sm:$0xff] %vm1093_vm3, %v1283_v59  ;;  %v1291_v35 = vmax.f32 %v1275_v17, 0.0  ;;  %v1292_v20 = vmax.f32 %v1276_v14, 0.0 }
 0x408   :  { %1300 = vst.msk [vmem:[#allocation2 + $0x38] sm:$0xff] %vm1093_vm3, %v1284_v18 }
 0x409   :  { %1301 = vst.msk [vmem:[#allocation2 + $0x40] sm:$0xff] %vm1093_vm3, %v1285_v39 }
 0x40a   :  { %1302 = vst.msk [vmem:[#allocation2 + $0x48] sm:$0xff] %vm1093_vm3, %v1286_v37 }
 0x40b   :  { %1303 = vst.msk [vmem:[#allocation2 + $0x50] sm:$0xff] %vm1093_vm3, %v1287_v23 }
 0x40c   :  { %1304 = vst.msk [vmem:[#allocation2 + $0x58] sm:$0xff] %vm1093_vm3, %v1288_v34 }
 0x40d   :  { %1305 = vst.msk [vmem:[#allocation2 + $0x60] sm:$0xff] %vm1093_vm3, %v1289_v19 }
 0x40e   :  { %1306 = vst.msk [vmem:[#allocation2 + $0x68] sm:$0xff] %vm1093_vm3, %v1290_v53 }
 0x40f   :  { %1307 = vst.msk [vmem:[#allocation2 + $0x70] sm:$0xff] %vm1093_vm3, %v1291_v35 }
 0x410   :  { %1308 = vst.msk [vmem:[#allocation2 + $0x78] sm:$0xff] %vm1093_vm3, %v1292_v20 }
 0x411   :  { %1321 = dma.vmem_to_hbm [thread:$0]  %s1314_s25, 2048, %s1316_s1, [#allocation3], %s1451_s28, %s1451_s28, %s1452_s3  }
 0x412   :  { %1446 = dma.done.wait [#allocation3], 2048  }
 0x413   :  { %1447 = vsyncadd [#allocation3], 4294965248 }
 0x414   :  { %1326 = vsyncpa [#allocation3], 1 }

</bundles_post_ra>
